<compile_context>
chip_gen: v7x
topology: tpu7x:2x2x1
jax: 0.10.0
libtpu: 0.0.40
codegen_flags: <defaults>
</compile_context>

<pallas_src>
import functools

import jax
import jax.numpy as jnp
from jax.experimental import pallas as pl
from jax.experimental.pallas import tpu as pltpu

EPS = 1e-5          # InstanceNorm3d eps
LANE = 128
MAX_TS = 1024       # spatial tile (lanes); >=512 is ~85% of HBM roofline
VMEM_LIMIT = 32 * 1024 * 1024   # above v5e's 16 MiB scoped default, safe on v7x


# ----------------------------------------------------------------------------
# small helpers
# ----------------------------------------------------------------------------
def _round_up(x, m):
    return (x + m - 1) // m * m


def _tile_spatial(s):
    """Pick a lane-dense spatial tile TS and the padded extent Sp (TS | Sp)."""
    ts = MAX_TS if s >= MAX_TS else _round_up(s, LANE)
    return ts, _round_up(s, ts)


def _pad_patches(p, K, S):
    """Zero-pad (N, K, S) patches to (N, Kp, Sp) and cast to bf16."""
    Kp = _round_up(K, 16)                      # bf16 sublane packing
    _, Sp = _tile_spatial(S)
    p = jnp.pad(p, ((0, 0), (0, Kp - K), (0, Sp - S)))
    return p.astype(jnp.bfloat16), Kp, Sp


# ----------------------------------------------------------------------------
# Pallas kernels
# ----------------------------------------------------------------------------
def _conv_stats_kernel(w_ref, p_ref, y_ref, sum_ref, sq_ref):
    """One (Cout_p, TS) output tile of the conv matmul + InstanceNorm stats.

    w_ref: (Cout_p, Kp) bf16   p_ref: (Kp, TS) bf16
    y_ref: (Cout_p, TS) f32    sum_ref/sq_ref: (Cout_p, 1) f32 accumulators
    (their index_map is constant over the S-tile axis -> accumulate across it).
    Bias is intentionally NOT added: it is cancelled by the IN mean subtraction.
    """
    y = jnp.dot(w_ref[...], p_ref[...], preferred_element_type=jnp.float32)
    y_ref[...] = y

    @pl.when(pl.program_id(1) == 0)
    def _init():
        sum_ref[...] = jnp.zeros_like(sum_ref)
        sq_ref[...] = jnp.zeros_like(sq_ref)

    sum_ref[...] += jnp.sum(y, axis=1, keepdims=True)
    sq_ref[...] += jnp.sum(y * y, axis=1, keepdims=True)


def _conv_bias_kernel(w_ref, p_ref, b_ref, y_ref):
    """Conv matmul + bias (top conv_only layer; no norm/act)."""
    y = jnp.dot(w_ref[...], p_ref[...], preferred_element_type=jnp.float32)
    y_ref[...] = y + b_ref[...]


def _in_prelu_kernel(y_ref, sum_ref, sq_ref, alpha_ref, o_ref, *, inv_s):
    """InstanceNorm3d(affine=False) + PReLU on one (Cout_p, TS) tile.

    Single-pass stats: mean = sum/S, var = sumsq/S - mean^2 (f32 math).
    alpha_ref: (1,) PReLU weight in SMEM (PyTorch default num_parameters=1).
    """
    y = y_ref[...]
    mean = sum_ref[...] * inv_s                      # (Cout_p, 1)
    var = sq_ref[...] * inv_s - mean * mean
    var = jnp.maximum(var, 0.0)
    xn = (y - mean) * jax.lax.rsqrt(var + EPS)
    a = alpha_ref[0]
    o_ref[...] = jnp.where(xn >= 0.0, xn, a * xn)


# ----------------------------------------------------------------------------
# pallas_call wrappers
# ----------------------------------------------------------------------------
def _conv_matmul_stats(patches, w_mat):
    """patches: (N, Kp, Sp) bf16, w_mat: (Cout_p, Kp) bf16
    -> y (N, Cout_p, Sp) f32, spatial sum & sumsq (N, Cout_p, 1) f32."""
    N, Kp, Sp = patches.shape
    Cout_p = w_mat.shape[0]
    TS = MAX_TS if Sp > MAX_TS else Sp
    grid = (N, Sp // TS)
    return pl.pallas_call(
        _conv_stats_kernel,
        out_shape=(jax.ShapeDtypeStruct((N, Cout_p, Sp), jnp.float32),
                   jax.ShapeDtypeStruct((N, Cout_p, 1), jnp.float32),
                   jax.ShapeDtypeStruct((N, Cout_p, 1), jnp.float32)),
        grid=grid,
        in_specs=[
            pl.BlockSpec((Cout_p, Kp), lambda n, st: (0, 0)),
            pl.BlockSpec((None, Kp, TS), lambda n, st: (n, 0, st)),
        ],
        out_specs=(
            pl.BlockSpec((None, Cout_p, TS), lambda n, st: (n, 0, st)),
            pl.BlockSpec((None, Cout_p, 1), lambda n, st: (n, 0, 0)),
            pl.BlockSpec((None, Cout_p, 1), lambda n, st: (n, 0, 0)),
        ),
        compiler_params=pltpu.CompilerParams(
            dimension_semantics=("parallel", "arbitrary"),
            vmem_limit_bytes=VMEM_LIMIT),
    )(w_mat, patches)


def _conv_matmul_bias(patches, w_mat, b_col):
    """Conv matmul + bias, no norm.  Both grid axes are parallel."""
    N, Kp, Sp = patches.shape
    Cout_p = w_mat.shape[0]
    TS = MAX_TS if Sp > MAX_TS else Sp
    grid = (N, Sp // TS)
    return pl.pallas_call(
        _conv_bias_kernel,
        out_shape=jax.ShapeDtypeStruct((N, Cout_p, Sp), jnp.float32),
        grid=grid,
        in_specs=[
            pl.BlockSpec((Cout_p, Kp), lambda n, st: (0, 0)),
            pl.BlockSpec((None, Kp, TS), lambda n, st: (n, 0, st)),
            pl.BlockSpec((Cout_p, 1), lambda n, st: (0, 0)),
        ],
        out_specs=pl.BlockSpec((None, Cout_p, TS), lambda n, st: (n, 0, st)),
        compiler_params=pltpu.CompilerParams(
            dimension_semantics=("parallel", "parallel"),
            vmem_limit_bytes=VMEM_LIMIT),
    )(w_mat, patches, b_col)


def _instance_norm_prelu(y, ssum, ssq, alpha, true_s):
    """Second pass: normalize + PReLU, tiled over S; both grid axes parallel."""
    N, Cout_p, Sp = y.shape
    TS = MAX_TS if Sp > MAX_TS else Sp
    grid = (N, Sp // TS)
    kernel = functools.partial(_in_prelu_kernel, inv_s=1.0 / float(true_s))
    return pl.pallas_call(
        kernel,
        out_shape=jax.ShapeDtypeStruct((N, Cout_p, Sp), jnp.float32),
        grid=grid,
        in_specs=[
            pl.BlockSpec((None, Cout_p, TS), lambda n, st: (n, 0, st)),
            pl.BlockSpec((None, Cout_p, 1), lambda n, st: (n, 0, 0)),
            pl.BlockSpec((None, Cout_p, 1), lambda n, st: (n, 0, 0)),
            pl.BlockSpec(memory_space=pltpu.MemorySpace.SMEM),
        ],
        out_specs=pl.BlockSpec((None, Cout_p, TS), lambda n, st: (n, 0, st)),
        compiler_params=pltpu.CompilerParams(
            dimension_semantics=("parallel", "parallel"),
            vmem_limit_bytes=VMEM_LIMIT),
    )(y, ssum, ssq, alpha)


# ----------------------------------------------------------------------------
# conv / transpose-conv blocks (JAX glue builds transposed im2col patches)
# ----------------------------------------------------------------------------
def conv3d_block(x, w_pt, alpha, stride, fuse_norm_act, bias=None):
    """Conv3d(k=3, pad=1, stride) [+ InstanceNorm3d + PReLU].

    x: (N, Cin, D, H, W) f32; w_pt: (Cout, Cin, 3, 3, 3) (PyTorch layout).
    """
    N, Cin, D, H, W = x.shape
    Cout = w_pt.shape[0]
    Cout_p = _round_up(Cout, 8)

    xp = jnp.pad(x, ((0, 0), (0, 0), (1, 1), (1, 1), (1, 1))).astype(jnp.bfloat16)
    Do = (D + 2 - 3) // stride + 1
    Ho = (H + 2 - 3) // stride + 1
    Wo = (W + 2 - 3) // stride + 1

    taps = []
    for kd in range(3):
        for kh in range(3):
            for kw in range(3):
                taps.append(xp[:, :,
                               kd:kd + stride * (Do - 1) + 1:stride,
                               kh:kh + stride * (Ho - 1) + 1:stride,
                               kw:kw + stride * (Wo - 1) + 1:stride])
    K = 27 * Cin
    S = Do * Ho * Wo
    patches = jnp.stack(taps, axis=1).reshape(N, K, S)       # K = tap*Cin + cin
    patches, Kp, _ = _pad_patches(patches, K, S)

    wm = jnp.transpose(w_pt, (0, 2, 3, 4, 1)).reshape(Cout, K)
    wm = jnp.pad(wm, ((0, Cout_p - Cout), (0, Kp - K))).astype(jnp.bfloat16)

    if fuse_norm_act:
        # bias omitted: exactly cancelled by InstanceNorm's mean subtraction.
        y, ssum, ssq = _conv_matmul_stats(patches, wm)
        y = _instance_norm_prelu(y, ssum, ssq, alpha, S)
    else:
        b_col = jnp.pad(bias.reshape(Cout, 1).astype(jnp.float32),
                        ((0, Cout_p - Cout), (0, 0)))
        y = _conv_matmul_bias(patches, wm, b_col)

    return y[:, :Cout, :S].reshape(N, Cout, Do, Ho, Wo)


def convtranspose3d_block(x, w_pt, alpha, stride, fuse_norm_act, bias=None):
    """ConvTranspose3d(k=3, stride=2, pad=1, output_padding=1) via sub-pixel
    (8-phase) decomposition: each output parity phase uses 1..8 taps (27 total),
    so no zero-dilated input and ~8x less patch traffic than the naive lowering.

    x: (N, Cin, D, H, W); w_pt: (Cin, Cout, 3, 3, 3) (PyTorch ConvT layout).
    """
    assert stride == 2, "sub-pixel decomposition implemented for stride=2"
    N, Cin, D, H, W = x.shape
    Cout = w_pt.shape[1]
    Cout_p = _round_up(Cout, 8)
    S_in = D * H * W

    # one zero plane at the far end of each spatial dim for the (delta=1) taps
    xe = jnp.pad(x, ((0, 0), (0, 0), (0, 1), (0, 1), (0, 1))).astype(jnp.bfloat16)

    def dim_taps(par):
        # (input offset delta, kernel index) pairs contributing to parity `par`
        return [(0, 1)] if par == 0 else [(0, 2), (1, 0)]

    if not fuse_norm_act:
        b_col = jnp.pad(bias.reshape(Cout, 1).astype(jnp.float32),
                        ((0, Cout_p - Cout), (0, 0)))

    phase_outs = []
    ssum_tot = None
    ssq_tot = None
    for pd in (0, 1):
        for ph in (0, 1):
            for pw in (0, 1):
                slabs, wcols = [], []
                for dd, td in dim_taps(pd):
                    for dh, th in dim_taps(ph):
                        for dw, tw in dim_taps(pw):
                            slabs.append(xe[:, :, dd:dd + D, dh:dh + H, dw:dw + W])
                            wcols.append(w_pt[:, :, td, th, tw].T)   # (Cout, Cin)
                K = len(slabs) * Cin
                patches = jnp.stack(slabs, axis=1).reshape(N, K, S_in)
                patches, Kp, _ = _pad_patches(patches, K, S_in)
                wm = jnp.stack(wcols, axis=1).reshape(Cout, K)
                wm = jnp.pad(wm, ((0, Cout_p - Cout), (0, Kp - K))).astype(jnp.bfloat16)

                if fuse_norm_act:
                    y, ssum, ssq = _conv_matmul_stats(patches, wm)
                    ssum_tot = ssum if ssum_tot is None else ssum_tot + ssum
                    ssq_tot = ssq if ssq_tot is None else ssq_tot + ssq
                else:
                    y = _conv_matmul_bias(patches, wm, b_col)
                phase_outs.append(y[:, :, :S_in].reshape(N, Cout_p, D, H, W))

    # interleave: out[n, c, 2d+pd, 2h+ph, 2w+pw] = phase[(pd,ph,pw)][n, c, d, h, w]
    phases = jnp.stack(phase_outs, axis=0).reshape(2, 2, 2, N, Cout_p, D, H, W)
    out = jnp.transpose(phases, (3, 4, 5, 0, 6, 1, 7, 2))
    out = out.reshape(N, Cout_p, 2 * D, 2 * H, 2 * W)

    if fuse_norm_act:
        S_out = 8 * S_in
        _, Sp = _tile_spatial(S_out)
        yf = jnp.pad(out.reshape(N, Cout_p, S_out),
                     ((0, 0), (0, 0), (0, Sp - S_out)))
        out = _instance_norm_prelu(yf, ssum_tot, ssq_tot, alpha, S_out)
        out = out[:, :, :S_out].reshape(N, Cout_p, 2 * D, 2 * H, 2 * W)

    return out[:, :Cout]


def daft_film(x, x_tab, w1, b1, w2, b2):
    """DAFT: per-channel spatial mean pool -> cat(tab) -> fc1 -> ReLU -> fc2 ->
    FiLM a*x + b.  Kept as plain JAX glue (M=1 matmuls, memory-bound FiLM) so
    XLA fuses it into the bottom-conv patch construction instead of a
    whole-map-resident kernel round trip (perf-review item)."""
    C = x.shape[1]
    pooled = jnp.mean(x, axis=(2, 3, 4))                     # (N, C)
    h = jnp.concatenate([pooled, x_tab], axis=1)             # (N, C + P)
    h = jnp.maximum(jnp.dot(h, w1) + b1, 0.0)
    ab = jnp.dot(h, w2) + b2                                 # (N, 2C)
    a = ab[:, :C][:, :, None, None, None]
    b = ab[:, C:][:, :, None, None, None]
    return a * x + b


# ----------------------------------------------------------------------------
# UNetDAFT forward (channels=(C1,C2,C3), strides=(2,2), num_res_units=0)
# ----------------------------------------------------------------------------
def unet_daft_forward(x_img, x_tab, params):
    """x_img: (N, Cin, D, H, W) NCDHW; x_tab: (N, P).  Returns NCDHW."""
    p = params
    x = x_img.astype(jnp.float32)

    d1 = conv3d_block(x, p['down1_w'], p['down1_prelu'],
                      stride=2, fuse_norm_act=True)
    d2 = conv3d_block(d1, p['down2_w'], p['down2_prelu'],
                      stride=2, fuse_norm_act=True)

    # bottom: DAFT (FiLM) -> Conv + IN + PReLU
    d2f = daft_film(d2, x_tab, p['daft_w1'], p['daft_b1'],
                    p['daft_w2'], p['daft_b2'])
    bot = conv3d_block(d2f, p['bottom_w'], p['bottom_prelu'],
                       stride=1, fuse_norm_act=True)

    # skip connections: cat([down_output, submodule_output], channel axis)
    skip2 = jnp.concatenate([d2, bot], axis=1)
    u2 = convtranspose3d_block(skip2, p['up2_w'], p['up2_prelu'],
                               stride=2, fuse_norm_act=True)
    skip1 = jnp.concatenate([d1, u2], axis=1)
    u1 = convtranspose3d_block(skip1, p['up1_w'], None, stride=2,
                               fuse_norm_act=False, bias=p['up1_b'])  # conv_only
    return u1


def init_params(key, in_ch, out_ch, channels, num_tab_features, daft_r):
    C1, C2, C3 = channels
    P = num_tab_features
    hidden = (P + C2) // daft_r
    ks = list(jax.random.split(key, 16))

    def w(k, shape, scale=0.1):
        return jax.random.normal(k, shape, jnp.float32) * scale

    return {
        'down1_w': w(ks[0], (C1, in_ch, 3, 3, 3)),
        # conv biases ahead of InstanceNorm are mathematically cancelled by the
        # mean subtraction, so they are created (module has bias=True) but never
        # applied / DMA'd (perf-review item).
        'down1_b': w(ks[1], (C1,)),
        'down1_prelu': jnp.full((1,), 0.25, jnp.float32),
        'down2_w': w(ks[2], (C2, C1, 3, 3, 3)),
        'down2_b': w(ks[3], (C2,)),
        'down2_prelu': jnp.full((1,), 0.25, jnp.float32),
        # DAFT: fc1 in (C2 + P) -> hidden ; fc2 hidden -> 2*C2 (a | b)
        'daft_w1': w(ks[4], (C2 + P, hidden)),
        'daft_b1': w(ks[5], (hidden,)),
        'daft_w2': w(ks[6], (hidden, 2 * C2)),
        'daft_b2': w(ks[7], (2 * C2,)),
        'bottom_w': w(ks[8], (C3, C2, 3, 3, 3)),
        'bottom_b': w(ks[9], (C3,)),
        'bottom_prelu': jnp.full((1,), 0.25, jnp.float32),
        # ConvTranspose weights use PyTorch (Cin, Cout, k, k, k) layout
        'up2_w': w(ks[10], (C2 + C3, C1, 3, 3, 3)),
        'up2_b': w(ks[11], (C1,)),
        'up2_prelu': jnp.full((1,), 0.25, jnp.float32),
        'up1_w': w(ks[12], (2 * C1, out_ch, 3, 3, 3)),
        'up1_b': w(ks[13], (out_ch,)),
    }


if __name__ == "__main__":
    # UNetDAFT(spatial_dims=3, in_channels=2, out_channels=2,
    #          channels=(8, 16, 32), strides=(2, 2),
    #          num_tab_features=4, num_res_units=0, daft_r=2)
    N, IC, OC = 2, 2, 2
    D = H = W = 24            # small, but large enough to exercise multi-S-tile
    channels = (8, 16, 32)
    P = 4
    daft_r = 2

    key = jax.random.PRNGKey(0)
    k_img, k_tab, k_par = jax.random.split(key, 3)
    x_img = jax.random.normal(k_img, (N, IC, D, H, W), jnp.float32)   # NCDHW
    x_tab = jax.random.normal(k_tab, (N, P), jnp.float32)
    params = init_params(k_par, IC, OC, channels, P, daft_r)

    fwd = jax.jit(unet_daft_forward)
    out = jax.block_until_ready(fwd(x_img, x_tab, params))

    assert out.shape == (N, OC, D, H, W), out.shape
    assert bool(jnp.all(jnp.isfinite(out)))
    print("KERNEL_OK")
</pallas_src>

<mosaic_0001>
module attributes {stable_mosaic.version = 11 : i64} {
  func.func @_conv_stats_kernel(%arg0: i32, %arg1: i32, %arg2: memref<8x64xbf16, #tpu.memory_space<vmem>>, %arg3: memref<1x64x1024xbf16, #tpu.memory_space<vmem>>, %arg4: memref<1x8x1024xf32, #tpu.memory_space<vmem>>, %arg5: memref<1x8x1xf32, #tpu.memory_space<vmem>>, %arg6: memref<1x8x1xf32, #tpu.memory_space<vmem>>) attributes {dimension_semantics = [#tpu.dimension_semantics<parallel>, #tpu.dimension_semantics<arbitrary>], iteration_bounds = array<i64: 2, 2>, scalar_prefetch = 0 : i64, scratch_operands = 0 : i64, tpu.core_type = #tpu.core_type<tc>, window_params = [{pipeline_mode = #tpu.pipeline_mode<synchronous>, transform_indices = @transform_0, window_bounds = array<i64: 8, 64>}, {transform_indices = @transform_1, window_bounds = array<i64: 1, 64, 1024>}, {transform_indices = @transform_2, window_bounds = array<i64: 1, 8, 1024>}, {transform_indices = @transform_3, window_bounds = array<i64: 1, 8, 1>}, {transform_indices = @transform_4, window_bounds = array<i64: 1, 8, 1>}]} {
    %c0 = arith.constant 0 : index
    %c0_0 = arith.constant 0 : index
    %0 = vector.load %arg2[%c0, %c0_0] : memref<8x64xbf16, #tpu.memory_space<vmem>>, vector<8x64xbf16>
    %c0_1 = arith.constant 0 : index
    %c0_2 = arith.constant 0 : index
    %c0_3 = arith.constant 0 : index
    %1 = vector.load %arg3[%c0_1, %c0_2, %c0_3] : memref<1x64x1024xbf16, #tpu.memory_space<vmem>>, vector<1x64x1024xbf16>
    %2 = vector.shape_cast %1 : vector<1x64x1024xbf16> to vector<64x1024xbf16>
    %cst = arith.constant dense<0.000000e+00> : vector<8x1024xf32>
    %3 = tpu.matmul %0, %2, %cst {dimension_numbers = #tpu.dot_dimension_numbers<[1], [0], [0], [1], [0, 0, 1, 1], [], []>} : vector<8x64xbf16>, vector<64x1024xbf16>, vector<8x1024xf32> -> vector<8x1024xf32>
    %c0_4 = arith.constant 0 : index
    %c0_5 = arith.constant 0 : index
    %c0_6 = arith.constant 0 : index
    %4 = vector.load %arg4[%c0_4, %c0_5, %c0_6] : memref<1x8x1024xf32, #tpu.memory_space<vmem>>, vector<1x8x1024xf32>
    %5 = vector.shape_cast %4 : vector<1x8x1024xf32> to vector<8x1024xf32>
    %6 = vector.shape_cast %3 : vector<8x1024xf32> to vector<1x8x1024xf32>
    tpu.vector_store %arg4[%c0_4, %c0_5, %c0_6], %6 {strides = array<i32>} : memref<1x8x1024xf32, #tpu.memory_space<vmem>>, vector<1x8x1024xf32>,
    %c0_i32 = arith.constant 0 : i32
    %7 = arith.cmpi eq, %arg1, %c0_i32 : i32
    %8 = arith.extui %7 : i1 to i32
    %c0_i32_7 = arith.constant 0 : i32
    %9 = arith.cmpi ne, %8, %c0_i32_7 : i32
    scf.if %9 {
      %cst_22 = arith.constant 0.000000e+00 : f32
      %27 = vector.broadcast %cst_22 : f32 to vector<8x1xf32>
      %c0_23 = arith.constant 0 : index
      %c0_24 = arith.constant 0 : index
      %c0_25 = arith.constant 0 : index
      %28 = vector.load %arg5[%c0_23, %c0_24, %c0_25] : memref<1x8x1xf32, #tpu.memory_space<vmem>>, vector<1x8x1xf32>
      %29 = vector.shape_cast %28 : vector<1x8x1xf32> to vector<8x1xf32>
      %30 = vector.shape_cast %27 : vector<8x1xf32> to vector<1x8x1xf32>
      tpu.vector_store %arg5[%c0_23, %c0_24, %c0_25], %30 {strides = array<i32>} : memref<1x8x1xf32, #tpu.memory_space<vmem>>, vector<1x8x1xf32>,
      %cst_26 = arith.constant 0.000000e+00 : f32
      %31 = vector.broadcast %cst_26 : f32 to vector<8x1xf32>
      %c0_27 = arith.constant 0 : index
      %c0_28 = arith.constant 0 : index
      %c0_29 = arith.constant 0 : index
      %32 = vector.load %arg6[%c0_27, %c0_28, %c0_29] : memref<1x8x1xf32, #tpu.memory_space<vmem>>, vector<1x8x1xf32>
      %33 = vector.shape_cast %32 : vector<1x8x1xf32> to vector<8x1xf32>
      %34 = vector.shape_cast %31 : vector<8x1xf32> to vector<1x8x1xf32>
      tpu.vector_store %arg6[%c0_27, %c0_28, %c0_29], %34 {strides = array<i32>} : memref<1x8x1xf32, #tpu.memory_space<vmem>>, vector<1x8x1xf32>,
    } else {
    }
    %c0_8 = arith.constant 0 : index
    %c0_9 = arith.constant 0 : index
    %c0_10 = arith.constant 0 : index
    %10 = vector.load %arg5[%c0_8, %c0_9, %c0_10] : memref<1x8x1xf32, #tpu.memory_space<vmem>>, vector<1x8x1xf32>
    %11 = vector.shape_cast %10 : vector<1x8x1xf32> to vector<8x1xf32>
    %cst_11 = arith.constant dense<0.000000e+00> : vector<8xf32>
    %12 = vector.multi_reduction <add>, %3, %cst_11 [1] : vector<8x1024xf32> to vector<8xf32>
    %13 = vector.shape_cast %12 : vector<8xf32> to vector<8x1xf32>
    %14 = arith.addf %11, %13 : vector<8x1xf32>
    %c0_12 = arith.constant 0 : index
    %c0_13 = arith.constant 0 : index
    %c0_14 = arith.constant 0 : index
    %15 = vector.load %arg5[%c0_12, %c0_13, %c0_14] : memref<1x8x1xf32, #tpu.memory_space<vmem>>, vector<1x8x1xf32>
    %16 = vector.shape_cast %15 : vector<1x8x1xf32> to vector<8x1xf32>
    %17 = vector.shape_cast %14 : vector<8x1xf32> to vector<1x8x1xf32>
    tpu.vector_store %arg5[%c0_12, %c0_13, %c0_14], %17 {strides = array<i32>} : memref<1x8x1xf32, #tpu.memory_space<vmem>>, vector<1x8x1xf32>,
    %c0_15 = arith.constant 0 : index
    %c0_16 = arith.constant 0 : index
    %c0_17 = arith.constant 0 : index
    %18 = vector.load %arg6[%c0_15, %c0_16, %c0_17] : memref<1x8x1xf32, #tpu.memory_space<vmem>>, vector<1x8x1xf32>
    %19 = vector.shape_cast %18 : vector<1x8x1xf32> to vector<8x1xf32>
    %20 = arith.mulf %3, %3 : vector<8x1024xf32>
    %cst_18 = arith.constant dense<0.000000e+00> : vector<8xf32>
    %21 = vector.multi_reduction <add>, %20, %cst_18 [1] : vector<8x1024xf32> to vector<8xf32>
    %22 = vector.shape_cast %21 : vector<8xf32> to vector<8x1xf32>
    %23 = arith.addf %19, %22 : vector<8x1xf32>
    %c0_19 = arith.constant 0 : index
    %c0_20 = arith.constant 0 : index
    %c0_21 = arith.constant 0 : index
    %24 = vector.load %arg6[%c0_19, %c0_20, %c0_21] : memref<1x8x1xf32, #tpu.memory_space<vmem>>, vector<1x8x1xf32>
    %25 = vector.shape_cast %24 : vector<1x8x1xf32> to vector<8x1xf32>
    %26 = vector.shape_cast %23 : vector<8x1xf32> to vector<1x8x1xf32>
    tpu.vector_store %arg6[%c0_19, %c0_20, %c0_21], %26 {strides = array<i32>} : memref<1x8x1xf32, #tpu.memory_space<vmem>>, vector<1x8x1xf32>,
    return
  }
  func.func @transform_0(%arg0: i32, %arg1: i32) -> (i32, i32) {
    %c0_i32 = arith.constant 0 : i32
    %c0_i32_0 = arith.constant 0 : i32
    %c0_i32_1 = arith.constant 0 : i32
    return %c0_i32, %c0_i32_0 : i32, i32
  }
  func.func @transform_1(%arg0: i32, %arg1: i32) -> (i32, i32, i32) {
    %c0_i32 = arith.constant 0 : i32
    %c0_i32_0 = arith.constant 0 : i32
    return %arg0, %c0_i32, %arg1 : i32, i32, i32
  }
  func.func @transform_2(%arg0: i32, %arg1: i32) -> (i32, i32, i32) {
    %c0_i32 = arith.constant 0 : i32
    %c0_i32_0 = arith.constant 0 : i32
    return %arg0, %c0_i32, %arg1 : i32, i32, i32
  }
  func.func @transform_3(%arg0: i32, %arg1: i32) -> (i32, i32, i32) {
    %c0_i32 = arith.constant 0 : i32
    %c0_i32_0 = arith.constant 0 : i32
    %c0_i32_1 = arith.constant 0 : i32
    return %arg0, %c0_i32, %c0_i32_0 : i32, i32, i32
  }
  func.func @transform_4(%arg0: i32, %arg1: i32) -> (i32, i32, i32) {
    %c0_i32 = arith.constant 0 : i32
    %c0_i32_0 = arith.constant 0 : i32
    %c0_i32_1 = arith.constant 0 : i32
    return %arg0, %c0_i32, %c0_i32_0 : i32, i32, i32
  }
}

module attributes {stable_mosaic.version = 11 : i64} {
  func.func @_in_prelu_kernel(%arg0: i32, %arg1: i32, %arg2: memref<1x8x1024xf32, #tpu.memory_space<vmem>>, %arg3: memref<1x8x1xf32, #tpu.memory_space<vmem>>, %arg4: memref<1x8x1xf32, #tpu.memory_space<vmem>>, %arg5: memref<1xf32, #tpu.memory_space<smem>>, %arg6: memref<1x8x1024xf32, #tpu.memory_space<vmem>>) attributes {dimension_semantics = [#tpu.dimension_semantics<parallel>, #tpu.dimension_semantics<parallel>], iteration_bounds = array<i64: 2, 2>, scalar_prefetch = 0 : i64, scratch_operands = 0 : i64, tpu.core_type = #tpu.core_type<tc>, window_params = [{transform_indices = @transform_0, window_bounds = array<i64: 1, 8, 1024>}, {transform_indices = @transform_1, window_bounds = array<i64: 1, 8, 1>}, {transform_indices = @transform_2, window_bounds = array<i64: 1, 8, 1>}, {transform_indices = @transform_3, window_bounds = array<i64: 1>}, {transform_indices = @transform_4, window_bounds = array<i64: 1, 8, 1024>}]} {
    %c0 = arith.constant 0 : index
    %c0_0 = arith.constant 0 : index
    %c0_1 = arith.constant 0 : index
    %0 = vector.load %arg2[%c0, %c0_0, %c0_1] : memref<1x8x1024xf32, #tpu.memory_space<vmem>>, vector<1x8x1024xf32>
    %1 = vector.shape_cast %0 : vector<1x8x1024xf32> to vector<8x1024xf32>
    %c0_2 = arith.constant 0 : index
    %c0_3 = arith.constant 0 : index
    %c0_4 = arith.constant 0 : index
    %2 = vector.load %arg3[%c0_2, %c0_3, %c0_4] : memref<1x8x1xf32, #tpu.memory_space<vmem>>, vector<1x8x1xf32>
    %3 = vector.shape_cast %2 : vector<1x8x1xf32> to vector<8x1xf32>
    %cst = arith.constant 5.78703708E-4 : f32
    %4 = vector.broadcast %cst : f32 to vector<8x1xf32>
    %5 = arith.mulf %3, %4 : vector<8x1xf32>
    %c0_5 = arith.constant 0 : index
    %c0_6 = arith.constant 0 : index
    %c0_7 = arith.constant 0 : index
    %6 = vector.load %arg4[%c0_5, %c0_6, %c0_7] : memref<1x8x1xf32, #tpu.memory_space<vmem>>, vector<1x8x1xf32>
    %7 = vector.shape_cast %6 : vector<1x8x1xf32> to vector<8x1xf32>
    %cst_8 = arith.constant 5.78703708E-4 : f32
    %8 = vector.broadcast %cst_8 : f32 to vector<8x1xf32>
    %9 = arith.mulf %7, %8 : vector<8x1xf32>
    %10 = arith.mulf %5, %5 : vector<8x1xf32>
    %11 = arith.subf %9, %10 : vector<8x1xf32>
    %cst_9 = arith.constant 0.000000e+00 : f32
    %12 = vector.broadcast %cst_9 : f32 to vector<8x1xf32>
    %13 = arith.maximumf %11, %12 : vector<8x1xf32>
    %14 = vector.broadcast %5 : vector<8x1xf32> to vector<8x1024xf32>
    %15 = arith.subf %1, %14 : vector<8x1024xf32>
    %cst_10 = arith.constant 9.99999974E-6 : f32
    %16 = vector.broadcast %cst_10 : f32 to vector<8x1xf32>
    %17 = arith.addf %13, %16 : vector<8x1xf32>
    %18 = math.rsqrt %17 : vector<8x1xf32>
    %19 = vector.broadcast %18 : vector<8x1xf32> to vector<8x1024xf32>
    %20 = arith.mulf %15, %19 : vector<8x1024xf32>
    %c0_11 = arith.constant 0 : index
    %21 = memref.load %arg5[%c0_11] : memref<1xf32, #tpu.memory_space<smem>>
    %cst_12 = arith.constant 0.000000e+00 : f32
    %22 = vector.broadcast %cst_12 : f32 to vector<8x1024xf32>
    %23 = arith.cmpf oge, %20, %22 : vector<8x1024xf32>
    %24 = vector.broadcast %21 : f32 to vector<8x1024xf32>
    %25 = arith.mulf %24, %20 : vector<8x1024xf32>
    %26 = arith.select %23, %20, %25 : vector<8x1024xi1>, vector<8x1024xf32>
    %c0_13 = arith.constant 0 : index
    %c0_14 = arith.constant 0 : index
    %c0_15 = arith.constant 0 : index
    %27 = vector.load %arg6[%c0_13, %c0_14, %c0_15] : memref<1x8x1024xf32, #tpu.memory_space<vmem>>, vector<1x8x1024xf32>
    %28 = vector.shape_cast %27 : vector<1x8x1024xf32> to vector<8x1024xf32>
    %29 = vector.shape_cast %26 : vector<8x1024xf32> to vector<1x8x1024xf32>
    tpu.vector_store %arg6[%c0_13, %c0_14, %c0_15], %29 {strides = array<i32>} : memref<1x8x1024xf32, #tpu.memory_space<vmem>>, vector<1x8x1024xf32>,
    return
  }
  func.func @transform_0(%arg0: i32, %arg1: i32) -> (i32, i32, i32) {
    %c0_i32 = arith.constant 0 : i32
    %c0_i32_0 = arith.constant 0 : i32
    return %arg0, %c0_i32, %arg1 : i32, i32, i32
  }
  func.func @transform_1(%arg0: i32, %arg1: i32) -> (i32, i32, i32) {
    %c0_i32 = arith.constant 0 : i32
    %c0_i32_0 = arith.constant 0 : i32
    %c0_i32_1 = arith.constant 0 : i32
    return %arg0, %c0_i32, %c0_i32_0 : i32, i32, i32
  }
  func.func @transform_2(%arg0: i32, %arg1: i32) -> (i32, i32, i32) {
    %c0_i32 = arith.constant 0 : i32
    %c0_i32_0 = arith.constant 0 : i32
    %c0_i32_1 = arith.constant 0 : i32
    return %arg0, %c0_i32, %c0_i32_0 : i32, i32, i32
  }
  func.func @transform_3(%arg0: i32, %arg1: i32) -> i32 {
    %c0_i32 = arith.constant 0 : i32
    %c0_i32_0 = arith.constant 0 : i32
    return %c0_i32 : i32
  }
  func.func @transform_4(%arg0: i32, %arg1: i32) -> (i32, i32, i32) {
    %c0_i32 = arith.constant 0 : i32
    %c0_i32_0 = arith.constant 0 : i32
    return %arg0, %c0_i32, %arg1 : i32, i32, i32
  }
}

module attributes {stable_mosaic.version = 11 : i64} {
  func.func @_conv_stats_kernel(%arg0: i32, %arg1: i32, %arg2: memref<16x224xbf16, #tpu.memory_space<vmem>>, %arg3: memref<1x224x256xbf16, #tpu.memory_space<vmem>>, %arg4: memref<1x16x256xf32, #tpu.memory_space<vmem>>, %arg5: memref<1x16x1xf32, #tpu.memory_space<vmem>>, %arg6: memref<1x16x1xf32, #tpu.memory_space<vmem>>) attributes {dimension_semantics = [#tpu.dimension_semantics<parallel>, #tpu.dimension_semantics<arbitrary>], iteration_bounds = array<i64: 2, 1>, scalar_prefetch = 0 : i64, scratch_operands = 0 : i64, tpu.core_type = #tpu.core_type<tc>, window_params = [{pipeline_mode = #tpu.pipeline_mode<synchronous>, transform_indices = @transform_0, window_bounds = array<i64: 16, 224>}, {transform_indices = @transform_1, window_bounds = array<i64: 1, 224, 256>}, {transform_indices = @transform_2, window_bounds = array<i64: 1, 16, 256>}, {transform_indices = @transform_3, window_bounds = array<i64: 1, 16, 1>}, {transform_indices = @transform_4, window_bounds = array<i64: 1, 16, 1>}]} {
    %c0 = arith.constant 0 : index
    %c0_0 = arith.constant 0 : index
    %0 = vector.load %arg2[%c0, %c0_0] : memref<16x224xbf16, #tpu.memory_space<vmem>>, vector<16x224xbf16>
    %c0_1 = arith.constant 0 : index
    %c0_2 = arith.constant 0 : index
    %c0_3 = arith.constant 0 : index
    %1 = vector.load %arg3[%c0_1, %c0_2, %c0_3] : memref<1x224x256xbf16, #tpu.memory_space<vmem>>, vector<1x224x256xbf16>
    %2 = vector.shape_cast %1 : vector<1x224x256xbf16> to vector<224x256xbf16>
    %cst = arith.constant dense<0.000000e+00> : vector<16x256xf32>
    %3 = tpu.matmul %0, %2, %cst {dimension_numbers = #tpu.dot_dimension_numbers<[1], [0], [0], [1], [0, 0, 1, 1], [], []>} : vector<16x224xbf16>, vector<224x256xbf16>, vector<16x256xf32> -> vector<16x256xf32>
    %c0_4 = arith.constant 0 : index
    %c0_5 = arith.constant 0 : index
    %c0_6 = arith.constant 0 : index
    %4 = vector.load %arg4[%c0_4, %c0_5, %c0_6] : memref<1x16x256xf32, #tpu.memory_space<vmem>>, vector<1x16x256xf32>
    %5 = vector.shape_cast %4 : vector<1x16x256xf32> to vector<16x256xf32>
    %6 = vector.shape_cast %3 : vector<16x256xf32> to vector<1x16x256xf32>
    tpu.vector_store %arg4[%c0_4, %c0_5, %c0_6], %6 {strides = array<i32>} : memref<1x16x256xf32, #tpu.memory_space<vmem>>, vector<1x16x256xf32>,
    %c0_i32 = arith.constant 0 : i32
    %7 = arith.cmpi eq, %arg1, %c0_i32 : i32
    %8 = arith.extui %7 : i1 to i32
    %c0_i32_7 = arith.constant 0 : i32
    %9 = arith.cmpi ne, %8, %c0_i32_7 : i32
    scf.if %9 {
      %cst_22 = arith.constant 0.000000e+00 : f32
      %27 = vector.broadcast %cst_22 : f32 to vector<16x1xf32>
      %c0_23 = arith.constant 0 : index
      %c0_24 = arith.constant 0 : index
      %c0_25 = arith.constant 0 : index
      %28 = vector.load %arg5[%c0_23, %c0_24, %c0_25] : memref<1x16x1xf32, #tpu.memory_space<vmem>>, vector<1x16x1xf32>
      %29 = vector.shape_cast %28 : vector<1x16x1xf32> to vector<16x1xf32>
      %30 = vector.shape_cast %27 : vector<16x1xf32> to vector<1x16x1xf32>
      tpu.vector_store %arg5[%c0_23, %c0_24, %c0_25], %30 {strides = array<i32>} : memref<1x16x1xf32, #tpu.memory_space<vmem>>, vector<1x16x1xf32>,
      %cst_26 = arith.constant 0.000000e+00 : f32
      %31 = vector.broadcast %cst_26 : f32 to vector<16x1xf32>
      %c0_27 = arith.constant 0 : index
      %c0_28 = arith.constant 0 : index
      %c0_29 = arith.constant 0 : index
      %32 = vector.load %arg6[%c0_27, %c0_28, %c0_29] : memref<1x16x1xf32, #tpu.memory_space<vmem>>, vector<1x16x1xf32>
      %33 = vector.shape_cast %32 : vector<1x16x1xf32> to vector<16x1xf32>
      %34 = vector.shape_cast %31 : vector<16x1xf32> to vector<1x16x1xf32>
      tpu.vector_store %arg6[%c0_27, %c0_28, %c0_29], %34 {strides = array<i32>} : memref<1x16x1xf32, #tpu.memory_space<vmem>>, vector<1x16x1xf32>,
    } else {
    }
    %c0_8 = arith.constant 0 : index
    %c0_9 = arith.constant 0 : index
    %c0_10 = arith.constant 0 : index
    %10 = vector.load %arg5[%c0_8, %c0_9, %c0_10] : memref<1x16x1xf32, #tpu.memory_space<vmem>>, vector<1x16x1xf32>
    %11 = vector.shape_cast %10 : vector<1x16x1xf32> to vector<16x1xf32>
    %cst_11 = arith.constant dense<0.000000e+00> : vector<16xf32>
    %12 = vector.multi_reduction <add>, %3, %cst_11 [1] : vector<16x256xf32> to vector<16xf32>
    %13 = vector.shape_cast %12 : vector<16xf32> to vector<16x1xf32>
    %14 = arith.addf %11, %13 : vector<16x1xf32>
    %c0_12 = arith.constant 0 : index
    %c0_13 = arith.constant 0 : index
    %c0_14 = arith.constant 0 : index
    %15 = vector.load %arg5[%c0_12, %c0_13, %c0_14] : memref<1x16x1xf32, #tpu.memory_space<vmem>>, vector<1x16x1xf32>
    %16 = vector.shape_cast %15 : vector<1x16x1xf32> to vector<16x1xf32>
    %17 = vector.shape_cast %14 : vector<16x1xf32> to vector<1x16x1xf32>
    tpu.vector_store %arg5[%c0_12, %c0_13, %c0_14], %17 {strides = array<i32>} : memref<1x16x1xf32, #tpu.memory_space<vmem>>, vector<1x16x1xf32>,
    %c0_15 = arith.constant 0 : index
    %c0_16 = arith.constant 0 : index
    %c0_17 = arith.constant 0 : index
    %18 = vector.load %arg6[%c0_15, %c0_16, %c0_17] : memref<1x16x1xf32, #tpu.memory_space<vmem>>, vector<1x16x1xf32>
    %19 = vector.shape_cast %18 : vector<1x16x1xf32> to vector<16x1xf32>
    %20 = arith.mulf %3, %3 : vector<16x256xf32>
    %cst_18 = arith.constant dense<0.000000e+00> : vector<16xf32>
    %21 = vector.multi_reduction <add>, %20, %cst_18 [1] : vector<16x256xf32> to vector<16xf32>
    %22 = vector.shape_cast %21 : vector<16xf32> to vector<16x1xf32>
    %23 = arith.addf %19, %22 : vector<16x1xf32>
    %c0_19 = arith.constant 0 : index
    %c0_20 = arith.constant 0 : index
    %c0_21 = arith.constant 0 : index
    %24 = vector.load %arg6[%c0_19, %c0_20, %c0_21] : memref<1x16x1xf32, #tpu.memory_space<vmem>>, vector<1x16x1xf32>
    %25 = vector.shape_cast %24 : vector<1x16x1xf32> to vector<16x1xf32>
    %26 = vector.shape_cast %23 : vector<16x1xf32> to vector<1x16x1xf32>
    tpu.vector_store %arg6[%c0_19, %c0_20, %c0_21], %26 {strides = array<i32>} : memref<1x16x1xf32, #tpu.memory_space<vmem>>, vector<1x16x1xf32>,
    return
  }
  func.func @transform_0(%arg0: i32, %arg1: i32) -> (i32, i32) {
    %c0_i32 = arith.constant 0 : i32
    %c0_i32_0 = arith.constant 0 : i32
    %c0_i32_1 = arith.constant 0 : i32
    return %c0_i32, %c0_i32_0 : i32, i32
  }
  func.func @transform_1(%arg0: i32, %arg1: i32) -> (i32, i32, i32) {
    %c0_i32 = arith.constant 0 : i32
    %c0_i32_0 = arith.constant 0 : i32
    return %arg0, %c0_i32, %arg1 : i32, i32, i32
  }
  func.func @transform_2(%arg0: i32, %arg1: i32) -> (i32, i32, i32) {
    %c0_i32 = arith.constant 0 : i32
    %c0_i32_0 = arith.constant 0 : i32
    return %arg0, %c0_i32, %arg1 : i32, i32, i32
  }
  func.func @transform_3(%arg0: i32, %arg1: i32) -> (i32, i32, i32) {
    %c0_i32 = arith.constant 0 : i32
    %c0_i32_0 = arith.constant 0 : i32
    %c0_i32_1 = arith.constant 0 : i32
    return %arg0, %c0_i32, %c0_i32_0 : i32, i32, i32
  }
  func.func @transform_4(%arg0: i32, %arg1: i32) -> (i32, i32, i32) {
    %c0_i32 = arith.constant 0 : i32
    %c0_i32_0 = arith.constant 0 : i32
    %c0_i32_1 = arith.constant 0 : i32
    return %arg0, %c0_i32, %c0_i32_0 : i32, i32, i32
  }
}

module attributes {stable_mosaic.version = 11 : i64} {
  func.func @_in_prelu_kernel(%arg0: i32, %arg1: i32, %arg2: memref<1x16x256xf32, #tpu.memory_space<vmem>>, %arg3: memref<1x16x1xf32, #tpu.memory_space<vmem>>, %arg4: memref<1x16x1xf32, #tpu.memory_space<vmem>>, %arg5: memref<1xf32, #tpu.memory_space<smem>>, %arg6: memref<1x16x256xf32, #tpu.memory_space<vmem>>) attributes {dimension_semantics = [#tpu.dimension_semantics<parallel>, #tpu.dimension_semantics<parallel>], iteration_bounds = array<i64: 2, 1>, scalar_prefetch = 0 : i64, scratch_operands = 0 : i64, tpu.core_type = #tpu.core_type<tc>, window_params = [{transform_indices = @transform_0, window_bounds = array<i64: 1, 16, 256>}, {transform_indices = @transform_1, window_bounds = array<i64: 1, 16, 1>}, {transform_indices = @transform_2, window_bounds = array<i64: 1, 16, 1>}, {transform_indices = @transform_3, window_bounds = array<i64: 1>}, {transform_indices = @transform_4, window_bounds = array<i64: 1, 16, 256>}]} {
    %c0 = arith.constant 0 : index
    %c0_0 = arith.constant 0 : index
    %c0_1 = arith.constant 0 : index
    %0 = vector.load %arg2[%c0, %c0_0, %c0_1] : memref<1x16x256xf32, #tpu.memory_space<vmem>>, vector<1x16x256xf32>
    %1 = vector.shape_cast %0 : vector<1x16x256xf32> to vector<16x256xf32>
    %c0_2 = arith.constant 0 : index
    %c0_3 = arith.constant 0 : index
    %c0_4 = arith.constant 0 : index
    %2 = vector.load %arg3[%c0_2, %c0_3, %c0_4] : memref<1x16x1xf32, #tpu.memory_space<vmem>>, vector<1x16x1xf32>
    %3 = vector.shape_cast %2 : vector<1x16x1xf32> to vector<16x1xf32>
    %cst = arith.constant 0.00462962966 : f32
    %4 = vector.broadcast %cst : f32 to vector<16x1xf32>
    %5 = arith.mulf %3, %4 : vector<16x1xf32>
    %c0_5 = arith.constant 0 : index
    %c0_6 = arith.constant 0 : index
    %c0_7 = arith.constant 0 : index
    %6 = vector.load %arg4[%c0_5, %c0_6, %c0_7] : memref<1x16x1xf32, #tpu.memory_space<vmem>>, vector<1x16x1xf32>
    %7 = vector.shape_cast %6 : vector<1x16x1xf32> to vector<16x1xf32>
    %cst_8 = arith.constant 0.00462962966 : f32
    %8 = vector.broadcast %cst_8 : f32 to vector<16x1xf32>
    %9 = arith.mulf %7, %8 : vector<16x1xf32>
    %10 = arith.mulf %5, %5 : vector<16x1xf32>
    %11 = arith.subf %9, %10 : vector<16x1xf32>
    %cst_9 = arith.constant 0.000000e+00 : f32
    %12 = vector.broadcast %cst_9 : f32 to vector<16x1xf32>
    %13 = arith.maximumf %11, %12 : vector<16x1xf32>
    %14 = vector.broadcast %5 : vector<16x1xf32> to vector<16x256xf32>
    %15 = arith.subf %1, %14 : vector<16x256xf32>
    %cst_10 = arith.constant 9.99999974E-6 : f32
    %16 = vector.broadcast %cst_10 : f32 to vector<16x1xf32>
    %17 = arith.addf %13, %16 : vector<16x1xf32>
    %18 = math.rsqrt %17 : vector<16x1xf32>
    %19 = vector.broadcast %18 : vector<16x1xf32> to vector<16x256xf32>
    %20 = arith.mulf %15, %19 : vector<16x256xf32>
    %c0_11 = arith.constant 0 : index
    %21 = memref.load %arg5[%c0_11] : memref<1xf32, #tpu.memory_space<smem>>
    %cst_12 = arith.constant 0.000000e+00 : f32
    %22 = vector.broadcast %cst_12 : f32 to vector<16x256xf32>
    %23 = arith.cmpf oge, %20, %22 : vector<16x256xf32>
    %24 = vector.broadcast %21 : f32 to vector<16x256xf32>
    %25 = arith.mulf %24, %20 : vector<16x256xf32>
    %26 = arith.select %23, %20, %25 : vector<16x256xi1>, vector<16x256xf32>
    %c0_13 = arith.constant 0 : index
    %c0_14 = arith.constant 0 : index
    %c0_15 = arith.constant 0 : index
    %27 = vector.load %arg6[%c0_13, %c0_14, %c0_15] : memref<1x16x256xf32, #tpu.memory_space<vmem>>, vector<1x16x256xf32>
    %28 = vector.shape_cast %27 : vector<1x16x256xf32> to vector<16x256xf32>
    %29 = vector.shape_cast %26 : vector<16x256xf32> to vector<1x16x256xf32>
    tpu.vector_store %arg6[%c0_13, %c0_14, %c0_15], %29 {strides = array<i32>} : memref<1x16x256xf32, #tpu.memory_space<vmem>>, vector<1x16x256xf32>,
    return
  }
  func.func @transform_0(%arg0: i32, %arg1: i32) -> (i32, i32, i32) {
    %c0_i32 = arith.constant 0 : i32
    %c0_i32_0 = arith.constant 0 : i32
    return %arg0, %c0_i32, %arg1 : i32, i32, i32
  }
  func.func @transform_1(%arg0: i32, %arg1: i32) -> (i32, i32, i32) {
    %c0_i32 = arith.constant 0 : i32
    %c0_i32_0 = arith.constant 0 : i32
    %c0_i32_1 = arith.constant 0 : i32
    return %arg0, %c0_i32, %c0_i32_0 : i32, i32, i32
  }
  func.func @transform_2(%arg0: i32, %arg1: i32) -> (i32, i32, i32) {
    %c0_i32 = arith.constant 0 : i32
    %c0_i32_0 = arith.constant 0 : i32
    %c0_i32_1 = arith.constant 0 : i32
    return %arg0, %c0_i32, %c0_i32_0 : i32, i32, i32
  }
  func.func @transform_3(%arg0: i32, %arg1: i32) -> i32 {
    %c0_i32 = arith.constant 0 : i32
    %c0_i32_0 = arith.constant 0 : i32
    return %c0_i32 : i32
  }
  func.func @transform_4(%arg0: i32, %arg1: i32) -> (i32, i32, i32) {
    %c0_i32 = arith.constant 0 : i32
    %c0_i32_0 = arith.constant 0 : i32
    return %arg0, %c0_i32, %arg1 : i32, i32, i32
  }
}

module attributes {stable_mosaic.version = 11 : i64} {
  func.func @_conv_stats_kernel(%arg0: i32, %arg1: i32, %arg2: memref<32x432xbf16, #tpu.memory_space<vmem>>, %arg3: memref<1x432x256xbf16, #tpu.memory_space<vmem>>, %arg4: memref<1x32x256xf32, #tpu.memory_space<vmem>>, %arg5: memref<1x32x1xf32, #tpu.memory_space<vmem>>, %arg6: memref<1x32x1xf32, #tpu.memory_space<vmem>>) attributes {dimension_semantics = [#tpu.dimension_semantics<parallel>, #tpu.dimension_semantics<arbitrary>], iteration_bounds = array<i64: 2, 1>, scalar_prefetch = 0 : i64, scratch_operands = 0 : i64, tpu.core_type = #tpu.core_type<tc>, window_params = [{pipeline_mode = #tpu.pipeline_mode<synchronous>, transform_indices = @transform_0, window_bounds = array<i64: 32, 432>}, {transform_indices = @transform_1, window_bounds = array<i64: 1, 432, 256>}, {transform_indices = @transform_2, window_bounds = array<i64: 1, 32, 256>}, {transform_indices = @transform_3, window_bounds = array<i64: 1, 32, 1>}, {transform_indices = @transform_4, window_bounds = array<i64: 1, 32, 1>}]} {
    %c0 = arith.constant 0 : index
    %c0_0 = arith.constant 0 : index
    %0 = vector.load %arg2[%c0, %c0_0] : memref<32x432xbf16, #tpu.memory_space<vmem>>, vector<32x432xbf16>
    %c0_1 = arith.constant 0 : index
    %c0_2 = arith.constant 0 : index
    %c0_3 = arith.constant 0 : index
    %1 = vector.load %arg3[%c0_1, %c0_2, %c0_3] : memref<1x432x256xbf16, #tpu.memory_space<vmem>>, vector<1x432x256xbf16>
    %2 = vector.shape_cast %1 : vector<1x432x256xbf16> to vector<432x256xbf16>
    %cst = arith.constant dense<0.000000e+00> : vector<32x256xf32>
    %3 = tpu.matmul %0, %2, %cst {dimension_numbers = #tpu.dot_dimension_numbers<[1], [0], [0], [1], [0, 0, 1, 1], [], []>} : vector<32x432xbf16>, vector<432x256xbf16>, vector<32x256xf32> -> vector<32x256xf32>
    %c0_4 = arith.constant 0 : index
    %c0_5 = arith.constant 0 : index
    %c0_6 = arith.constant 0 : index
    %4 = vector.load %arg4[%c0_4, %c0_5, %c0_6] : memref<1x32x256xf32, #tpu.memory_space<vmem>>, vector<1x32x256xf32>
    %5 = vector.shape_cast %4 : vector<1x32x256xf32> to vector<32x256xf32>
    %6 = vector.shape_cast %3 : vector<32x256xf32> to vector<1x32x256xf32>
    tpu.vector_store %arg4[%c0_4, %c0_5, %c0_6], %6 {strides = array<i32>} : memref<1x32x256xf32, #tpu.memory_space<vmem>>, vector<1x32x256xf32>,
    %c0_i32 = arith.constant 0 : i32
    %7 = arith.cmpi eq, %arg1, %c0_i32 : i32
    %8 = arith.extui %7 : i1 to i32
    %c0_i32_7 = arith.constant 0 : i32
    %9 = arith.cmpi ne, %8, %c0_i32_7 : i32
    scf.if %9 {
      %cst_22 = arith.constant 0.000000e+00 : f32
      %27 = vector.broadcast %cst_22 : f32 to vector<32x1xf32>
      %c0_23 = arith.constant 0 : index
      %c0_24 = arith.constant 0 : index
      %c0_25 = arith.constant 0 : index
      %28 = vector.load %arg5[%c0_23, %c0_24, %c0_25] : memref<1x32x1xf32, #tpu.memory_space<vmem>>, vector<1x32x1xf32>
      %29 = vector.shape_cast %28 : vector<1x32x1xf32> to vector<32x1xf32>
      %30 = vector.shape_cast %27 : vector<32x1xf32> to vector<1x32x1xf32>
      tpu.vector_store %arg5[%c0_23, %c0_24, %c0_25], %30 {strides = array<i32>} : memref<1x32x1xf32, #tpu.memory_space<vmem>>, vector<1x32x1xf32>,
      %cst_26 = arith.constant 0.000000e+00 : f32
      %31 = vector.broadcast %cst_26 : f32 to vector<32x1xf32>
      %c0_27 = arith.constant 0 : index
      %c0_28 = arith.constant 0 : index
      %c0_29 = arith.constant 0 : index
      %32 = vector.load %arg6[%c0_27, %c0_28, %c0_29] : memref<1x32x1xf32, #tpu.memory_space<vmem>>, vector<1x32x1xf32>
      %33 = vector.shape_cast %32 : vector<1x32x1xf32> to vector<32x1xf32>
      %34 = vector.shape_cast %31 : vector<32x1xf32> to vector<1x32x1xf32>
      tpu.vector_store %arg6[%c0_27, %c0_28, %c0_29], %34 {strides = array<i32>} : memref<1x32x1xf32, #tpu.memory_space<vmem>>, vector<1x32x1xf32>,
    } else {
    }
    %c0_8 = arith.constant 0 : index
    %c0_9 = arith.constant 0 : index
    %c0_10 = arith.constant 0 : index
    %10 = vector.load %arg5[%c0_8, %c0_9, %c0_10] : memref<1x32x1xf32, #tpu.memory_space<vmem>>, vector<1x32x1xf32>
    %11 = vector.shape_cast %10 : vector<1x32x1xf32> to vector<32x1xf32>
    %cst_11 = arith.constant dense<0.000000e+00> : vector<32xf32>
    %12 = vector.multi_reduction <add>, %3, %cst_11 [1] : vector<32x256xf32> to vector<32xf32>
    %13 = vector.shape_cast %12 : vector<32xf32> to vector<32x1xf32>
    %14 = arith.addf %11, %13 : vector<32x1xf32>
    %c0_12 = arith.constant 0 : index
    %c0_13 = arith.constant 0 : index
    %c0_14 = arith.constant 0 : index
    %15 = vector.load %arg5[%c0_12, %c0_13, %c0_14] : memref<1x32x1xf32, #tpu.memory_space<vmem>>, vector<1x32x1xf32>
    %16 = vector.shape_cast %15 : vector<1x32x1xf32> to vector<32x1xf32>
    %17 = vector.shape_cast %14 : vector<32x1xf32> to vector<1x32x1xf32>
    tpu.vector_store %arg5[%c0_12, %c0_13, %c0_14], %17 {strides = array<i32>} : memref<1x32x1xf32, #tpu.memory_space<vmem>>, vector<1x32x1xf32>,
    %c0_15 = arith.constant 0 : index
    %c0_16 = arith.constant 0 : index
    %c0_17 = arith.constant 0 : index
    %18 = vector.load %arg6[%c0_15, %c0_16, %c0_17] : memref<1x32x1xf32, #tpu.memory_space<vmem>>, vector<1x32x1xf32>
    %19 = vector.shape_cast %18 : vector<1x32x1xf32> to vector<32x1xf32>
    %20 = arith.mulf %3, %3 : vector<32x256xf32>
    %cst_18 = arith.constant dense<0.000000e+00> : vector<32xf32>
    %21 = vector.multi_reduction <add>, %20, %cst_18 [1] : vector<32x256xf32> to vector<32xf32>
    %22 = vector.shape_cast %21 : vector<32xf32> to vector<32x1xf32>
    %23 = arith.addf %19, %22 : vector<32x1xf32>
    %c0_19 = arith.constant 0 : index
    %c0_20 = arith.constant 0 : index
    %c0_21 = arith.constant 0 : index
    %24 = vector.load %arg6[%c0_19, %c0_20, %c0_21] : memref<1x32x1xf32, #tpu.memory_space<vmem>>, vector<1x32x1xf32>
    %25 = vector.shape_cast %24 : vector<1x32x1xf32> to vector<32x1xf32>
    %26 = vector.shape_cast %23 : vector<32x1xf32> to vector<1x32x1xf32>
    tpu.vector_store %arg6[%c0_19, %c0_20, %c0_21], %26 {strides = array<i32>} : memref<1x32x1xf32, #tpu.memory_space<vmem>>, vector<1x32x1xf32>,
    return
  }
  func.func @transform_0(%arg0: i32, %arg1: i32) -> (i32, i32) {
    %c0_i32 = arith.constant 0 : i32
    %c0_i32_0 = arith.constant 0 : i32
    %c0_i32_1 = arith.constant 0 : i32
    return %c0_i32, %c0_i32_0 : i32, i32
  }
  func.func @transform_1(%arg0: i32, %arg1: i32) -> (i32, i32, i32) {
    %c0_i32 = arith.constant 0 : i32
    %c0_i32_0 = arith.constant 0 : i32
    return %arg0, %c0_i32, %arg1 : i32, i32, i32
  }
  func.func @transform_2(%arg0: i32, %arg1: i32) -> (i32, i32, i32) {
    %c0_i32 = arith.constant 0 : i32
    %c0_i32_0 = arith.constant 0 : i32
    return %arg0, %c0_i32, %arg1 : i32, i32, i32
  }
  func.func @transform_3(%arg0: i32, %arg1: i32) -> (i32, i32, i32) {
    %c0_i32 = arith.constant 0 : i32
    %c0_i32_0 = arith.constant 0 : i32
    %c0_i32_1 = arith.constant 0 : i32
    return %arg0, %c0_i32, %c0_i32_0 : i32, i32, i32
  }
  func.func @transform_4(%arg0: i32, %arg1: i32) -> (i32, i32, i32) {
    %c0_i32 = arith.constant 0 : i32
    %c0_i32_0 = arith.constant 0 : i32
    %c0_i32_1 = arith.constant 0 : i32
    return %arg0, %c0_i32, %c0_i32_0 : i32, i32, i32
  }
}

module attributes {stable_mosaic.version = 11 : i64} {
  func.func @_in_prelu_kernel(%arg0: i32, %arg1: i32, %arg2: memref<1x32x256xf32, #tpu.memory_space<vmem>>, %arg3: memref<1x32x1xf32, #tpu.memory_space<vmem>>, %arg4: memref<1x32x1xf32, #tpu.memory_space<vmem>>, %arg5: memref<1xf32, #tpu.memory_space<smem>>, %arg6: memref<1x32x256xf32, #tpu.memory_space<vmem>>) attributes {dimension_semantics = [#tpu.dimension_semantics<parallel>, #tpu.dimension_semantics<parallel>], iteration_bounds = array<i64: 2, 1>, scalar_prefetch = 0 : i64, scratch_operands = 0 : i64, tpu.core_type = #tpu.core_type<tc>, window_params = [{transform_indices = @transform_0, window_bounds = array<i64: 1, 32, 256>}, {transform_indices = @transform_1, window_bounds = array<i64: 1, 32, 1>}, {transform_indices = @transform_2, window_bounds = array<i64: 1, 32, 1>}, {transform_indices = @transform_3, window_bounds = array<i64: 1>}, {transform_indices = @transform_4, window_bounds = array<i64: 1, 32, 256>}]} {
    %c0 = arith.constant 0 : index
    %c0_0 = arith.constant 0 : index
    %c0_1 = arith.constant 0 : index
    %0 = vector.load %arg2[%c0, %c0_0, %c0_1] : memref<1x32x256xf32, #tpu.memory_space<vmem>>, vector<1x32x256xf32>
    %1 = vector.shape_cast %0 : vector<1x32x256xf32> to vector<32x256xf32>
    %c0_2 = arith.constant 0 : index
    %c0_3 = arith.constant 0 : index
    %c0_4 = arith.constant 0 : index
    %2 = vector.load %arg3[%c0_2, %c0_3, %c0_4] : memref<1x32x1xf32, #tpu.memory_space<vmem>>, vector<1x32x1xf32>
    %3 = vector.shape_cast %2 : vector<1x32x1xf32> to vector<32x1xf32>
    %cst = arith.constant 0.00462962966 : f32
    %4 = vector.broadcast %cst : f32 to vector<32x1xf32>
    %5 = arith.mulf %3, %4 : vector<32x1xf32>
    %c0_5 = arith.constant 0 : index
    %c0_6 = arith.constant 0 : index
    %c0_7 = arith.constant 0 : index
    %6 = vector.load %arg4[%c0_5, %c0_6, %c0_7] : memref<1x32x1xf32, #tpu.memory_space<vmem>>, vector<1x32x1xf32>
    %7 = vector.shape_cast %6 : vector<1x32x1xf32> to vector<32x1xf32>
    %cst_8 = arith.constant 0.00462962966 : f32
    %8 = vector.broadcast %cst_8 : f32 to vector<32x1xf32>
    %9 = arith.mulf %7, %8 : vector<32x1xf32>
    %10 = arith.mulf %5, %5 : vector<32x1xf32>
    %11 = arith.subf %9, %10 : vector<32x1xf32>
    %cst_9 = arith.constant 0.000000e+00 : f32
    %12 = vector.broadcast %cst_9 : f32 to vector<32x1xf32>
    %13 = arith.maximumf %11, %12 : vector<32x1xf32>
    %14 = vector.broadcast %5 : vector<32x1xf32> to vector<32x256xf32>
    %15 = arith.subf %1, %14 : vector<32x256xf32>
    %cst_10 = arith.constant 9.99999974E-6 : f32
    %16 = vector.broadcast %cst_10 : f32 to vector<32x1xf32>
    %17 = arith.addf %13, %16 : vector<32x1xf32>
    %18 = math.rsqrt %17 : vector<32x1xf32>
    %19 = vector.broadcast %18 : vector<32x1xf32> to vector<32x256xf32>
    %20 = arith.mulf %15, %19 : vector<32x256xf32>
    %c0_11 = arith.constant 0 : index
    %21 = memref.load %arg5[%c0_11] : memref<1xf32, #tpu.memory_space<smem>>
    %cst_12 = arith.constant 0.000000e+00 : f32
    %22 = vector.broadcast %cst_12 : f32 to vector<32x256xf32>
    %23 = arith.cmpf oge, %20, %22 : vector<32x256xf32>
    %24 = vector.broadcast %21 : f32 to vector<32x256xf32>
    %25 = arith.mulf %24, %20 : vector<32x256xf32>
    %26 = arith.select %23, %20, %25 : vector<32x256xi1>, vector<32x256xf32>
    %c0_13 = arith.constant 0 : index
    %c0_14 = arith.constant 0 : index
    %c0_15 = arith.constant 0 : index
    %27 = vector.load %arg6[%c0_13, %c0_14, %c0_15] : memref<1x32x256xf32, #tpu.memory_space<vmem>>, vector<1x32x256xf32>
    %28 = vector.shape_cast %27 : vector<1x32x256xf32> to vector<32x256xf32>
    %29 = vector.shape_cast %26 : vector<32x256xf32> to vector<1x32x256xf32>
    tpu.vector_store %arg6[%c0_13, %c0_14, %c0_15], %29 {strides = array<i32>} : memref<1x32x256xf32, #tpu.memory_space<vmem>>, vector<1x32x256xf32>,
    return
  }
  func.func @transform_0(%arg0: i32, %arg1: i32) -> (i32, i32, i32) {
    %c0_i32 = arith.constant 0 : i32
    %c0_i32_0 = arith.constant 0 : i32
    return %arg0, %c0_i32, %arg1 : i32, i32, i32
  }
  func.func @transform_1(%arg0: i32, %arg1: i32) -> (i32, i32, i32) {
    %c0_i32 = arith.constant 0 : i32
    %c0_i32_0 = arith.constant 0 : i32
    %c0_i32_1 = arith.constant 0 : i32
    return %arg0, %c0_i32, %c0_i32_0 : i32, i32, i32
  }
  func.func @transform_2(%arg0: i32, %arg1: i32) -> (i32, i32, i32) {
    %c0_i32 = arith.constant 0 : i32
    %c0_i32_0 = arith.constant 0 : i32
    %c0_i32_1 = arith.constant 0 : i32
    return %arg0, %c0_i32, %c0_i32_0 : i32, i32, i32
  }
  func.func @transform_3(%arg0: i32, %arg1: i32) -> i32 {
    %c0_i32 = arith.constant 0 : i32
    %c0_i32_0 = arith.constant 0 : i32
    return %c0_i32 : i32
  }
  func.func @transform_4(%arg0: i32, %arg1: i32) -> (i32, i32, i32) {
    %c0_i32 = arith.constant 0 : i32
    %c0_i32_0 = arith.constant 0 : i32
    return %arg0, %c0_i32, %arg1 : i32, i32, i32
  }
}

module attributes {stable_mosaic.version = 11 : i64} {
  func.func @_conv_stats_kernel(%arg0: i32, %arg1: i32, %arg2: memref<8x48xbf16, #tpu.memory_space<vmem>>, %arg3: memref<1x48x256xbf16, #tpu.memory_space<vmem>>, %arg4: memref<1x8x256xf32, #tpu.memory_space<vmem>>, %arg5: memref<1x8x1xf32, #tpu.memory_space<vmem>>, %arg6: memref<1x8x1xf32, #tpu.memory_space<vmem>>) attributes {dimension_semantics = [#tpu.dimension_semantics<parallel>, #tpu.dimension_semantics<arbitrary>], iteration_bounds = array<i64: 2, 1>, scalar_prefetch = 0 : i64, scratch_operands = 0 : i64, tpu.core_type = #tpu.core_type<tc>, window_params = [{pipeline_mode = #tpu.pipeline_mode<synchronous>, transform_indices = @transform_0, window_bounds = array<i64: 8, 48>}, {transform_indices = @transform_1, window_bounds = array<i64: 1, 48, 256>}, {transform_indices = @transform_2, window_bounds = array<i64: 1, 8, 256>}, {transform_indices = @transform_3, window_bounds = array<i64: 1, 8, 1>}, {transform_indices = @transform_4, window_bounds = array<i64: 1, 8, 1>}]} {
    %c0 = arith.constant 0 : index
    %c0_0 = arith.constant 0 : index
    %0 = vector.load %arg2[%c0, %c0_0] : memref<8x48xbf16, #tpu.memory_space<vmem>>, vector<8x48xbf16>
    %c0_1 = arith.constant 0 : index
    %c0_2 = arith.constant 0 : index
    %c0_3 = arith.constant 0 : index
    %1 = vector.load %arg3[%c0_1, %c0_2, %c0_3] : memref<1x48x256xbf16, #tpu.memory_space<vmem>>, vector<1x48x256xbf16>
    %2 = vector.shape_cast %1 : vector<1x48x256xbf16> to vector<48x256xbf16>
    %cst = arith.constant dense<0.000000e+00> : vector<8x256xf32>
    %3 = tpu.matmul %0, %2, %cst {dimension_numbers = #tpu.dot_dimension_numbers<[1], [0], [0], [1], [0, 0, 1, 1], [], []>} : vector<8x48xbf16>, vector<48x256xbf16>, vector<8x256xf32> -> vector<8x256xf32>
    %c0_4 = arith.constant 0 : index
    %c0_5 = arith.constant 0 : index
    %c0_6 = arith.constant 0 : index
    %4 = vector.load %arg4[%c0_4, %c0_5, %c0_6] : memref<1x8x256xf32, #tpu.memory_space<vmem>>, vector<1x8x256xf32>
    %5 = vector.shape_cast %4 : vector<1x8x256xf32> to vector<8x256xf32>
    %6 = vector.shape_cast %3 : vector<8x256xf32> to vector<1x8x256xf32>
    tpu.vector_store %arg4[%c0_4, %c0_5, %c0_6], %6 {strides = array<i32>} : memref<1x8x256xf32, #tpu.memory_space<vmem>>, vector<1x8x256xf32>,
    %c0_i32 = arith.constant 0 : i32
    %7 = arith.cmpi eq, %arg1, %c0_i32 : i32
    %8 = arith.extui %7 : i1 to i32
    %c0_i32_7 = arith.constant 0 : i32
    %9 = arith.cmpi ne, %8, %c0_i32_7 : i32
    scf.if %9 {
      %cst_22 = arith.constant 0.000000e+00 : f32
      %27 = vector.broadcast %cst_22 : f32 to vector<8x1xf32>
      %c0_23 = arith.constant 0 : index
      %c0_24 = arith.constant 0 : index
      %c0_25 = arith.constant 0 : index
      %28 = vector.load %arg5[%c0_23, %c0_24, %c0_25] : memref<1x8x1xf32, #tpu.memory_space<vmem>>, vector<1x8x1xf32>
      %29 = vector.shape_cast %28 : vector<1x8x1xf32> to vector<8x1xf32>
      %30 = vector.shape_cast %27 : vector<8x1xf32> to vector<1x8x1xf32>
      tpu.vector_store %arg5[%c0_23, %c0_24, %c0_25], %30 {strides = array<i32>} : memref<1x8x1xf32, #tpu.memory_space<vmem>>, vector<1x8x1xf32>,
      %cst_26 = arith.constant 0.000000e+00 : f32
      %31 = vector.broadcast %cst_26 : f32 to vector<8x1xf32>
      %c0_27 = arith.constant 0 : index
      %c0_28 = arith.constant 0 : index
      %c0_29 = arith.constant 0 : index
      %32 = vector.load %arg6[%c0_27, %c0_28, %c0_29] : memref<1x8x1xf32, #tpu.memory_space<vmem>>, vector<1x8x1xf32>
      %33 = vector.shape_cast %32 : vector<1x8x1xf32> to vector<8x1xf32>
      %34 = vector.shape_cast %31 : vector<8x1xf32> to vector<1x8x1xf32>
      tpu.vector_store %arg6[%c0_27, %c0_28, %c0_29], %34 {strides = array<i32>} : memref<1x8x1xf32, #tpu.memory_space<vmem>>, vector<1x8x1xf32>,
    } else {
    }
    %c0_8 = arith.constant 0 : index
    %c0_9 = arith.constant 0 : index
    %c0_10 = arith.constant 0 : index
    %10 = vector.load %arg5[%c0_8, %c0_9, %c0_10] : memref<1x8x1xf32, #tpu.memory_space<vmem>>, vector<1x8x1xf32>
    %11 = vector.shape_cast %10 : vector<1x8x1xf32> to vector<8x1xf32>
    %cst_11 = arith.constant dense<0.000000e+00> : vector<8xf32>
    %12 = vector.multi_reduction <add>, %3, %cst_11 [1] : vector<8x256xf32> to vector<8xf32>
    %13 = vector.shape_cast %12 : vector<8xf32> to vector<8x1xf32>
    %14 = arith.addf %11, %13 : vector<8x1xf32>
    %c0_12 = arith.constant 0 : index
    %c0_13 = arith.constant 0 : index
    %c0_14 = arith.constant 0 : index
    %15 = vector.load %arg5[%c0_12, %c0_13, %c0_14] : memref<1x8x1xf32, #tpu.memory_space<vmem>>, vector<1x8x1xf32>
    %16 = vector.shape_cast %15 : vector<1x8x1xf32> to vector<8x1xf32>
    %17 = vector.shape_cast %14 : vector<8x1xf32> to vector<1x8x1xf32>
    tpu.vector_store %arg5[%c0_12, %c0_13, %c0_14], %17 {strides = array<i32>} : memref<1x8x1xf32, #tpu.memory_space<vmem>>, vector<1x8x1xf32>,
    %c0_15 = arith.constant 0 : index
    %c0_16 = arith.constant 0 : index
    %c0_17 = arith.constant 0 : index
    %18 = vector.load %arg6[%c0_15, %c0_16, %c0_17] : memref<1x8x1xf32, #tpu.memory_space<vmem>>, vector<1x8x1xf32>
    %19 = vector.shape_cast %18 : vector<1x8x1xf32> to vector<8x1xf32>
    %20 = arith.mulf %3, %3 : vector<8x256xf32>
    %cst_18 = arith.constant dense<0.000000e+00> : vector<8xf32>
    %21 = vector.multi_reduction <add>, %20, %cst_18 [1] : vector<8x256xf32> to vector<8xf32>
    %22 = vector.shape_cast %21 : vector<8xf32> to vector<8x1xf32>
    %23 = arith.addf %19, %22 : vector<8x1xf32>
    %c0_19 = arith.constant 0 : index
    %c0_20 = arith.constant 0 : index
    %c0_21 = arith.constant 0 : index
    %24 = vector.load %arg6[%c0_19, %c0_20, %c0_21] : memref<1x8x1xf32, #tpu.memory_space<vmem>>, vector<1x8x1xf32>
    %25 = vector.shape_cast %24 : vector<1x8x1xf32> to vector<8x1xf32>
    %26 = vector.shape_cast %23 : vector<8x1xf32> to vector<1x8x1xf32>
    tpu.vector_store %arg6[%c0_19, %c0_20, %c0_21], %26 {strides = array<i32>} : memref<1x8x1xf32, #tpu.memory_space<vmem>>, vector<1x8x1xf32>,
    return
  }
  func.func @transform_0(%arg0: i32, %arg1: i32) -> (i32, i32) {
    %c0_i32 = arith.constant 0 : i32
    %c0_i32_0 = arith.constant 0 : i32
    %c0_i32_1 = arith.constant 0 : i32
    return %c0_i32, %c0_i32_0 : i32, i32
  }
  func.func @transform_1(%arg0: i32, %arg1: i32) -> (i32, i32, i32) {
    %c0_i32 = arith.constant 0 : i32
    %c0_i32_0 = arith.constant 0 : i32
    return %arg0, %c0_i32, %arg1 : i32, i32, i32
  }
  func.func @transform_2(%arg0: i32, %arg1: i32) -> (i32, i32, i32) {
    %c0_i32 = arith.constant 0 : i32
    %c0_i32_0 = arith.constant 0 : i32
    return %arg0, %c0_i32, %arg1 : i32, i32, i32
  }
  func.func @transform_3(%arg0: i32, %arg1: i32) -> (i32, i32, i32) {
    %c0_i32 = arith.constant 0 : i32
    %c0_i32_0 = arith.constant 0 : i32
    %c0_i32_1 = arith.constant 0 : i32
    return %arg0, %c0_i32, %c0_i32_0 : i32, i32, i32
  }
  func.func @transform_4(%arg0: i32, %arg1: i32) -> (i32, i32, i32) {
    %c0_i32 = arith.constant 0 : i32
    %c0_i32_0 = arith.constant 0 : i32
    %c0_i32_1 = arith.constant 0 : i32
    return %arg0, %c0_i32, %c0_i32_0 : i32, i32, i32
  }
}

module attributes {stable_mosaic.version = 11 : i64} {
  func.func @_conv_stats_kernel(%arg0: i32, %arg1: i32, %arg2: memref<8x384xbf16, #tpu.memory_space<vmem>>, %arg3: memref<1x384x256xbf16, #tpu.memory_space<vmem>>, %arg4: memref<1x8x256xf32, #tpu.memory_space<vmem>>, %arg5: memref<1x8x1xf32, #tpu.memory_space<vmem>>, %arg6: memref<1x8x1xf32, #tpu.memory_space<vmem>>) attributes {dimension_semantics = [#tpu.dimension_semantics<parallel>, #tpu.dimension_semantics<arbitrary>], iteration_bounds = array<i64: 2, 1>, scalar_prefetch = 0 : i64, scratch_operands = 0 : i64, tpu.core_type = #tpu.core_type<tc>, window_params = [{pipeline_mode = #tpu.pipeline_mode<synchronous>, transform_indices = @transform_0, window_bounds = array<i64: 8, 384>}, {transform_indices = @transform_1, window_bounds = array<i64: 1, 384, 256>}, {transform_indices = @transform_2, window_bounds = array<i64: 1, 8, 256>}, {transform_indices = @transform_3, window_bounds = array<i64: 1, 8, 1>}, {transform_indices = @transform_4, window_bounds = array<i64: 1, 8, 1>}]} {
    %c0 = arith.constant 0 : index
    %c0_0 = arith.constant 0 : index
    %0 = vector.load %arg2[%c0, %c0_0] : memref<8x384xbf16, #tpu.memory_space<vmem>>, vector<8x384xbf16>
    %c0_1 = arith.constant 0 : index
    %c0_2 = arith.constant 0 : index
    %c0_3 = arith.constant 0 : index
    %1 = vector.load %arg3[%c0_1, %c0_2, %c0_3] : memref<1x384x256xbf16, #tpu.memory_space<vmem>>, vector<1x384x256xbf16>
    %2 = vector.shape_cast %1 : vector<1x384x256xbf16> to vector<384x256xbf16>
    %cst = arith.constant dense<0.000000e+00> : vector<8x256xf32>
    %3 = tpu.matmul %0, %2, %cst {dimension_numbers = #tpu.dot_dimension_numbers<[1], [0], [0], [1], [0, 0, 1, 1], [], []>} : vector<8x384xbf16>, vector<384x256xbf16>, vector<8x256xf32> -> vector<8x256xf32>
    %c0_4 = arith.constant 0 : index
    %c0_5 = arith.constant 0 : index
    %c0_6 = arith.constant 0 : index
    %4 = vector.load %arg4[%c0_4, %c0_5, %c0_6] : memref<1x8x256xf32, #tpu.memory_space<vmem>>, vector<1x8x256xf32>
    %5 = vector.shape_cast %4 : vector<1x8x256xf32> to vector<8x256xf32>
    %6 = vector.shape_cast %3 : vector<8x256xf32> to vector<1x8x256xf32>
    tpu.vector_store %arg4[%c0_4, %c0_5, %c0_6], %6 {strides = array<i32>} : memref<1x8x256xf32, #tpu.memory_space<vmem>>, vector<1x8x256xf32>,
    %c0_i32 = arith.constant 0 : i32
    %7 = arith.cmpi eq, %arg1, %c0_i32 : i32
    %8 = arith.extui %7 : i1 to i32
    %c0_i32_7 = arith.constant 0 : i32
    %9 = arith.cmpi ne, %8, %c0_i32_7 : i32
    scf.if %9 {
      %cst_22 = arith.constant 0.000000e+00 : f32
      %27 = vector.broadcast %cst_22 : f32 to vector<8x1xf32>
      %c0_23 = arith.constant 0 : index
      %c0_24 = arith.constant 0 : index
      %c0_25 = arith.constant 0 : index
      %28 = vector.load %arg5[%c0_23, %c0_24, %c0_25] : memref<1x8x1xf32, #tpu.memory_space<vmem>>, vector<1x8x1xf32>
      %29 = vector.shape_cast %28 : vector<1x8x1xf32> to vector<8x1xf32>
      %30 = vector.shape_cast %27 : vector<8x1xf32> to vector<1x8x1xf32>
      tpu.vector_store %arg5[%c0_23, %c0_24, %c0_25], %30 {strides = array<i32>} : memref<1x8x1xf32, #tpu.memory_space<vmem>>, vector<1x8x1xf32>,
      %cst_26 = arith.constant 0.000000e+00 : f32
      %31 = vector.broadcast %cst_26 : f32 to vector<8x1xf32>
      %c0_27 = arith.constant 0 : index
      %c0_28 = arith.constant 0 : index
      %c0_29 = arith.constant 0 : index
      %32 = vector.load %arg6[%c0_27, %c0_28, %c0_29] : memref<1x8x1xf32, #tpu.memory_space<vmem>>, vector<1x8x1xf32>
      %33 = vector.shape_cast %32 : vector<1x8x1xf32> to vector<8x1xf32>
      %34 = vector.shape_cast %31 : vector<8x1xf32> to vector<1x8x1xf32>
      tpu.vector_store %arg6[%c0_27, %c0_28, %c0_29], %34 {strides = array<i32>} : memref<1x8x1xf32, #tpu.memory_space<vmem>>, vector<1x8x1xf32>,
    } else {
    }
    %c0_8 = arith.constant 0 : index
    %c0_9 = arith.constant 0 : index
    %c0_10 = arith.constant 0 : index
    %10 = vector.load %arg5[%c0_8, %c0_9, %c0_10] : memref<1x8x1xf32, #tpu.memory_space<vmem>>, vector<1x8x1xf32>
    %11 = vector.shape_cast %10 : vector<1x8x1xf32> to vector<8x1xf32>
    %cst_11 = arith.constant dense<0.000000e+00> : vector<8xf32>
    %12 = vector.multi_reduction <add>, %3, %cst_11 [1] : vector<8x256xf32> to vector<8xf32>
    %13 = vector.shape_cast %12 : vector<8xf32> to vector<8x1xf32>
    %14 = arith.addf %11, %13 : vector<8x1xf32>
    %c0_12 = arith.constant 0 : index
    %c0_13 = arith.constant 0 : index
    %c0_14 = arith.constant 0 : index
    %15 = vector.load %arg5[%c0_12, %c0_13, %c0_14] : memref<1x8x1xf32, #tpu.memory_space<vmem>>, vector<1x8x1xf32>
    %16 = vector.shape_cast %15 : vector<1x8x1xf32> to vector<8x1xf32>
    %17 = vector.shape_cast %14 : vector<8x1xf32> to vector<1x8x1xf32>
    tpu.vector_store %arg5[%c0_12, %c0_13, %c0_14], %17 {strides = array<i32>} : memref<1x8x1xf32, #tpu.memory_space<vmem>>, vector<1x8x1xf32>,
    %c0_15 = arith.constant 0 : index
    %c0_16 = arith.constant 0 : index
    %c0_17 = arith.constant 0 : index
    %18 = vector.load %arg6[%c0_15, %c0_16, %c0_17] : memref<1x8x1xf32, #tpu.memory_space<vmem>>, vector<1x8x1xf32>
    %19 = vector.shape_cast %18 : vector<1x8x1xf32> to vector<8x1xf32>
    %20 = arith.mulf %3, %3 : vector<8x256xf32>
    %cst_18 = arith.constant dense<0.000000e+00> : vector<8xf32>
    %21 = vector.multi_reduction <add>, %20, %cst_18 [1] : vector<8x256xf32> to vector<8xf32>
    %22 = vector.shape_cast %21 : vector<8xf32> to vector<8x1xf32>
    %23 = arith.addf %19, %22 : vector<8x1xf32>
    %c0_19 = arith.constant 0 : index
    %c0_20 = arith.constant 0 : index
    %c0_21 = arith.constant 0 : index
    %24 = vector.load %arg6[%c0_19, %c0_20, %c0_21] : memref<1x8x1xf32, #tpu.memory_space<vmem>>, vector<1x8x1xf32>
    %25 = vector.shape_cast %24 : vector<1x8x1xf32> to vector<8x1xf32>
    %26 = vector.shape_cast %23 : vector<8x1xf32> to vector<1x8x1xf32>
    tpu.vector_store %arg6[%c0_19, %c0_20, %c0_21], %26 {strides = array<i32>} : memref<1x8x1xf32, #tpu.memory_space<vmem>>, vector<1x8x1xf32>,
    return
  }
  func.func @transform_0(%arg0: i32, %arg1: i32) -> (i32, i32) {
    %c0_i32 = arith.constant 0 : i32
    %c0_i32_0 = arith.constant 0 : i32
    %c0_i32_1 = arith.constant 0 : i32
    return %c0_i32, %c0_i32_0 : i32, i32
  }
  func.func @transform_1(%arg0: i32, %arg1: i32) -> (i32, i32, i32) {
    %c0_i32 = arith.constant 0 : i32
    %c0_i32_0 = arith.constant 0 : i32
    return %arg0, %c0_i32, %arg1 : i32, i32, i32
  }
  func.func @transform_2(%arg0: i32, %arg1: i32) -> (i32, i32, i32) {
    %c0_i32 = arith.constant 0 : i32
    %c0_i32_0 = arith.constant 0 : i32
    return %arg0, %c0_i32, %arg1 : i32, i32, i32
  }
  func.func @transform_3(%arg0: i32, %arg1: i32) -> (i32, i32, i32) {
    %c0_i32 = arith.constant 0 : i32
    %c0_i32_0 = arith.constant 0 : i32
    %c0_i32_1 = arith.constant 0 : i32
    return %arg0, %c0_i32, %c0_i32_0 : i32, i32, i32
  }
  func.func @transform_4(%arg0: i32, %arg1: i32) -> (i32, i32, i32) {
    %c0_i32 = arith.constant 0 : i32
    %c0_i32_0 = arith.constant 0 : i32
    %c0_i32_1 = arith.constant 0 : i32
    return %arg0, %c0_i32, %c0_i32_0 : i32, i32, i32
  }
}

module attributes {stable_mosaic.version = 11 : i64} {
  func.func @_conv_stats_kernel(%arg0: i32, %arg1: i32, %arg2: memref<8x96xbf16, #tpu.memory_space<vmem>>, %arg3: memref<1x96x256xbf16, #tpu.memory_space<vmem>>, %arg4: memref<1x8x256xf32, #tpu.memory_space<vmem>>, %arg5: memref<1x8x1xf32, #tpu.memory_space<vmem>>, %arg6: memref<1x8x1xf32, #tpu.memory_space<vmem>>) attributes {dimension_semantics = [#tpu.dimension_semantics<parallel>, #tpu.dimension_semantics<arbitrary>], iteration_bounds = array<i64: 2, 1>, scalar_prefetch = 0 : i64, scratch_operands = 0 : i64, tpu.core_type = #tpu.core_type<tc>, window_params = [{pipeline_mode = #tpu.pipeline_mode<synchronous>, transform_indices = @transform_0, window_bounds = array<i64: 8, 96>}, {transform_indices = @transform_1, window_bounds = array<i64: 1, 96, 256>}, {transform_indices = @transform_2, window_bounds = array<i64: 1, 8, 256>}, {transform_indices = @transform_3, window_bounds = array<i64: 1, 8, 1>}, {transform_indices = @transform_4, window_bounds = array<i64: 1, 8, 1>}]} {
    %c0 = arith.constant 0 : index
    %c0_0 = arith.constant 0 : index
    %0 = vector.load %arg2[%c0, %c0_0] : memref<8x96xbf16, #tpu.memory_space<vmem>>, vector<8x96xbf16>
    %c0_1 = arith.constant 0 : index
    %c0_2 = arith.constant 0 : index
    %c0_3 = arith.constant 0 : index
    %1 = vector.load %arg3[%c0_1, %c0_2, %c0_3] : memref<1x96x256xbf16, #tpu.memory_space<vmem>>, vector<1x96x256xbf16>
    %2 = vector.shape_cast %1 : vector<1x96x256xbf16> to vector<96x256xbf16>
    %cst = arith.constant dense<0.000000e+00> : vector<8x256xf32>
    %3 = tpu.matmul %0, %2, %cst {dimension_numbers = #tpu.dot_dimension_numbers<[1], [0], [0], [1], [0, 0, 1, 1], [], []>} : vector<8x96xbf16>, vector<96x256xbf16>, vector<8x256xf32> -> vector<8x256xf32>
    %c0_4 = arith.constant 0 : index
    %c0_5 = arith.constant 0 : index
    %c0_6 = arith.constant 0 : index
    %4 = vector.load %arg4[%c0_4, %c0_5, %c0_6] : memref<1x8x256xf32, #tpu.memory_space<vmem>>, vector<1x8x256xf32>
    %5 = vector.shape_cast %4 : vector<1x8x256xf32> to vector<8x256xf32>
    %6 = vector.shape_cast %3 : vector<8x256xf32> to vector<1x8x256xf32>
    tpu.vector_store %arg4[%c0_4, %c0_5, %c0_6], %6 {strides = array<i32>} : memref<1x8x256xf32, #tpu.memory_space<vmem>>, vector<1x8x256xf32>,
    %c0_i32 = arith.constant 0 : i32
    %7 = arith.cmpi eq, %arg1, %c0_i32 : i32
    %8 = arith.extui %7 : i1 to i32
    %c0_i32_7 = arith.constant 0 : i32
    %9 = arith.cmpi ne, %8, %c0_i32_7 : i32
    scf.if %9 {
      %cst_22 = arith.constant 0.000000e+00 : f32
      %27 = vector.broadcast %cst_22 : f32 to vector<8x1xf32>
      %c0_23 = arith.constant 0 : index
      %c0_24 = arith.constant 0 : index
      %c0_25 = arith.constant 0 : index
      %28 = vector.load %arg5[%c0_23, %c0_24, %c0_25] : memref<1x8x1xf32, #tpu.memory_space<vmem>>, vector<1x8x1xf32>
      %29 = vector.shape_cast %28 : vector<1x8x1xf32> to vector<8x1xf32>
      %30 = vector.shape_cast %27 : vector<8x1xf32> to vector<1x8x1xf32>
      tpu.vector_store %arg5[%c0_23, %c0_24, %c0_25], %30 {strides = array<i32>} : memref<1x8x1xf32, #tpu.memory_space<vmem>>, vector<1x8x1xf32>,
      %cst_26 = arith.constant 0.000000e+00 : f32
      %31 = vector.broadcast %cst_26 : f32 to vector<8x1xf32>
      %c0_27 = arith.constant 0 : index
      %c0_28 = arith.constant 0 : index
      %c0_29 = arith.constant 0 : index
      %32 = vector.load %arg6[%c0_27, %c0_28, %c0_29] : memref<1x8x1xf32, #tpu.memory_space<vmem>>, vector<1x8x1xf32>
      %33 = vector.shape_cast %32 : vector<1x8x1xf32> to vector<8x1xf32>
      %34 = vector.shape_cast %31 : vector<8x1xf32> to vector<1x8x1xf32>
      tpu.vector_store %arg6[%c0_27, %c0_28, %c0_29], %34 {strides = array<i32>} : memref<1x8x1xf32, #tpu.memory_space<vmem>>, vector<1x8x1xf32>,
    } else {
    }
    %c0_8 = arith.constant 0 : index
    %c0_9 = arith.constant 0 : index
    %c0_10 = arith.constant 0 : index
    %10 = vector.load %arg5[%c0_8, %c0_9, %c0_10] : memref<1x8x1xf32, #tpu.memory_space<vmem>>, vector<1x8x1xf32>
    %11 = vector.shape_cast %10 : vector<1x8x1xf32> to vector<8x1xf32>
    %cst_11 = arith.constant dense<0.000000e+00> : vector<8xf32>
    %12 = vector.multi_reduction <add>, %3, %cst_11 [1] : vector<8x256xf32> to vector<8xf32>
    %13 = vector.shape_cast %12 : vector<8xf32> to vector<8x1xf32>
    %14 = arith.addf %11, %13 : vector<8x1xf32>
    %c0_12 = arith.constant 0 : index
    %c0_13 = arith.constant 0 : index
    %c0_14 = arith.constant 0 : index
    %15 = vector.load %arg5[%c0_12, %c0_13, %c0_14] : memref<1x8x1xf32, #tpu.memory_space<vmem>>, vector<1x8x1xf32>
    %16 = vector.shape_cast %15 : vector<1x8x1xf32> to vector<8x1xf32>
    %17 = vector.shape_cast %14 : vector<8x1xf32> to vector<1x8x1xf32>
    tpu.vector_store %arg5[%c0_12, %c0_13, %c0_14], %17 {strides = array<i32>} : memref<1x8x1xf32, #tpu.memory_space<vmem>>, vector<1x8x1xf32>,
    %c0_15 = arith.constant 0 : index
    %c0_16 = arith.constant 0 : index
    %c0_17 = arith.constant 0 : index
    %18 = vector.load %arg6[%c0_15, %c0_16, %c0_17] : memref<1x8x1xf32, #tpu.memory_space<vmem>>, vector<1x8x1xf32>
    %19 = vector.shape_cast %18 : vector<1x8x1xf32> to vector<8x1xf32>
    %20 = arith.mulf %3, %3 : vector<8x256xf32>
    %cst_18 = arith.constant dense<0.000000e+00> : vector<8xf32>
    %21 = vector.multi_reduction <add>, %20, %cst_18 [1] : vector<8x256xf32> to vector<8xf32>
    %22 = vector.shape_cast %21 : vector<8xf32> to vector<8x1xf32>
    %23 = arith.addf %19, %22 : vector<8x1xf32>
    %c0_19 = arith.constant 0 : index
    %c0_20 = arith.constant 0 : index
    %c0_21 = arith.constant 0 : index
    %24 = vector.load %arg6[%c0_19, %c0_20, %c0_21] : memref<1x8x1xf32, #tpu.memory_space<vmem>>, vector<1x8x1xf32>
    %25 = vector.shape_cast %24 : vector<1x8x1xf32> to vector<8x1xf32>
    %26 = vector.shape_cast %23 : vector<8x1xf32> to vector<1x8x1xf32>
    tpu.vector_store %arg6[%c0_19, %c0_20, %c0_21], %26 {strides = array<i32>} : memref<1x8x1xf32, #tpu.memory_space<vmem>>, vector<1x8x1xf32>,
    return
  }
  func.func @transform_0(%arg0: i32, %arg1: i32) -> (i32, i32) {
    %c0_i32 = arith.constant 0 : i32
    %c0_i32_0 = arith.constant 0 : i32
    %c0_i32_1 = arith.constant 0 : i32
    return %c0_i32, %c0_i32_0 : i32, i32
  }
  func.func @transform_1(%arg0: i32, %arg1: i32) -> (i32, i32, i32) {
    %c0_i32 = arith.constant 0 : i32
    %c0_i32_0 = arith.constant 0 : i32
    return %arg0, %c0_i32, %arg1 : i32, i32, i32
  }
  func.func @transform_2(%arg0: i32, %arg1: i32) -> (i32, i32, i32) {
    %c0_i32 = arith.constant 0 : i32
    %c0_i32_0 = arith.constant 0 : i32
    return %arg0, %c0_i32, %arg1 : i32, i32, i32
  }
  func.func @transform_3(%arg0: i32, %arg1: i32) -> (i32, i32, i32) {
    %c0_i32 = arith.constant 0 : i32
    %c0_i32_0 = arith.constant 0 : i32
    %c0_i32_1 = arith.constant 0 : i32
    return %arg0, %c0_i32, %c0_i32_0 : i32, i32, i32
  }
  func.func @transform_4(%arg0: i32, %arg1: i32) -> (i32, i32, i32) {
    %c0_i32 = arith.constant 0 : i32
    %c0_i32_0 = arith.constant 0 : i32
    %c0_i32_1 = arith.constant 0 : i32
    return %arg0, %c0_i32, %c0_i32_0 : i32, i32, i32
  }
}

module attributes {stable_mosaic.version = 11 : i64} {
  func.func @_conv_stats_kernel(%arg0: i32, %arg1: i32, %arg2: memref<8x192xbf16, #tpu.memory_space<vmem>>, %arg3: memref<1x192x256xbf16, #tpu.memory_space<vmem>>, %arg4: memref<1x8x256xf32, #tpu.memory_space<vmem>>, %arg5: memref<1x8x1xf32, #tpu.memory_space<vmem>>, %arg6: memref<1x8x1xf32, #tpu.memory_space<vmem>>) attributes {dimension_semantics = [#tpu.dimension_semantics<parallel>, #tpu.dimension_semantics<arbitrary>], iteration_bounds = array<i64: 2, 1>, scalar_prefetch = 0 : i64, scratch_operands = 0 : i64, tpu.core_type = #tpu.core_type<tc>, window_params = [{pipeline_mode = #tpu.pipeline_mode<synchronous>, transform_indices = @transform_0, window_bounds = array<i64: 8, 192>}, {transform_indices = @transform_1, window_bounds = array<i64: 1, 192, 256>}, {transform_indices = @transform_2, window_bounds = array<i64: 1, 8, 256>}, {transform_indices = @transform_3, window_bounds = array<i64: 1, 8, 1>}, {transform_indices = @transform_4, window_bounds = array<i64: 1, 8, 1>}]} {
    %c0 = arith.constant 0 : index
    %c0_0 = arith.constant 0 : index
    %0 = vector.load %arg2[%c0, %c0_0] : memref<8x192xbf16, #tpu.memory_space<vmem>>, vector<8x192xbf16>
    %c0_1 = arith.constant 0 : index
    %c0_2 = arith.constant 0 : index
    %c0_3 = arith.constant 0 : index
    %1 = vector.load %arg3[%c0_1, %c0_2, %c0_3] : memref<1x192x256xbf16, #tpu.memory_space<vmem>>, vector<1x192x256xbf16>
    %2 = vector.shape_cast %1 : vector<1x192x256xbf16> to vector<192x256xbf16>
    %cst = arith.constant dense<0.000000e+00> : vector<8x256xf32>
    %3 = tpu.matmul %0, %2, %cst {dimension_numbers = #tpu.dot_dimension_numbers<[1], [0], [0], [1], [0, 0, 1, 1], [], []>} : vector<8x192xbf16>, vector<192x256xbf16>, vector<8x256xf32> -> vector<8x256xf32>
    %c0_4 = arith.constant 0 : index
    %c0_5 = arith.constant 0 : index
    %c0_6 = arith.constant 0 : index
    %4 = vector.load %arg4[%c0_4, %c0_5, %c0_6] : memref<1x8x256xf32, #tpu.memory_space<vmem>>, vector<1x8x256xf32>
    %5 = vector.shape_cast %4 : vector<1x8x256xf32> to vector<8x256xf32>
    %6 = vector.shape_cast %3 : vector<8x256xf32> to vector<1x8x256xf32>
    tpu.vector_store %arg4[%c0_4, %c0_5, %c0_6], %6 {strides = array<i32>} : memref<1x8x256xf32, #tpu.memory_space<vmem>>, vector<1x8x256xf32>,
    %c0_i32 = arith.constant 0 : i32
    %7 = arith.cmpi eq, %arg1, %c0_i32 : i32
    %8 = arith.extui %7 : i1 to i32
    %c0_i32_7 = arith.constant 0 : i32
    %9 = arith.cmpi ne, %8, %c0_i32_7 : i32
    scf.if %9 {
      %cst_22 = arith.constant 0.000000e+00 : f32
      %27 = vector.broadcast %cst_22 : f32 to vector<8x1xf32>
      %c0_23 = arith.constant 0 : index
      %c0_24 = arith.constant 0 : index
      %c0_25 = arith.constant 0 : index
      %28 = vector.load %arg5[%c0_23, %c0_24, %c0_25] : memref<1x8x1xf32, #tpu.memory_space<vmem>>, vector<1x8x1xf32>
      %29 = vector.shape_cast %28 : vector<1x8x1xf32> to vector<8x1xf32>
      %30 = vector.shape_cast %27 : vector<8x1xf32> to vector<1x8x1xf32>
      tpu.vector_store %arg5[%c0_23, %c0_24, %c0_25], %30 {strides = array<i32>} : memref<1x8x1xf32, #tpu.memory_space<vmem>>, vector<1x8x1xf32>,
      %cst_26 = arith.constant 0.000000e+00 : f32
      %31 = vector.broadcast %cst_26 : f32 to vector<8x1xf32>
      %c0_27 = arith.constant 0 : index
      %c0_28 = arith.constant 0 : index
      %c0_29 = arith.constant 0 : index
      %32 = vector.load %arg6[%c0_27, %c0_28, %c0_29] : memref<1x8x1xf32, #tpu.memory_space<vmem>>, vector<1x8x1xf32>
      %33 = vector.shape_cast %32 : vector<1x8x1xf32> to vector<8x1xf32>
      %34 = vector.shape_cast %31 : vector<8x1xf32> to vector<1x8x1xf32>
      tpu.vector_store %arg6[%c0_27, %c0_28, %c0_29], %34 {strides = array<i32>} : memref<1x8x1xf32, #tpu.memory_space<vmem>>, vector<1x8x1xf32>,
    } else {
    }
    %c0_8 = arith.constant 0 : index
    %c0_9 = arith.constant 0 : index
    %c0_10 = arith.constant 0 : index
    %10 = vector.load %arg5[%c0_8, %c0_9, %c0_10] : memref<1x8x1xf32, #tpu.memory_space<vmem>>, vector<1x8x1xf32>
    %11 = vector.shape_cast %10 : vector<1x8x1xf32> to vector<8x1xf32>
    %cst_11 = arith.constant dense<0.000000e+00> : vector<8xf32>
    %12 = vector.multi_reduction <add>, %3, %cst_11 [1] : vector<8x256xf32> to vector<8xf32>
    %13 = vector.shape_cast %12 : vector<8xf32> to vector<8x1xf32>
    %14 = arith.addf %11, %13 : vector<8x1xf32>
    %c0_12 = arith.constant 0 : index
    %c0_13 = arith.constant 0 : index
    %c0_14 = arith.constant 0 : index
    %15 = vector.load %arg5[%c0_12, %c0_13, %c0_14] : memref<1x8x1xf32, #tpu.memory_space<vmem>>, vector<1x8x1xf32>
    %16 = vector.shape_cast %15 : vector<1x8x1xf32> to vector<8x1xf32>
    %17 = vector.shape_cast %14 : vector<8x1xf32> to vector<1x8x1xf32>
    tpu.vector_store %arg5[%c0_12, %c0_13, %c0_14], %17 {strides = array<i32>} : memref<1x8x1xf32, #tpu.memory_space<vmem>>, vector<1x8x1xf32>,
    %c0_15 = arith.constant 0 : index
    %c0_16 = arith.constant 0 : index
    %c0_17 = arith.constant 0 : index
    %18 = vector.load %arg6[%c0_15, %c0_16, %c0_17] : memref<1x8x1xf32, #tpu.memory_space<vmem>>, vector<1x8x1xf32>
    %19 = vector.shape_cast %18 : vector<1x8x1xf32> to vector<8x1xf32>
    %20 = arith.mulf %3, %3 : vector<8x256xf32>
    %cst_18 = arith.constant dense<0.000000e+00> : vector<8xf32>
    %21 = vector.multi_reduction <add>, %20, %cst_18 [1] : vector<8x256xf32> to vector<8xf32>
    %22 = vector.shape_cast %21 : vector<8xf32> to vector<8x1xf32>
    %23 = arith.addf %19, %22 : vector<8x1xf32>
    %c0_19 = arith.constant 0 : index
    %c0_20 = arith.constant 0 : index
    %c0_21 = arith.constant 0 : index
    %24 = vector.load %arg6[%c0_19, %c0_20, %c0_21] : memref<1x8x1xf32, #tpu.memory_space<vmem>>, vector<1x8x1xf32>
    %25 = vector.shape_cast %24 : vector<1x8x1xf32> to vector<8x1xf32>
    %26 = vector.shape_cast %23 : vector<8x1xf32> to vector<1x8x1xf32>
    tpu.vector_store %arg6[%c0_19, %c0_20, %c0_21], %26 {strides = array<i32>} : memref<1x8x1xf32, #tpu.memory_space<vmem>>, vector<1x8x1xf32>,
    return
  }
  func.func @transform_0(%arg0: i32, %arg1: i32) -> (i32, i32) {
    %c0_i32 = arith.constant 0 : i32
    %c0_i32_0 = arith.constant 0 : i32
    %c0_i32_1 = arith.constant 0 : i32
    return %c0_i32, %c0_i32_0 : i32, i32
  }
  func.func @transform_1(%arg0: i32, %arg1: i32) -> (i32, i32, i32) {
    %c0_i32 = arith.constant 0 : i32
    %c0_i32_0 = arith.constant 0 : i32
    return %arg0, %c0_i32, %arg1 : i32, i32, i32
  }
  func.func @transform_2(%arg0: i32, %arg1: i32) -> (i32, i32, i32) {
    %c0_i32 = arith.constant 0 : i32
    %c0_i32_0 = arith.constant 0 : i32
    return %arg0, %c0_i32, %arg1 : i32, i32, i32
  }
  func.func @transform_3(%arg0: i32, %arg1: i32) -> (i32, i32, i32) {
    %c0_i32 = arith.constant 0 : i32
    %c0_i32_0 = arith.constant 0 : i32
    %c0_i32_1 = arith.constant 0 : i32
    return %arg0, %c0_i32, %c0_i32_0 : i32, i32, i32
  }
  func.func @transform_4(%arg0: i32, %arg1: i32) -> (i32, i32, i32) {
    %c0_i32 = arith.constant 0 : i32
    %c0_i32_0 = arith.constant 0 : i32
    %c0_i32_1 = arith.constant 0 : i32
    return %arg0, %c0_i32, %c0_i32_0 : i32, i32, i32
  }
}

module attributes {stable_mosaic.version = 11 : i64} {
  func.func @_conv_bias_kernel(%arg0: i32, %arg1: i32, %arg2: memref<8x16xbf16, #tpu.memory_space<vmem>>, %arg3: memref<1x16x1024xbf16, #tpu.memory_space<vmem>>, %arg4: memref<8x1xf32, #tpu.memory_space<vmem>>, %arg5: memref<1x8x1024xf32, #tpu.memory_space<vmem>>) attributes {dimension_semantics = [#tpu.dimension_semantics<parallel>, #tpu.dimension_semantics<parallel>], iteration_bounds = array<i64: 2, 2>, scalar_prefetch = 0 : i64, scratch_operands = 0 : i64, tpu.core_type = #tpu.core_type<tc>, window_params = [{pipeline_mode = #tpu.pipeline_mode<synchronous>, transform_indices = @transform_0, window_bounds = array<i64: 8, 16>}, {transform_indices = @transform_1, window_bounds = array<i64: 1, 16, 1024>}, {pipeline_mode = #tpu.pipeline_mode<synchronous>, transform_indices = @transform_2, window_bounds = array<i64: 8, 1>}, {transform_indices = @transform_3, window_bounds = array<i64: 1, 8, 1024>}]} {
    %c0 = arith.constant 0 : index
    %c0_0 = arith.constant 0 : index
    %0 = vector.load %arg2[%c0, %c0_0] : memref<8x16xbf16, #tpu.memory_space<vmem>>, vector<8x16xbf16>
    %c0_1 = arith.constant 0 : index
    %c0_2 = arith.constant 0 : index
    %c0_3 = arith.constant 0 : index
    %1 = vector.load %arg3[%c0_1, %c0_2, %c0_3] : memref<1x16x1024xbf16, #tpu.memory_space<vmem>>, vector<1x16x1024xbf16>
    %2 = vector.shape_cast %1 : vector<1x16x1024xbf16> to vector<16x1024xbf16>
    %cst = arith.constant dense<0.000000e+00> : vector<8x1024xf32>
    %3 = tpu.matmul %0, %2, %cst {dimension_numbers = #tpu.dot_dimension_numbers<[1], [0], [0], [1], [0, 0, 1, 1], [], []>} : vector<8x16xbf16>, vector<16x1024xbf16>, vector<8x1024xf32> -> vector<8x1024xf32>
    %c0_4 = arith.constant 0 : index
    %c0_5 = arith.constant 0 : index
    %4 = vector.load %arg4[%c0_4, %c0_5] : memref<8x1xf32, #tpu.memory_space<vmem>>, vector<8x1xf32>
    %5 = vector.broadcast %4 : vector<8x1xf32> to vector<8x1024xf32>
    %6 = arith.addf %3, %5 : vector<8x1024xf32>
    %c0_6 = arith.constant 0 : index
    %c0_7 = arith.constant 0 : index
    %c0_8 = arith.constant 0 : index
    %7 = vector.load %arg5[%c0_6, %c0_7, %c0_8] : memref<1x8x1024xf32, #tpu.memory_space<vmem>>, vector<1x8x1024xf32>
    %8 = vector.shape_cast %7 : vector<1x8x1024xf32> to vector<8x1024xf32>
    %9 = vector.shape_cast %6 : vector<8x1024xf32> to vector<1x8x1024xf32>
    tpu.vector_store %arg5[%c0_6, %c0_7, %c0_8], %9 {strides = array<i32>} : memref<1x8x1024xf32, #tpu.memory_space<vmem>>, vector<1x8x1024xf32>,
    return
  }
  func.func @transform_0(%arg0: i32, %arg1: i32) -> (i32, i32) {
    %c0_i32 = arith.constant 0 : i32
    %c0_i32_0 = arith.constant 0 : i32
    %c0_i32_1 = arith.constant 0 : i32
    return %c0_i32, %c0_i32_0 : i32, i32
  }
  func.func @transform_1(%arg0: i32, %arg1: i32) -> (i32, i32, i32) {
    %c0_i32 = arith.constant 0 : i32
    %c0_i32_0 = arith.constant 0 : i32
    return %arg0, %c0_i32, %arg1 : i32, i32, i32
  }
  func.func @transform_2(%arg0: i32, %arg1: i32) -> (i32, i32) {
    %c0_i32 = arith.constant 0 : i32
    %c0_i32_0 = arith.constant 0 : i32
    %c0_i32_1 = arith.constant 0 : i32
    return %c0_i32, %c0_i32_0 : i32, i32
  }
  func.func @transform_3(%arg0: i32, %arg1: i32) -> (i32, i32, i32) {
    %c0_i32 = arith.constant 0 : i32
    %c0_i32_0 = arith.constant 0 : i32
    return %arg0, %c0_i32, %arg1 : i32, i32, i32
  }
}

module attributes {stable_mosaic.version = 11 : i64} {
  func.func @_conv_bias_kernel(%arg0: i32, %arg1: i32, %arg2: memref<8x32xbf16, #tpu.memory_space<vmem>>, %arg3: memref<1x32x1024xbf16, #tpu.memory_space<vmem>>, %arg4: memref<8x1xf32, #tpu.memory_space<vmem>>, %arg5: memref<1x8x1024xf32, #tpu.memory_space<vmem>>) attributes {dimension_semantics = [#tpu.dimension_semantics<parallel>, #tpu.dimension_semantics<parallel>], iteration_bounds = array<i64: 2, 2>, scalar_prefetch = 0 : i64, scratch_operands = 0 : i64, tpu.core_type = #tpu.core_type<tc>, window_params = [{pipeline_mode = #tpu.pipeline_mode<synchronous>, transform_indices = @transform_0, window_bounds = array<i64: 8, 32>}, {transform_indices = @transform_1, window_bounds = array<i64: 1, 32, 1024>}, {pipeline_mode = #tpu.pipeline_mode<synchronous>, transform_indices = @transform_2, window_bounds = array<i64: 8, 1>}, {transform_indices = @transform_3, window_bounds = array<i64: 1, 8, 1024>}]} {
    %c0 = arith.constant 0 : index
    %c0_0 = arith.constant 0 : index
    %0 = vector.load %arg2[%c0, %c0_0] : memref<8x32xbf16, #tpu.memory_space<vmem>>, vector<8x32xbf16>
    %c0_1 = arith.constant 0 : index
    %c0_2 = arith.constant 0 : index
    %c0_3 = arith.constant 0 : index
    %1 = vector.load %arg3[%c0_1, %c0_2, %c0_3] : memref<1x32x1024xbf16, #tpu.memory_space<vmem>>, vector<1x32x1024xbf16>
    %2 = vector.shape_cast %1 : vector<1x32x1024xbf16> to vector<32x1024xbf16>
    %cst = arith.constant dense<0.000000e+00> : vector<8x1024xf32>
    %3 = tpu.matmul %0, %2, %cst {dimension_numbers = #tpu.dot_dimension_numbers<[1], [0], [0], [1], [0, 0, 1, 1], [], []>} : vector<8x32xbf16>, vector<32x1024xbf16>, vector<8x1024xf32> -> vector<8x1024xf32>
    %c0_4 = arith.constant 0 : index
    %c0_5 = arith.constant 0 : index
    %4 = vector.load %arg4[%c0_4, %c0_5] : memref<8x1xf32, #tpu.memory_space<vmem>>, vector<8x1xf32>
    %5 = vector.broadcast %4 : vector<8x1xf32> to vector<8x1024xf32>
    %6 = arith.addf %3, %5 : vector<8x1024xf32>
    %c0_6 = arith.constant 0 : index
    %c0_7 = arith.constant 0 : index
    %c0_8 = arith.constant 0 : index
    %7 = vector.load %arg5[%c0_6, %c0_7, %c0_8] : memref<1x8x1024xf32, #tpu.memory_space<vmem>>, vector<1x8x1024xf32>
    %8 = vector.shape_cast %7 : vector<1x8x1024xf32> to vector<8x1024xf32>
    %9 = vector.shape_cast %6 : vector<8x1024xf32> to vector<1x8x1024xf32>
    tpu.vector_store %arg5[%c0_6, %c0_7, %c0_8], %9 {strides = array<i32>} : memref<1x8x1024xf32, #tpu.memory_space<vmem>>, vector<1x8x1024xf32>,
    return
  }
  func.func @transform_0(%arg0: i32, %arg1: i32) -> (i32, i32) {
    %c0_i32 = arith.constant 0 : i32
    %c0_i32_0 = arith.constant 0 : i32
    %c0_i32_1 = arith.constant 0 : i32
    return %c0_i32, %c0_i32_0 : i32, i32
  }
  func.func @transform_1(%arg0: i32, %arg1: i32) -> (i32, i32, i32) {
    %c0_i32 = arith.constant 0 : i32
    %c0_i32_0 = arith.constant 0 : i32
    return %arg0, %c0_i32, %arg1 : i32, i32, i32
  }
  func.func @transform_2(%arg0: i32, %arg1: i32) -> (i32, i32) {
    %c0_i32 = arith.constant 0 : i32
    %c0_i32_0 = arith.constant 0 : i32
    %c0_i32_1 = arith.constant 0 : i32
    return %c0_i32, %c0_i32_0 : i32, i32
  }
  func.func @transform_3(%arg0: i32, %arg1: i32) -> (i32, i32, i32) {
    %c0_i32 = arith.constant 0 : i32
    %c0_i32_0 = arith.constant 0 : i32
    return %arg0, %c0_i32, %arg1 : i32, i32, i32
  }
}

module attributes {stable_mosaic.version = 11 : i64} {
  func.func @_conv_bias_kernel(%arg0: i32, %arg1: i32, %arg2: memref<8x64xbf16, #tpu.memory_space<vmem>>, %arg3: memref<1x64x1024xbf16, #tpu.memory_space<vmem>>, %arg4: memref<8x1xf32, #tpu.memory_space<vmem>>, %arg5: memref<1x8x1024xf32, #tpu.memory_space<vmem>>) attributes {dimension_semantics = [#tpu.dimension_semantics<parallel>, #tpu.dimension_semantics<parallel>], iteration_bounds = array<i64: 2, 2>, scalar_prefetch = 0 : i64, scratch_operands = 0 : i64, tpu.core_type = #tpu.core_type<tc>, window_params = [{pipeline_mode = #tpu.pipeline_mode<synchronous>, transform_indices = @transform_0, window_bounds = array<i64: 8, 64>}, {transform_indices = @transform_1, window_bounds = array<i64: 1, 64, 1024>}, {pipeline_mode = #tpu.pipeline_mode<synchronous>, transform_indices = @transform_2, window_bounds = array<i64: 8, 1>}, {transform_indices = @transform_3, window_bounds = array<i64: 1, 8, 1024>}]} {
    %c0 = arith.constant 0 : index
    %c0_0 = arith.constant 0 : index
    %0 = vector.load %arg2[%c0, %c0_0] : memref<8x64xbf16, #tpu.memory_space<vmem>>, vector<8x64xbf16>
    %c0_1 = arith.constant 0 : index
    %c0_2 = arith.constant 0 : index
    %c0_3 = arith.constant 0 : index
    %1 = vector.load %arg3[%c0_1, %c0_2, %c0_3] : memref<1x64x1024xbf16, #tpu.memory_space<vmem>>, vector<1x64x1024xbf16>
    %2 = vector.shape_cast %1 : vector<1x64x1024xbf16> to vector<64x1024xbf16>
    %cst = arith.constant dense<0.000000e+00> : vector<8x1024xf32>
    %3 = tpu.matmul %0, %2, %cst {dimension_numbers = #tpu.dot_dimension_numbers<[1], [0], [0], [1], [0, 0, 1, 1], [], []>} : vector<8x64xbf16>, vector<64x1024xbf16>, vector<8x1024xf32> -> vector<8x1024xf32>
    %c0_4 = arith.constant 0 : index
    %c0_5 = arith.constant 0 : index
    %4 = vector.load %arg4[%c0_4, %c0_5] : memref<8x1xf32, #tpu.memory_space<vmem>>, vector<8x1xf32>
    %5 = vector.broadcast %4 : vector<8x1xf32> to vector<8x1024xf32>
    %6 = arith.addf %3, %5 : vector<8x1024xf32>
    %c0_6 = arith.constant 0 : index
    %c0_7 = arith.constant 0 : index
    %c0_8 = arith.constant 0 : index
    %7 = vector.load %arg5[%c0_6, %c0_7, %c0_8] : memref<1x8x1024xf32, #tpu.memory_space<vmem>>, vector<1x8x1024xf32>
    %8 = vector.shape_cast %7 : vector<1x8x1024xf32> to vector<8x1024xf32>
    %9 = vector.shape_cast %6 : vector<8x1024xf32> to vector<1x8x1024xf32>
    tpu.vector_store %arg5[%c0_6, %c0_7, %c0_8], %9 {strides = array<i32>} : memref<1x8x1024xf32, #tpu.memory_space<vmem>>, vector<1x8x1024xf32>,
    return
  }
  func.func @transform_0(%arg0: i32, %arg1: i32) -> (i32, i32) {
    %c0_i32 = arith.constant 0 : i32
    %c0_i32_0 = arith.constant 0 : i32
    %c0_i32_1 = arith.constant 0 : i32
    return %c0_i32, %c0_i32_0 : i32, i32
  }
  func.func @transform_1(%arg0: i32, %arg1: i32) -> (i32, i32, i32) {
    %c0_i32 = arith.constant 0 : i32
    %c0_i32_0 = arith.constant 0 : i32
    return %arg0, %c0_i32, %arg1 : i32, i32, i32
  }
  func.func @transform_2(%arg0: i32, %arg1: i32) -> (i32, i32) {
    %c0_i32 = arith.constant 0 : i32
    %c0_i32_0 = arith.constant 0 : i32
    %c0_i32_1 = arith.constant 0 : i32
    return %c0_i32, %c0_i32_0 : i32, i32
  }
  func.func @transform_3(%arg0: i32, %arg1: i32) -> (i32, i32, i32) {
    %c0_i32 = arith.constant 0 : i32
    %c0_i32_0 = arith.constant 0 : i32
    return %arg0, %c0_i32, %arg1 : i32, i32, i32
  }
}

module attributes {stable_mosaic.version = 11 : i64} {
  func.func @_conv_bias_kernel(%arg0: i32, %arg1: i32, %arg2: memref<8x128xbf16, #tpu.memory_space<vmem>>, %arg3: memref<1x128x1024xbf16, #tpu.memory_space<vmem>>, %arg4: memref<8x1xf32, #tpu.memory_space<vmem>>, %arg5: memref<1x8x1024xf32, #tpu.memory_space<vmem>>) attributes {dimension_semantics = [#tpu.dimension_semantics<parallel>, #tpu.dimension_semantics<parallel>], iteration_bounds = array<i64: 2, 2>, scalar_prefetch = 0 : i64, scratch_operands = 0 : i64, tpu.core_type = #tpu.core_type<tc>, window_params = [{pipeline_mode = #tpu.pipeline_mode<synchronous>, transform_indices = @transform_0, window_bounds = array<i64: 8, 128>}, {transform_indices = @transform_1, window_bounds = array<i64: 1, 128, 1024>}, {pipeline_mode = #tpu.pipeline_mode<synchronous>, transform_indices = @transform_2, window_bounds = array<i64: 8, 1>}, {transform_indices = @transform_3, window_bounds = array<i64: 1, 8, 1024>}]} {
    %c0 = arith.constant 0 : index
    %c0_0 = arith.constant 0 : index
    %0 = vector.load %arg2[%c0, %c0_0] : memref<8x128xbf16, #tpu.memory_space<vmem>>, vector<8x128xbf16>
    %c0_1 = arith.constant 0 : index
    %c0_2 = arith.constant 0 : index
    %c0_3 = arith.constant 0 : index
    %1 = vector.load %arg3[%c0_1, %c0_2, %c0_3] : memref<1x128x1024xbf16, #tpu.memory_space<vmem>>, vector<1x128x1024xbf16>
    %2 = vector.shape_cast %1 : vector<1x128x1024xbf16> to vector<128x1024xbf16>
    %cst = arith.constant dense<0.000000e+00> : vector<8x1024xf32>
    %3 = tpu.matmul %0, %2, %cst {dimension_numbers = #tpu.dot_dimension_numbers<[1], [0], [0], [1], [0, 0, 1, 1], [], []>} : vector<8x128xbf16>, vector<128x1024xbf16>, vector<8x1024xf32> -> vector<8x1024xf32>
    %c0_4 = arith.constant 0 : index
    %c0_5 = arith.constant 0 : index
    %4 = vector.load %arg4[%c0_4, %c0_5] : memref<8x1xf32, #tpu.memory_space<vmem>>, vector<8x1xf32>
    %5 = vector.broadcast %4 : vector<8x1xf32> to vector<8x1024xf32>
    %6 = arith.addf %3, %5 : vector<8x1024xf32>
    %c0_6 = arith.constant 0 : index
    %c0_7 = arith.constant 0 : index
    %c0_8 = arith.constant 0 : index
    %7 = vector.load %arg5[%c0_6, %c0_7, %c0_8] : memref<1x8x1024xf32, #tpu.memory_space<vmem>>, vector<1x8x1024xf32>
    %8 = vector.shape_cast %7 : vector<1x8x1024xf32> to vector<8x1024xf32>
    %9 = vector.shape_cast %6 : vector<8x1024xf32> to vector<1x8x1024xf32>
    tpu.vector_store %arg5[%c0_6, %c0_7, %c0_8], %9 {strides = array<i32>} : memref<1x8x1024xf32, #tpu.memory_space<vmem>>, vector<1x8x1024xf32>,
    return
  }
  func.func @transform_0(%arg0: i32, %arg1: i32) -> (i32, i32) {
    %c0_i32 = arith.constant 0 : i32
    %c0_i32_0 = arith.constant 0 : i32
    %c0_i32_1 = arith.constant 0 : i32
    return %c0_i32, %c0_i32_0 : i32, i32
  }
  func.func @transform_1(%arg0: i32, %arg1: i32) -> (i32, i32, i32) {
    %c0_i32 = arith.constant 0 : i32
    %c0_i32_0 = arith.constant 0 : i32
    return %arg0, %c0_i32, %arg1 : i32, i32, i32
  }
  func.func @transform_2(%arg0: i32, %arg1: i32) -> (i32, i32) {
    %c0_i32 = arith.constant 0 : i32
    %c0_i32_0 = arith.constant 0 : i32
    %c0_i32_1 = arith.constant 0 : i32
    return %c0_i32, %c0_i32_0 : i32, i32
  }
  func.func @transform_3(%arg0: i32, %arg1: i32) -> (i32, i32, i32) {
    %c0_i32 = arith.constant 0 : i32
    %c0_i32_0 = arith.constant 0 : i32
    return %arg0, %c0_i32, %arg1 : i32, i32, i32
  }
}

</mosaic_0001>

<bundles_post_ra>
// kernel: unet_daft_forward.24
= control target key start
LH: loop header
LB: loop body
LE: loop exit
PB: predicated region body
PF: predicated region fallthrough
CT: control target
= control target key end

     0   :  { %s591_s17 = smov 0   ;;  %s593_s18 = smov 0   ;;  %s666_s0 = inlined_call_operand.vmem [shape: f32[2,8,2048], index: 0, kind: input, shape index: {}]   ;;  %s667_s1 = inlined_call_operand.vmem [shape: f32[2,8,1], index: 1, kind: input, shape index: {}]   ;;  %s668_s2 = inlined_call_operand.vmem [shape: f32[2,8,1], index: 2, kind: input, shape index: {}]   ;;  %s669_s3 = inlined_call_operand.<no memory space> [shape: f32[1], index: 3, kind: input, shape index: {}]   ;;  %s670_s4 = inlined_call_operand.vmem [shape: f32[2,8,2048], index: 4, kind: output, shape index: {}]  }
   0x1   :  { %9 = sst [smem:[#allocation2]] %s669_s3  ;;  %s595_s19 = smov 0  }
   0x2   :  { %s597_s20 = smov 0   ;;  %s599_s21 = smov 0  }
   0x3 LB: > { %s24_s3 = sadd.s32 1, %s552_s19  ;;  %s27_s22 = sadd.s32 1, %s556_s20  ;;  %s560_s21 = sphi %s599_s21, %s15_s21   ;;  %s556_s20 = sphi %s597_s20, %s674_s20   ;;  %s552_s19 = sphi %s595_s19, %s673_s19   ;;  %s548_s18 = sphi %s593_s18, %s672_s18   ;;  %s544_s17 = sphi %s591_s17, %s671_s17  }
   0x4   : > { %p25_p0 = scmp.ge.s32.totalorder %s24_s3, 2  ;;  %p467_p1 = scmp.ge.s32.totalorder %s560_s21, 1 }
   0x5   : > { %p202_p2 = scmp.lt.s32.totalorder %s560_s21, 5 }
   0x6   : > { %s676_s3 = smov (%p25_p0, %s24_s3), 0  ;;  %s678_s22 = smov (!%p25_p0, %s27_s22), %s556_s20 }
   0x7   : > { %p203_p3 = pnand %p467_p1, %p202_p2  ;;  %p29_p4 = scmp.ge.s32.totalorder %s678_s22, 2 }
   0x8   : > { %p245_p5 = scmp.lt.s32.totalorder (!%p203_p3), %s548_s18, 1  ;;  %v562_v0 = vmov (!%p203_p3), 0   ;;  %s468_s30 = sshll.u32 (!%p203_p3), %s544_s17, 3 }
   0x9   : > { %s680_s22 = smov (%p29_p4, %s678_s22), 0  ;;  %206 = sbr.rel (%p203_p3) target bundleno = 181 (0xb5), region = 36 }
   0xa   : > { %519 = vset.pattern.permute.xlu0 (!%p203_p3), %v562_v0  ;;  %p247_p6 = scmp.lt.s32.totalorder (!%p203_p3), %s468_s30, 15  ;;  %s315_s8 = sld [smem:[#allocation2]] (!%p203_p3) }
  0x10   : > { %s682_s18 = smov (!%p245_p5, %s548_s18), 1  ;;  %s684_s30 = smov (!%p247_p6, %s468_s30), 15  ;;  %v324_v19 = vstv %s315_s8 }
  0x11   : > { %s471_s23 = sshll.u32 %s682_s18, 3  ;;  %s469_s5 = sshll.u32 %s682_s18, 4 }
  0x12   : > { %s257_s26 = scalar_lea.vmem %s667_s1, %s471_s23  ;;  %s261_s29 = scalar_lea.vmem %s668_s2, %s471_s23 }
  0x13   : > { %v280_v1 = vld [vmem:[%s257_s26] sm:$0xff]  ;;  %s630_s6 = sadd.s32 %s469_s5, %s684_s30 }
  0x14   : > { %v282_v2 = vld [vmem:[%s261_s29] sm:$0xff]  ;;  %v281_v3 = vmul.f32 0.0005787037, %v280_v1  ;;  %s470_s7 = sshll.u32 %s630_s6, 3 }
  0x15   : > { %v283_v4 = vmul.f32 0.0005787037, %v282_v2  ;;  %s252_s11 = scalar_lea.vmem %s666_s0, %s470_s7  ;;  %s270_s14 = scalar_lea.vmem %s670_s4, %s470_s7 }
  0x16   : > { %289 = vperm.xlu0 %519, %v281_v3   ;;  %v284_v5 = vmul.f32 %v281_v3, %v281_v3  ;;  %v272_v11 = vld [vmem:[%s252_s11] sm:$0xff]  ;;  %v273_v12 = vld [vmem:[%s252_s11 + $0x8] sm:$0xff]  ;;  %v274_v13 = vld [vmem:[%s252_s11 + $0x10] sm:$0xff] }
  0x17   : > { %v275_v14 = vld [vmem:[%s252_s11 + $0x18] sm:$0xff]  ;;  %v276_v15 = vld [vmem:[%s252_s11 + $0x20] sm:$0xff]  ;;  %v277_v16 = vld [vmem:[%s252_s11 + $0x28] sm:$0xff] }
  0x18   : > { %v285_v6 = vsub.f32 %v283_v4, %v284_v5  ;;  %v278_v17 = vld [vmem:[%s252_s11 + $0x30] sm:$0xff]  ;;  %v279_v18 = vld [vmem:[%s252_s11 + $0x38] sm:$0xff] }
  0x1a   : > { %v286_v7 = vmax.f32 %v285_v6, 0.0 }
  0x1c   : > { %v300_v8 = vadd.f32 1e-05, %v286_v7 }
  0x1e   : > { %520 = vrsqrt.f32 %v300_v8 }
  0x28   : > { %v521_v9 = vpop.eup %520 }
  0x29   : > { %304 = vperm.xlu0 %519, %v521_v9  }
  0x95   : > { %v290_v10 = vpop.permute.xlu0 %289 }
  0x96   : > { %v292_v20 = vsub.f32 %v272_v11, %v290_v10  ;;  %v293_v21 = vsub.f32 %v273_v12, %v290_v10  ;;  %v294_v22 = vsub.f32 %v274_v13, %v290_v10  ;;  %v295_v23 = vsub.f32 %v275_v14, %v290_v10 }
  0x97   : > { %v296_v25 = vsub.f32 %v276_v15, %v290_v10  ;;  %v297_v26 = vsub.f32 %v277_v16, %v290_v10  ;;  %v298_v27 = vsub.f32 %v278_v17, %v290_v10  ;;  %v299_v28 = vsub.f32 %v279_v18, %v290_v10 }
  0xa8   : > { %v305_v24 = vpop.permute.xlu0 %304 }
  0xa9   : > { %v307_v29 = vmul.f32 %v305_v24, %v292_v20  ;;  %v308_v30 = vmul.f32 %v305_v24, %v293_v21  ;;  %v309_v31 = vmul.f32 %v305_v24, %v294_v22  ;;  %v310_v32 = vmul.f32 %v305_v24, %v295_v23 }
  0xaa   : > { %v311_v33 = vmul.f32 %v305_v24, %v296_v25  ;;  %v312_v34 = vmul.f32 %v305_v24, %v297_v26  ;;  %v313_v35 = vmul.f32 %v305_v24, %v298_v27  ;;  %v314_v36 = vmul.f32 %v305_v24, %v299_v28 }
  0xab   : > { %vm316_vm0 = vcmp.ge.f32.partialorder %v307_v29, 0.0  ;;  %vm317_vm1 = vcmp.ge.f32.partialorder %v308_v30, 0.0  ;;  %vm318_vm2 = vcmp.ge.f32.partialorder %v309_v31, 0.0  ;;  %vm319_vm3 = vcmp.ge.f32.partialorder %v310_v32, 0.0 }
  0xac   : > { %vm320_vm4 = vcmp.ge.f32.partialorder %v311_v33, 0.0  ;;  %vm321_vm5 = vcmp.ge.f32.partialorder %v312_v34, 0.0  ;;  %vm322_vm6 = vcmp.ge.f32.partialorder %v313_v35, 0.0  ;;  %vm323_vm7 = vcmp.ge.f32.partialorder %v314_v36, 0.0 }
  0xad   : > { %v325_v37 = vmul.f32 %v324_v19, %v307_v29  ;;  %v326_v38 = vmul.f32 %v324_v19, %v308_v30  ;;  %v327_v39 = vmul.f32 %v324_v19, %v309_v31  ;;  %v328_v40 = vmul.f32 %v324_v19, %v310_v32 }
  0xae   : > { %v329_v41 = vmul.f32 %v324_v19, %v311_v33  ;;  %v330_v42 = vmul.f32 %v324_v19, %v312_v34  ;;  %v331_v43 = vmul.f32 %v324_v19, %v313_v35  ;;  %v332_v44 = vmul.f32 %v324_v19, %v314_v36 }
  0xaf   : > { %v333_v45 = vsel %vm316_vm0, %v307_v29, %v325_v37  ;;  %v334_v46 = vsel %vm317_vm1, %v308_v30, %v326_v38  ;;  %v335_v47 = vsel %vm318_vm2, %v309_v31, %v327_v39  ;;  %v336_v48 = vsel %vm319_vm3, %v310_v32, %v328_v40 }
  0xb0   : > { %v337_v49 = vsel %vm320_vm4, %v311_v33, %v329_v41  ;;  %v338_v50 = vsel %vm321_vm5, %v312_v34, %v330_v42  ;;  %v339_v51 = vsel %vm322_vm6, %v313_v35, %v331_v43  ;;  %v340_v52 = vsel %vm323_vm7, %v314_v36, %v332_v44  ;;  %341 = vst [vmem:[%s270_s14] sm:$0xff] %v333_v45 }
  0xb1   : > { %342 = vst [vmem:[%s270_s14 + $0x8] sm:$0xff] %v334_v46  ;;  %343 = vst [vmem:[%s270_s14 + $0x10] sm:$0xff] %v335_v47 }
  0xb2   : > { %344 = vst [vmem:[%s270_s14 + $0x18] sm:$0xff] %v336_v48  ;;  %345 = vst [vmem:[%s270_s14 + $0x20] sm:$0xff] %v337_v49 }
  0xb3   : > { %346 = vst [vmem:[%s270_s14 + $0x28] sm:$0xff] %v338_v50  ;;  %347 = vst [vmem:[%s270_s14 + $0x30] sm:$0xff] %v339_v51 }
  0xb4   : > { %348 = vst [vmem:[%s270_s14 + $0x38] sm:$0xff] %v340_v52 }
  0xb5 PF: > { %s15_s21 = sadd.s32 1, %s560_s21   ;;  %s671_s17 = smov %s552_s19 }
  0xb6   : > { %p12_p7 = scmp.ge.s32.totalorder %s15_s21, 6   ;;  %s672_s18 = smov %s556_s20 }
  0xb7   : > { %s673_s19 = smov %s676_s3  ;;  %s674_s20 = smov %s680_s22 }
  0xb8   :  { %14 = sbr.rel (!%p12_p7) target bundleno = 3 (0x3), region = 72 }

// kernel: unet_daft_forward.23
= control target key start
LH: loop header
LB: loop body
LE: loop exit
PB: predicated region body
PF: predicated region fallthrough
CT: control target
= control target key end

     0   :  { %s1089_s15 = smov 0   ;;  %s1091_s16 = smov 0   ;;  %s1313_s0 = inlined_call_operand.vmem [shape: bf16[8,64], index: 0, kind: input, shape index: {}]   ;;  %s1314_s1 = inlined_call_operand.vmem [shape: bf16[2,64,2048], index: 1, kind: input, shape index: {}]   ;;  %s1315_s2 = inlined_call_operand.vmem [shape: f32[2,8,2048], index: 2, kind: output, shape index: {0}]   ;;  %s1316_s3 = inlined_call_operand.vmem [shape: f32[2,8,1], index: 3, kind: output, shape index: {1}]   ;;  %s1317_s4 = inlined_call_operand.vmem [shape: f32[2,8,1], index: 4, kind: output, shape index: {2}]  }
   0x1   :  { %s1093_s17 = smov 0   ;;  %s1095_s18 = smov 0  }
   0x2   :  { %s1097_s19 = smov 0   ;;  %s1099_s20 = smov 0  }
   0x3   :  { %s1101_s21 = smov 0  }
   0x4 LB: > { %s24_s22 = sadd.s32 1, %s1052_s19  ;;  %s27_s23 = sadd.s32 1, %s1056_s20  ;;  %s1060_s21 = sphi %s1101_s21, %s15_s21   ;;  %s1056_s20 = sphi %s1099_s20, %s1323_s20   ;;  %s1052_s19 = sphi %s1097_s19, %s1322_s19   ;;  %s1048_s18 = sphi %s1095_s18, %s1321_s18   ;;  %s1044_s17 = sphi %s1093_s17, %s1320_s17   ;;  %s1040_s16 = sphi %s1091_s16, %s1319_s16   ;;  %s1036_s15 = sphi %s1089_s15, %s1318_s15  }
   0x5   : > { %p25_p0 = scmp.ge.s32.totalorder %s24_s22, 2  ;;  %p64_p1 = scmp.ne.s32.totalorder %s1040_s16, %s1036_s15 }
   0x6   : > { %p65_p2 = scmp.eq.s32.totalorder %s1060_s21, 0  ;;  %s57_s27 = sadd.s32 1, %s1040_s16 }
   0x7   : > { %s1325_s22 = smov (%p25_p0, %s24_s22), 0  ;;  %s1327_s23 = smov (!%p25_p0, %s27_s23), %s1056_s20 }
   0x8   : > { %p66_p3 = por %p65_p2, %p64_p1  ;;  %p29_p4 = scmp.ge.s32.totalorder %s1327_s23, 2 }
   0x9   : > { %s53_s24 = ssub.s32 %s1052_s19, %s1325_s22  ;;  %p897_p6 = scmp.ge.s32.totalorder %s1060_s21, 4 }
   0xa   : > { %s1329_s23 = smov (%p29_p4, %s1327_s23), 0 }
   0xb   : > { %s52_s25 = ssub.s32 %s1056_s20, %s1329_s23  ;;  %173 = sbr.rel (%p897_p6) target bundleno = 41 (0x29), region = 20 }
   0xc   : > { %s54_s26 = sor.u32 %s53_s24, %s52_s25 }
   0xd   : > { %p55_p5 = scmp.eq.s32.totalorder %s54_s26, 0 }
   0xf   : > { %s1140_s28 = scalar_select %p55_p5, %s1040_s16, %s57_s27  }
  0x12   : > { %176 = sbr.rel (!%p66_p3) target bundleno = 41 (0x29), region = 24  ;;  %s178_s29 = sand.u32 (%p66_p3), 1, %s1040_s16  }
  0x13   : > { %s899_s30 = sshll.u32 (%p66_p3), %s1052_s19, 3  ;;  %s898_s5 = sshll.u32 (%p66_p3), %s178_s29, 8 }
  0x14   : > { %s900_s6 = sshll.u32 (%p66_p3), %s1056_s20, 7  ;;  %s1154_s12 = scalar_lea.vmem (%p66_p3), [#allocation2], %s898_s5 }
  0x15   : > { %s183_s7 = sadd.s32 (%p66_p3), %s900_s6, %s899_s30 }
  0x16   : > { %s901_s8 = sshll.u32 (%p66_p3), %s183_s7, 2 }
  0x17   : > { %s1149_s11 = scalar_lea.vmem (%p66_p3), %s1314_s1, %s901_s8 }
  0x18   : > { %v198_v0 = vld [vmem:[%s1149_s11] sm:$0xff] (%p66_p3)  ;;  %v200_v1 = vld [vmem:[%s1149_s11 + $0x8] sm:$0xff] (%p66_p3)  ;;  %v202_v2 = vld [vmem:[%s1149_s11 + $0x10] sm:$0xff] (%p66_p3) }
  0x19   : > { %199 = vst [vmem:[%s1154_s12] sm:$0xff] %v198_v0  ;;  %201 = vst [vmem:[%s1154_s12 + $0x8] sm:$0xff] %v200_v1  ;;  %v204_v3 = vld [vmem:[%s1149_s11 + $0x18] sm:$0xff]  ;;  %v206_v4 = vld [vmem:[%s1149_s11 + $0x40] sm:$0xff] }
  0x1a   : > { %203 = vst [vmem:[%s1154_s12 + $0x10] sm:$0xff] %v202_v2  ;;  %v208_v5 = vld [vmem:[%s1149_s11 + $0x48] sm:$0xff]  ;;  %205 = vst [vmem:[%s1154_s12 + $0x18] sm:$0xff] %v204_v3  ;;  %v210_v6 = vld [vmem:[%s1149_s11 + $0x50] sm:$0xff] }
  0x1b   : > { %207 = vst [vmem:[%s1154_s12 + $0x20] sm:$0xff] %v206_v4  ;;  %209 = vst [vmem:[%s1154_s12 + $0x28] sm:$0xff] %v208_v5  ;;  %v212_v7 = vld [vmem:[%s1149_s11 + $0x58] sm:$0xff]  ;;  %v214_v8 = vld [vmem:[%s1149_s11 + $0x80] sm:$0xff] }
  0x1c   : > { %211 = vst [vmem:[%s1154_s12 + $0x30] sm:$0xff] %v210_v6  ;;  %213 = vst [vmem:[%s1154_s12 + $0x38] sm:$0xff] %v212_v7  ;;  %v216_v9 = vld [vmem:[%s1149_s11 + $0x88] sm:$0xff]  ;;  %v218_v10 = vld [vmem:[%s1149_s11 + $0x90] sm:$0xff] }
  0x1d   : > { %215 = vst [vmem:[%s1154_s12 + $0x40] sm:$0xff] %v214_v8  ;;  %v220_v11 = vld [vmem:[%s1149_s11 + $0x98] sm:$0xff]  ;;  %217 = vst [vmem:[%s1154_s12 + $0x48] sm:$0xff] %v216_v9  ;;  %v222_v12 = vld [vmem:[%s1149_s11 + $0xc0] sm:$0xff] }
  0x1e   : > { %219 = vst [vmem:[%s1154_s12 + $0x50] sm:$0xff] %v218_v10  ;;  %221 = vst [vmem:[%s1154_s12 + $0x58] sm:$0xff] %v220_v11  ;;  %v224_v13 = vld [vmem:[%s1149_s11 + $0xc8] sm:$0xff]  ;;  %v226_v14 = vld [vmem:[%s1149_s11 + $0xd0] sm:$0xff] }
  0x1f   : > { %223 = vst [vmem:[%s1154_s12 + $0x60] sm:$0xff] %v222_v12  ;;  %225 = vst [vmem:[%s1154_s12 + $0x68] sm:$0xff] %v224_v13  ;;  %v228_v15 = vld [vmem:[%s1149_s11 + $0xd8] sm:$0xff]  ;;  %v230_v16 = vld [vmem:[%s1149_s11 + $0x100] sm:$0xff] }
  0x20   : > { %227 = vst [vmem:[%s1154_s12 + $0x70] sm:$0xff] %v226_v14  ;;  %v232_v17 = vld [vmem:[%s1149_s11 + $0x108] sm:$0xff]  ;;  %229 = vst [vmem:[%s1154_s12 + $0x78] sm:$0xff] %v228_v15  ;;  %v234_v18 = vld [vmem:[%s1149_s11 + $0x110] sm:$0xff] }
  0x21   : > { %231 = vst [vmem:[%s1154_s12 + $0x80] sm:$0xff] %v230_v16  ;;  %233 = vst [vmem:[%s1154_s12 + $0x88] sm:$0xff] %v232_v17  ;;  %v236_v19 = vld [vmem:[%s1149_s11 + $0x118] sm:$0xff]  ;;  %v238_v20 = vld [vmem:[%s1149_s11 + $0x140] sm:$0xff] }
  0x22   : > { %235 = vst [vmem:[%s1154_s12 + $0x90] sm:$0xff] %v234_v18  ;;  %237 = vst [vmem:[%s1154_s12 + $0x98] sm:$0xff] %v236_v19  ;;  %v240_v21 = vld [vmem:[%s1149_s11 + $0x148] sm:$0xff]  ;;  %v242_v22 = vld [vmem:[%s1149_s11 + $0x150] sm:$0xff] }
  0x23   : > { %239 = vst [vmem:[%s1154_s12 + $0xa0] sm:$0xff] %v238_v20  ;;  %v244_v23 = vld [vmem:[%s1149_s11 + $0x158] sm:$0xff]  ;;  %241 = vst [vmem:[%s1154_s12 + $0xa8] sm:$0xff] %v240_v21  ;;  %v246_v24 = vld [vmem:[%s1149_s11 + $0x180] sm:$0xff] }
  0x24   : > { %243 = vst [vmem:[%s1154_s12 + $0xb0] sm:$0xff] %v242_v22  ;;  %245 = vst [vmem:[%s1154_s12 + $0xb8] sm:$0xff] %v244_v23  ;;  %v248_v25 = vld [vmem:[%s1149_s11 + $0x188] sm:$0xff]  ;;  %v250_v26 = vld [vmem:[%s1149_s11 + $0x190] sm:$0xff] }
  0x25   : > { %247 = vst [vmem:[%s1154_s12 + $0xc0] sm:$0xff] %v246_v24  ;;  %249 = vst [vmem:[%s1154_s12 + $0xc8] sm:$0xff] %v248_v25  ;;  %v252_v27 = vld [vmem:[%s1149_s11 + $0x198] sm:$0xff]  ;;  %v254_v28 = vld [vmem:[%s1149_s11 + $0x1c0] sm:$0xff] }
  0x26   : > { %251 = vst [vmem:[%s1154_s12 + $0xd0] sm:$0xff] %v250_v26  ;;  %v256_v29 = vld [vmem:[%s1149_s11 + $0x1c8] sm:$0xff]  ;;  %253 = vst [vmem:[%s1154_s12 + $0xd8] sm:$0xff] %v252_v27  ;;  %v258_v30 = vld [vmem:[%s1149_s11 + $0x1d0] sm:$0xff] }
  0x27   : > { %255 = vst [vmem:[%s1154_s12 + $0xe0] sm:$0xff] %v254_v28  ;;  %257 = vst [vmem:[%s1154_s12 + $0xe8] sm:$0xff] %v256_v29  ;;  %v260_v31 = vld [vmem:[%s1149_s11 + $0x1d8] sm:$0xff] }
  0x28   : > { %259 = vst [vmem:[%s1154_s12 + $0xf0] sm:$0xff] %v258_v30  ;;  %261 = vst [vmem:[%s1154_s12 + $0xf8] sm:$0xff] %v260_v31 }
  0x29 PF: > { %p902_p7 = scmp.ge.s32.totalorder %s1060_s21, 1  ;;  %p266_p8 = scmp.lt.s32.totalorder %s1060_s21, 5 }
  0x2b   : > { %p267_p9 = pnand %p902_p7, %p266_p8 }
  0x2c   : > { %s273_s13 = sand.u32 (!%p267_p9), 1, %s1036_s15   ;;  %v1062_v32 = vmov (!%p267_p9), 0   ;;  %p312_p10 = scmp.lt.s32.totalorder (!%p267_p9), %s1048_s18, 1  ;;  %v330_v11 = vld [vmem:[%s1313_s0] sm:$0xf] (!%p267_p9)  ;;  %vm523_vm0 = vcmask (!%p267_p9), 523264  }
  0x2d   : > { %270 = sbr.rel (%p267_p9) target bundleno = 461 (0x1cd), region = 47  ;;  %s903_s14 = sshll.u32 (!%p267_p9), %s273_s13, 8  ;;  %559 = vmatprep.mubr.bf16.mxu0 (!%p267_p9), %v1062_v32  ;;  %600 = vmatprep.mubr.bf16.mxu1 (!%p267_p9), %v1062_v32 }
  0x2e   : > { %s1223_s24 = scalar_lea.vmem (!%p267_p9), [#allocation2], %s903_s14  ;;  %s904_s8 = sshll.u32 (!%p267_p9), %s1044_s17, 3 }
  0x2f   : > { %v331_v33 = vld [vmem:[%s1223_s24] sm:$0xff] (!%p267_p9)  ;;  %v332_v35 = vld [vmem:[%s1223_s24 + $0x8] sm:$0xff] (!%p267_p9)  ;;  %v333_v63 = vld [vmem:[%s1223_s24 + $0x10] sm:$0xff] (!%p267_p9)  ;;  %p314_p11 = scmp.lt.s32.totalorder (!%p267_p9), %s904_s8, 15  ;;  %p945_p12 = scmp.ne.s32.totalorder (!%p267_p9), %s1044_s17, 0 }
  0x30   : > { %v335_v34 = vld [vmem:[%s1223_s24 + $0x20] sm:$0xff] (!%p267_p9)  ;;  %v336_v37 = vld [vmem:[%s1223_s24 + $0x28] sm:$0xff] (!%p267_p9)  ;;  %v337_v0 = vld [vmem:[%s1223_s24 + $0x30] sm:$0xff] (!%p267_p9) }
  0x31   : > { %v910_v36 = vcombine.high (!%p267_p9), %v331_v33, %v335_v34  ;;  %v909_v38 = vcombine.low (!%p267_p9), %v331_v33, %v335_v34  ;;  %v339_v39 = vld [vmem:[%s1223_s24 + $0x40] sm:$0xff] (!%p267_p9)  ;;  %v912_v41 = vcombine.high (!%p267_p9), %v332_v35, %v336_v37  ;;  %v911_v42 = vcombine.low (!%p267_p9), %v332_v35, %v336_v37  ;;  %v340_v44 = vld [vmem:[%s1223_s24 + $0x48] sm:$0xff] (!%p267_p9)  ;;  %v334_v1 = vld [vmem:[%s1223_s24 + $0x18] sm:$0xff] (!%p267_p9) }
  0x32   : > { %v343_v40 = vld [vmem:[%s1223_s24 + $0x60] sm:$0xff] (!%p267_p9)  ;;  %v344_v45 = vld [vmem:[%s1223_s24 + $0x68] sm:$0xff] (!%p267_p9)  ;;  %v338_v2 = vld [vmem:[%s1223_s24 + $0x38] sm:$0xff] (!%p267_p9)  ;;  %v914_v5 = vcombine.high (!%p267_p9), %v333_v63, %v337_v0  ;;  %v913_v12 = vcombine.low (!%p267_p9), %v333_v63, %v337_v0 }
  0x33   : > { %v918_v43 = vcombine.high (!%p267_p9), %v339_v39, %v343_v40  ;;  %v347_v46 = vld [vmem:[%s1223_s24 + $0x80] sm:$0xff] (!%p267_p9)  ;;  %527 = vmatprep.subr.bf16.mxu0 (!%p267_p9), %v910_v36  ;;  %v920_v47 = vcombine.high (!%p267_p9), %v340_v44, %v344_v45  ;;  %v348_v49 = vld [vmem:[%s1223_s24 + $0x88] sm:$0xff] (!%p267_p9)  ;;  %568 = vmatprep.subr.bf16.mxu1 (!%p267_p9), %v912_v41  ;;  %v917_v51 = vcombine.low (!%p267_p9), %v339_v39, %v343_v40  ;;  %v341_v7 = vld [vmem:[%s1223_s24 + $0x50] sm:$0xff] (!%p267_p9) }
  0x34   : > { %s1331_s18 = smov (!%p312_p10, %s1048_s18), 1  ;;  %v351_v48 = vld [vmem:[%s1223_s24 + $0xa0] sm:$0xff]  ;;  %v352_v50 = vld [vmem:[%s1223_s24 + $0xa8] sm:$0xff]  ;;  %528 = vmatpush1.bf16.msra.mxu0 %v909_v38  ;;  %569 = vmatpush1.bf16.msra.mxu1 %v911_v42  ;;  %v919_v52 = vcombine.low %v340_v44, %v344_v45  ;;  %v916_v6 = vcombine.high %v334_v1, %v338_v2  ;;  %v345_v8 = vld [vmem:[%s1223_s24 + $0x70] sm:$0xff]  ;;  %v915_v13 = vcombine.low %v334_v1, %v338_v2  ;;  %s1333_s8 = smov (!%p314_p11, %s904_s8), 15 }
  0x35   : > { %s907_s15 = sshll.u32 %s1331_s18, 3  ;;  %529 = vmatprep.subr.bf16.mxu0 %v918_v43  ;;  %v926_v53 = vcombine.high %v347_v46, %v351_v48  ;;  %570 = vmatprep.subr.bf16.mxu1 %v920_v47  ;;  %v928_v54 = vcombine.high %v348_v49, %v352_v50  ;;  %v355_v55 = vld [vmem:[%s1223_s24 + $0xc0] sm:$0xff]  ;;  %v356_v57 = vld [vmem:[%s1223_s24 + $0xc8] sm:$0xff]  ;;  %v925_v59 = vcombine.low %v347_v46, %v351_v48  ;;  %v342_v9 = vld [vmem:[%s1223_s24 + $0x58] sm:$0xff]  ;;  %s905_s9 = sshll.u32 %s1331_s18, 4  ;;  %vm703_vm1 = vcmask (!%p945_p12), 7168  }
  0x36   : > { %s1244_s27 = scalar_lea.vmem %s1316_s3, %s907_s15  ;;  %s1249_s5 = scalar_lea.vmem %s1317_s4, %s907_s15  ;;  %v359_v56 = vld [vmem:[%s1223_s24 + $0xe0] sm:$0xff]  ;;  %v360_v58 = vld [vmem:[%s1223_s24 + $0xe8] sm:$0xff]  ;;  %v927_v60 = vcombine.low %v348_v49, %v352_v50  ;;  %v346_v10 = vld [vmem:[%s1223_s24 + $0x78] sm:$0xff]  ;;  %v922_v14 = vcombine.high %v341_v7, %v345_v8  ;;  %v921_v20 = vcombine.low %v341_v7, %v345_v8  ;;  %v1063_v50 = vmov (!%p945_p12), 0.0  }
  0x37   : > { %v934_v61 = vcombine.high %v355_v55, %v359_v56  ;;  %v936_v62 = vcombine.high %v356_v57, %v360_v58  ;;  %v933_v3 = vcombine.low %v355_v55, %v359_v56  ;;  %v935_v4 = vcombine.low %v356_v57, %v360_v58  ;;  %v349_v16 = vld [vmem:[%s1223_s24 + $0x90] sm:$0xff]  ;;  %v350_v18 = vld [vmem:[%s1223_s24 + $0x98] sm:$0xff]  ;;  %s317_s10 = sadd.s32 %s905_s9, %s1333_s8  ;;  %704 = vst.msk [vmem:[%s1244_s27] sm:$0xff] (!%p945_p12), %vm703_vm1, %v1063_v50 }
  0x38   : > { %530 = vmatpush1.bf16.msra.mxu0 %v917_v51  ;;  %571 = vmatpush1.bf16.msra.mxu1 %v919_v52  ;;  %v924_v15 = vcombine.high %v342_v9, %v346_v10  ;;  %v353_v17 = vld [vmem:[%s1223_s24 + $0xb0] sm:$0xff]  ;;  %v354_v19 = vld [vmem:[%s1223_s24 + $0xb8] sm:$0xff]  ;;  %v923_v21 = vcombine.low %v342_v9, %v346_v10  ;;  %s906_s11 = sshll.u32 %s317_s10, 3  ;;  %705 = vst.msk [vmem:[%s1249_s5] sm:$0xff] (!%p945_p12), %vm703_vm1, %v1063_v50 }
  0x39   : > { %531 = vmatprep.subr.bf16.mxu0 %v926_v53  ;;  %572 = vmatprep.subr.bf16.mxu1 %v928_v54  ;;  %v930_v22 = vcombine.high %v349_v16, %v353_v17  ;;  %v932_v23 = vcombine.high %v350_v18, %v354_v19  ;;  %v357_v24 = vld [vmem:[%s1223_s24 + $0xd0] sm:$0xff]  ;;  %v358_v26 = vld [vmem:[%s1223_s24 + $0xd8] sm:$0xff]  ;;  %v929_v28 = vcombine.low %v349_v16, %v353_v17  ;;  %s319_s14 = scalar_lea.vmem %s1315_s2, %s906_s11 }
  0x3a   : > { %v361_v25 = vld [vmem:[%s1223_s24 + $0xf0] sm:$0xff]  ;;  %v362_v27 = vld [vmem:[%s1223_s24 + $0xf8] sm:$0xff]  ;;  %v931_v29 = vcombine.low %v350_v18, %v354_v19 }
  0x3b   : > { %v938_v30 = vcombine.high %v357_v24, %v361_v25  ;;  %v940_v31 = vcombine.high %v358_v26, %v362_v27  ;;  %v937_v33 = vcombine.low %v357_v24, %v361_v25  ;;  %v939_v34 = vcombine.low %v358_v26, %v362_v27 }
  0x3c   : > { %532 = vmatpush1.bf16.msra.mxu0 %v925_v59  ;;  %573 = vmatpush1.bf16.msra.mxu1 %v927_v60 }
  0x3d   : > { %533 = vmatprep.subr.bf16.mxu0 %v934_v61  ;;  %574 = vmatprep.subr.bf16.mxu1 %v936_v62 }
  0x40   : > { %534 = vmatpush1.bf16.msra.mxu0 %v933_v3  ;;  %575 = vmatpush1.bf16.msra.mxu1 %v935_v4 }
  0x41   : > { %609 = vmatprep.subr.bf16.mxu0 %v914_v5  ;;  %650 = vmatprep.subr.bf16.mxu1 %v916_v6 }
  0x43   : > { %941 = vmatmul.mubr.msk.bf16.vlgmr.msra.gmra.mrb[0].mxu0 %vm523_vm0, %v330_v11  ;;  %942 = vmatmul.mubr.msk.bf16.vlgmr.msra.gmra.mrb[0].mxu1 %vm523_vm0, %v330_v11 }
  0x44   : > { %610 = vmatpush1.bf16.msra.mxu0 %v913_v12  ;;  %651 = vmatpush1.bf16.msra.mxu1 %v915_v13 }
  0x45   : > { %611 = vmatprep.subr.bf16.mxu0 %v922_v14  ;;  %652 = vmatprep.subr.bf16.mxu1 %v924_v15 }
  0x46   : > { %641 = vmatprep.mubr.bf16.mxu0 %v1062_v32  ;;  %682 = vmatprep.mubr.bf16.mxu1 %v1062_v32 }
  0x48   : > { %612 = vmatpush1.bf16.msra.mxu0 %v921_v20  ;;  %653 = vmatpush1.bf16.msra.mxu1 %v923_v21 }
  0x49   : > { %613 = vmatprep.subr.bf16.mxu0 %v930_v22  ;;  %654 = vmatprep.subr.bf16.mxu1 %v932_v23 }
  0x4c   : > { %614 = vmatpush1.bf16.msra.mxu0 %v929_v28  ;;  %655 = vmatpush1.bf16.msra.mxu1 %v931_v29 }
  0x4d   : > { %615 = vmatprep.subr.bf16.mxu0 %v938_v30  ;;  %656 = vmatprep.subr.bf16.mxu1 %v940_v31 }
  0x50   : > { %616 = vmatpush1.bf16.msra.mxu0 %v937_v33  ;;  %657 = vmatpush1.bf16.msra.mxu1 %v939_v34 }
  0x53   : > { %943 = vmatmul.mubr.msk.bf16.vlgmr.msra.gmra.mrb[4].mxu0 %vm523_vm0, %v330_v11  ;;  %944 = vmatmul.mubr.msk.bf16.vlgmr.msra.gmra.mrb[4].mxu1 %vm523_vm0, %v330_v11 }
 0x116   : > { %v561_v32 = vpop.f32.mrb[0].mxu0  ;;  %v602_v35 = vpop.f32.mrb[0].mxu1 }
 0x117   : > { %691 = vst [vmem:[%s319_s14] sm:$0xff] %v561_v32  ;;  %v563_v36 = vpop.f32.mrb[1].mxu0  ;;  %693 = vst [vmem:[%s319_s14 + $0x10] sm:$0xff] %v602_v35  ;;  %v604_v37 = vpop.f32.mrb[1].mxu1 }
 0x118   : > { %692 = vst [vmem:[%s319_s14 + $0x8] sm:$0xff] %v563_v36  ;;  %v565_v38 = vpop.f32.mrb[2].mxu0  ;;  %694 = vst [vmem:[%s319_s14 + $0x18] sm:$0xff] %v604_v37  ;;  %v606_v39 = vpop.f32.mrb[2].mxu1 }
 0x119   : > { %v566_v40 = vpop.f32.mrb[3].mxu0  ;;  %v607_v41 = vpop.f32.mrb[3].mxu1 }
 0x123   : > { %702 = sbr.rel (%p945_p12) target bundleno = 298 (0x12a), region = 55 }
 0x126   : > { %v643_v42 = vpop.f32.mrb[4].mxu0  ;;  %v684_v43 = vpop.f32.mrb[4].mxu1 }
 0x127   : > { %695 = vst [vmem:[%s319_s14 + $0x20] sm:$0xff] %v643_v42  ;;  %v645_v44 = vpop.f32.mrb[5].mxu0  ;;  %697 = vst [vmem:[%s319_s14 + $0x30] sm:$0xff] %v684_v43  ;;  %v686_v45 = vpop.f32.mrb[5].mxu1 }
 0x128   : > { %696 = vst [vmem:[%s319_s14 + $0x28] sm:$0xff] %v645_v44  ;;  %v647_v46 = vpop.f32.mrb[6].mxu0  ;;  %698 = vst [vmem:[%s319_s14 + $0x38] sm:$0xff] %v686_v45  ;;  %v688_v47 = vpop.f32.mrb[6].mxu1 }
 0x129   : > { %v648_v48 = vpop.f32.mrb[7].mxu0  ;;  %v689_v49 = vpop.f32.mrb[7].mxu1 }
 0x12a PF: > { %v707_v51 = vadd.f32 %v563_v36, %v561_v32  ;;  %v720_v52 = vmul.f32 %v561_v32, %v561_v32  ;;  %v721_v53 = vmul.f32 %v563_v36, %v563_v36  ;;  %v722_v54 = vmul.f32 %v602_v35, %v602_v35  ;;  %v706_v9 = vld [vmem:[%s1244_s27] sm:$0xff] }
 0x12b   : > { %v723_v56 = vmul.f32 %v604_v37, %v604_v37  ;;  %v724_v59 = vmul.f32 %v643_v42, %v643_v42  ;;  %v725_v62 = vmul.f32 %v645_v44, %v645_v44  ;;  %v726_v1 = vmul.f32 %v684_v43, %v684_v43  ;;  %v719_v12 = vld [vmem:[%s1249_s5] sm:$0xff] }
 0x12c   : > { %v708_v55 = vadd.f32 %v707_v51, %v602_v35  ;;  %v728_v57 = vadd.f32 %v721_v53, %v720_v52  ;;  %v727_v4 = vmul.f32 %v686_v45, %v686_v45  ;;  %vm717_vm2 = vcmask 7168  }
 0x12e   : > { %v709_v58 = vadd.f32 %v708_v55, %v604_v37  ;;  %v729_v60 = vadd.f32 %v728_v57, %v722_v54 }
 0x130   : > { %v710_v61 = vadd.f32 %v709_v58, %v643_v42  ;;  %v730_v63 = vadd.f32 %v729_v60, %v723_v56 }
 0x132   : > { %v711_v0 = vadd.f32 %v710_v61, %v645_v44  ;;  %v731_v2 = vadd.f32 %v730_v63, %v724_v59 }
 0x134   : > { %v712_v3 = vadd.f32 %v711_v0, %v684_v43  ;;  %v732_v5 = vadd.f32 %v731_v2, %v725_v62 }
 0x136   : > { %v713_v6 = vadd.f32 %v712_v3, %v686_v45  ;;  %v733_v7 = vadd.f32 %v732_v5, %v726_v1 }
 0x138   : > { %714 = vadd.xlane.f32.xlu0 %v713_v6  ;;  %v734_v8 = vadd.f32 %v733_v7, %v727_v4 }
 0x13c   : > { %735 = vadd.xlane.f32.xlu0 %v734_v8 }
 0x1c5   : > { %v715_v10 = vpop.xlane.xlu0 %714 }
 0x1c6   : > { %v716_v11 = vadd.f32 %v715_v10, %v706_v9 }
 0x1c8   : > { %718 = vst.msk [vmem:[%s1244_s27] sm:$0xff] %vm717_vm2, %v716_v11 }
 0x1c9   : > { %v736_v13 = vpop.xlane.xlu0 %735 }
 0x1ca   : > { %v737_v14 = vadd.f32 %v736_v13, %v719_v12 }
 0x1cc   : > { %738 = vst.msk [vmem:[%s1249_s5] sm:$0xff] %vm717_vm2, %v737_v14 }
 0x1cd PF: > { %s15_s21 = sadd.s32 1, %s1060_s21   ;;  %s1318_s15 = smov %s1040_s16 }
 0x1ce   : > { %p12_p13 = scmp.ge.s32.totalorder %s15_s21, 6   ;;  %s1319_s16 = smov %s1140_s28 }
 0x1cf   : > { %s1320_s17 = smov %s1052_s19  ;;  %s1321_s18 = smov %s1056_s20 }
 0x1d0   : > { %s1322_s19 = smov %s1325_s22  ;;  %s1323_s20 = smov %s1329_s23 }
 0x1d1   :  { %14 = sbr.rel (!%p12_p13) target bundleno = 4 (0x4), region = 114 }

// kernel: unet_daft_forward.25
= control target key start
LH: loop header
LB: loop body
LE: loop exit
PB: predicated region body
PF: predicated region fallthrough
CT: control target
= control target key end

     0   :  { %s853_s15 = smov 0   ;;  %s855_s16 = smov 0   ;;  %s949_s0 = inlined_call_operand.vmem [shape: bf16[16,224], index: 0, kind: input, shape index: {}]   ;;  %s950_s1 = inlined_call_operand.vmem [shape: bf16[2,224,256], index: 1, kind: input, shape index: {}]   ;;  %s951_s2 = inlined_call_operand.vmem [shape: f32[2,16,256], index: 2, kind: output, shape index: {0}]   ;;  %s952_s3 = inlined_call_operand.vmem [shape: f32[2,16,1], index: 3, kind: output, shape index: {1}]   ;;  %s953_s4 = inlined_call_operand.vmem [shape: f32[2,16,1], index: 4, kind: output, shape index: {2}]  }
   0x1   :  { %s857_s17 = smov 0  }
   0x2 LB: > { %s27_s18 = sadd.s32 1, %s821_s16  ;;  %p688_p0 = scmp.ge.s32.totalorder %s825_s17, 1  ;;  %s825_s17 = sphi %s857_s17, %s15_s17   ;;  %s821_s16 = sphi %s855_s16, %s955_s16   ;;  %s817_s15 = sphi %s853_s15, %s954_s15  }
   0x3   : > { %p29_p1 = scmp.ge.s32.totalorder %s27_s18, 2  ;;  %p188_p2 = scmp.lt.s32.totalorder %s825_s17, 3 }
   0x5   : > { %s957_s18 = smov (%p29_p1, %s27_s18), 0  ;;  %p189_p3 = pnand %p688_p0, %p188_p2 }
   0x6   : > { %p233_p4 = scmp.lt.s32.totalorder (!%p189_p3), %s817_s15, 1  ;;  %vm442_vm0 = vcmask (!%p189_p3), 785408   ;;  %v802_v0 = vld [vmem:[%s949_s0 + $0x4] ss:$8 sps:$4 sm:$0xff] (!%p189_p3)   ;;  %v800_v29 = vld [vmem:[%s949_s0] ss:$8 sps:$4 sm:$0xff] (!%p189_p3)  }
   0x7   : > { %192 = sbr.rel (%p189_p3) target bundleno = 441 (0x1b9), region = 28  ;;  %726 = vmatprep.mubr.msk.bf16.mxu0 (!%p189_p3), %vm442_vm0, %v802_v0  ;;  %vm497_vm1 = vcmask (!%p189_p3), 7168   ;;  %v827_v30 = vmov (!%p189_p3), 0.0  }
   0xe   : > { %s959_s15 = smov (!%p233_p4, %s817_s15), 1 }
   0xf   : > { %s732_s21 = smul.u32 224, %s959_s15  ;;  %s730_s27 = sshll.u32 %s959_s15, 4 }
  0x10   : > { %s917_s30 = scalar_lea.vmem %s952_s3, %s730_s27  ;;  %s729_s5 = sshll.u32 %s959_s15, 5 }
  0x11   : > { %s880_s24 = scalar_lea.vmem %s950_s1, %s732_s21  ;;  %498 = vst.msk [vmem:[%s917_s30] sm:$0xff] %vm497_vm1, %v827_v30  ;;  %499 = vst.msk [vmem:[%s917_s30 + $0x8] sm:$0xff] %vm497_vm1, %v827_v30  ;;  %s250_s8 = scalar_lea.vmem %s951_s2, %s729_s5 }
  0x12   : > { %v758_v1 = vld [vmem:[%s880_s24 + $0x4] ss:$8 sps:$4 sm:$0xff]   ;;  %v760_v2 = vld [vmem:[%s880_s24] ss:$8 sps:$4 sm:$0xff]   ;;  %v761_v3 = vld [vmem:[%s880_s24 + $0x14] ss:$8 sps:$4 sm:$0xff]   ;;  %s261_s11 = scalar_lea.vmem %s953_s4, %s730_s27 }
  0x13   : > { %446 = vmatprep.subr.bf16.mxu0 %v758_v1  ;;  %v763_v4 = vld [vmem:[%s880_s24 + $0x10] ss:$8 sps:$4 sm:$0xff]   ;;  %v764_v5 = vld [vmem:[%s880_s24 + $0x24] ss:$8 sps:$4 sm:$0xff]   ;;  %v766_v6 = vld [vmem:[%s880_s24 + $0x20] ss:$8 sps:$4 sm:$0xff]  }
  0x14   : > { %447 = vmatpush1.bf16.msra.mxu0 %v760_v2  ;;  %v767_v7 = vld [vmem:[%s880_s24 + $0x34] ss:$8 sps:$4 sm:$0xff]   ;;  %v769_v8 = vld [vmem:[%s880_s24 + $0x30] ss:$8 sps:$4 sm:$0xff]   ;;  %v770_v9 = vld [vmem:[%s880_s24 + $0x44] ss:$8 sps:$4 sm:$0xff]  }
  0x15   : > { %448 = vmatprep.subr.bf16.mxu0 %v761_v3  ;;  %v772_v10 = vld [vmem:[%s880_s24 + $0x40] ss:$8 sps:$4 sm:$0xff]   ;;  %v773_v11 = vld [vmem:[%s880_s24 + $0x54] ss:$8 sps:$4 sm:$0xff]   ;;  %v775_v12 = vld [vmem:[%s880_s24 + $0x50] ss:$8 sps:$4 sm:$0xff]  }
  0x16   : > { %v776_v13 = vld [vmem:[%s880_s24 + $0x64] ss:$8 sps:$4 sm:$0xff]   ;;  %v778_v14 = vld [vmem:[%s880_s24 + $0x60] ss:$8 sps:$4 sm:$0xff]   ;;  %v779_v15 = vld [vmem:[%s880_s24 + $0x74] ss:$8 sps:$4 sm:$0xff]  }
  0x17   : > { %v781_v16 = vld [vmem:[%s880_s24 + $0x70] ss:$8 sps:$4 sm:$0xff]   ;;  %v782_v17 = vld [vmem:[%s880_s24 + $0x84] ss:$8 sps:$4 sm:$0xff]   ;;  %v784_v18 = vld [vmem:[%s880_s24 + $0x80] ss:$8 sps:$4 sm:$0xff]  }
  0x18   : > { %449 = vmatpush1.bf16.msra.mxu0 %v763_v4  ;;  %v785_v19 = vld [vmem:[%s880_s24 + $0x94] ss:$8 sps:$4 sm:$0xff]   ;;  %v787_v20 = vld [vmem:[%s880_s24 + $0x90] ss:$8 sps:$4 sm:$0xff]   ;;  %v788_v21 = vld [vmem:[%s880_s24 + $0xa4] ss:$8 sps:$4 sm:$0xff]  }
  0x19   : > { %450 = vmatprep.subr.bf16.mxu0 %v764_v5  ;;  %v790_v22 = vld [vmem:[%s880_s24 + $0xa0] ss:$8 sps:$4 sm:$0xff]   ;;  %v791_v23 = vld [vmem:[%s880_s24 + $0xb4] ss:$8 sps:$4 sm:$0xff]   ;;  %v793_v24 = vld [vmem:[%s880_s24 + $0xb0] ss:$8 sps:$4 sm:$0xff]  }
  0x1a   : > { %v794_v25 = vld [vmem:[%s880_s24 + $0xc4] ss:$8 sps:$4 sm:$0xff]   ;;  %v796_v26 = vld [vmem:[%s880_s24 + $0xc0] ss:$8 sps:$4 sm:$0xff]   ;;  %v797_v27 = vld [vmem:[%s880_s24 + $0xd4] ss:$8 sps:$4 sm:$0xff]  }
  0x1b   : > { %v799_v28 = vld [vmem:[%s880_s24 + $0xd0] ss:$8 sps:$4 sm:$0xff]   ;;  %500 = vst.msk [vmem:[%s261_s11] sm:$0xff] %vm497_vm1, %v827_v30  ;;  %501 = vst.msk [vmem:[%s261_s11 + $0x8] sm:$0xff] %vm497_vm1, %v827_v30  ;;  %v502_v43 = vld [vmem:[%s917_s30] sm:$0xff] }
  0x1c   : > { %451 = vmatpush1.bf16.msra.mxu0 %v766_v6  ;;  %v503_v48 = vld [vmem:[%s917_s30 + $0x8] sm:$0xff] }
  0x1d   : > { %452 = vmatprep.subr.bf16.mxu0 %v767_v7 }
  0x20   : > { %453 = vmatpush1.bf16.msra.mxu0 %v769_v8 }
  0x21   : > { %454 = vmatprep.subr.bf16.mxu0 %v770_v9 }
  0x22   : > { %v515_v45 = vld [vmem:[%s261_s11] sm:$0xff]  ;;  %v516_v51 = vld [vmem:[%s261_s11 + $0x8] sm:$0xff] }
  0x24   : > { %455 = vmatpush1.bf16.msra.mxu0 %v772_v10 }
  0x25   : > { %456 = vmatprep.subr.bf16.mxu0 %v773_v11 }
  0x28   : > { %457 = vmatpush1.bf16.msra.mxu0 %v775_v12 }
  0x29   : > { %458 = vmatprep.subr.bf16.mxu0 %v776_v13 }
  0x2c   : > { %459 = vmatpush1.bf16.msra.mxu0 %v778_v14 }
  0x2d   : > { %460 = vmatprep.subr.bf16.mxu0 %v779_v15 }
  0x30   : > { %461 = vmatpush1.bf16.msra.mxu0 %v781_v16 }
  0x31   : > { %462 = vmatprep.subr.bf16.mxu0 %v782_v17 }
  0x34   : > { %463 = vmatpush1.bf16.msra.mxu0 %v784_v18 }
  0x35   : > { %464 = vmatprep.subr.bf16.mxu0 %v785_v19 }
  0x38   : > { %465 = vmatpush1.bf16.msra.mxu0 %v787_v20 }
  0x39   : > { %466 = vmatprep.subr.bf16.mxu0 %v788_v21 }
  0x3c   : > { %467 = vmatpush1.bf16.msra.mxu0 %v790_v22 }
  0x3d   : > { %468 = vmatprep.subr.bf16.mxu0 %v791_v23 }
  0x40   : > { %469 = vmatpush1.bf16.msra.mxu0 %v793_v24 }
  0x41   : > { %470 = vmatprep.subr.bf16.mxu0 %v794_v25 }
  0x44   : > { %471 = vmatpush1.bf16.msra.mxu0 %v796_v26 }
  0x45   : > { %472 = vmatprep.subr.bf16.mxu0 %v797_v27 }
  0x48   : > { %473 = vmatpush1.bf16.msra.mxu0 %v799_v28 }
  0x4b   : > { %479 = vmatmul.mubr.bf16.vlgmr.msra.gmra.mrb[0].mxu0 %v800_v29 }
 0x11e   : > { %v480_v31 = vpop.f32.mrb[0].mxu0 }
 0x11f   : > { %489 = vst [vmem:[%s250_s8] sm:$0xff] %v480_v31  ;;  %v482_v32 = vpop.f32.mrb[1].mxu0  ;;  %v517_v33 = vmul.f32 %v480_v31, %v480_v31 }
 0x120   : > { %490 = vst [vmem:[%s250_s8 + $0x8] sm:$0xff] %v482_v32  ;;  %v484_v34 = vpop.f32.mrb[2].mxu0  ;;  %v504_v35 = vadd.f32 %v482_v32, %v480_v31  ;;  %v518_v36 = vmul.f32 %v482_v32, %v482_v32 }
 0x121   : > { %491 = vst [vmem:[%s250_s8 + $0x10] sm:$0xff] %v484_v34  ;;  %v486_v37 = vpop.f32.mrb[3].mxu0  ;;  %v519_v38 = vmul.f32 %v484_v34, %v484_v34 }
 0x122   : > { %492 = vst [vmem:[%s250_s8 + $0x18] sm:$0xff] %v486_v37  ;;  %v520_v39 = vmul.f32 %v486_v37, %v486_v37  ;;  %505 = vadd.xlane.f32.xlu0 %v504_v35  ;;  %v521_v40 = vadd.f32 %v518_v36, %v517_v33  ;;  %v507_v41 = vadd.f32 %v486_v37, %v484_v34 }
 0x124   : > { %522 = vadd.xlane.f32.xlu1 %v521_v40  ;;  %v524_v42 = vadd.f32 %v520_v39, %v519_v38 }
 0x126   : > { %508 = vadd.xlane.f32.xlu0 %v507_v41 }
 0x128   : > { %525 = vadd.xlane.f32.xlu1 %v524_v42 }
 0x1af   : > { %v506_v44 = vpop.xlane.xlu0 %505 }
 0x1b0   : > { %v510_v46 = vadd.f32 %v506_v44, %v502_v43 }
 0x1b1   : > { %v523_v47 = vpop.xlane.xlu1 %522 }
 0x1b2   : > { %513 = vst.msk [vmem:[%s917_s30] sm:$0xff] %vm497_vm1, %v510_v46  ;;  %v527_v49 = vadd.f32 %v523_v47, %v515_v45 }
 0x1b3   : > { %v509_v50 = vpop.xlane.xlu0 %508 }
 0x1b4   : > { %529 = vst.msk [vmem:[%s261_s11] sm:$0xff] %vm497_vm1, %v527_v49  ;;  %v511_v52 = vadd.f32 %v509_v50, %v503_v48 }
 0x1b5   : > { %v526_v53 = vpop.xlane.xlu1 %525 }
 0x1b6   : > { %514 = vst.msk [vmem:[%s917_s30 + $0x8] sm:$0xff] %vm497_vm1, %v511_v52  ;;  %v528_v54 = vadd.f32 %v526_v53, %v516_v51 }
 0x1b8   : > { %530 = vst.msk [vmem:[%s261_s11 + $0x8] sm:$0xff] %vm497_vm1, %v528_v54 }
 0x1b9 PF: > { %s15_s17 = sadd.s32 1, %s825_s17   ;;  %s954_s15 = smov %s821_s16 }
 0x1ba   : > { %p12_p5 = scmp.ge.s32.totalorder %s15_s17, 4   ;;  %s955_s16 = smov %s957_s18 }
 0x1bc   :  { %14 = sbr.rel (!%p12_p5) target bundleno = 2 (0x2), region = 86 }

// kernel: unet_daft_forward.26
= control target key start
LH: loop header
LB: loop body
LE: loop exit
PB: predicated region body
PF: predicated region fallthrough
CT: control target
= control target key end

     0   :  { %s560_s17 = smov 0   ;;  %s562_s18 = smov 0   ;;  %s603_s0 = inlined_call_operand.vmem [shape: f32[2,16,256], index: 0, kind: input, shape index: {}]   ;;  %s604_s1 = inlined_call_operand.vmem [shape: f32[2,16,1], index: 1, kind: input, shape index: {}]   ;;  %s605_s2 = inlined_call_operand.vmem [shape: f32[2,16,1], index: 2, kind: input, shape index: {}]   ;;  %s606_s3 = inlined_call_operand.<no memory space> [shape: f32[1], index: 3, kind: input, shape index: {}]   ;;  %s607_s4 = inlined_call_operand.vmem [shape: f32[2,16,256], index: 4, kind: output, shape index: {}]  }
   0x1   :  { %9 = sst [smem:[#allocation2]] %s606_s3  ;;  %s564_s19 = smov 0  }
   0x2 LB: > { %s27_s3 = sadd.s32 1, %s525_s18  ;;  %p461_p0 = scmp.ge.s32.totalorder %s529_s19, 1  ;;  %s529_s19 = sphi %s564_s19, %s15_s19   ;;  %s525_s18 = sphi %s562_s18, %s609_s18   ;;  %s521_s17 = sphi %s560_s17, %s608_s17  }
   0x3   : > { %p29_p1 = scmp.ge.s32.totalorder %s27_s3, 2  ;;  %p204_p2 = scmp.lt.s32.totalorder %s529_s19, 3 }
   0x5   : > { %s611_s3 = smov (%p29_p1, %s27_s3), 0  ;;  %p205_p3 = pnand %p461_p0, %p204_p2 }
   0x6   : > { %p249_p4 = scmp.lt.s32.totalorder (!%p205_p3), %s521_s17, 1  ;;  %v531_v0 = vmov (!%p205_p3), 0   ;;  %s328_s5 = sld [smem:[#allocation2]] (!%p205_p3) }
   0x7   : > { %208 = sbr.rel (%p205_p3) target bundleno = 177 (0xb1), region = 36  ;;  %501 = vset.pattern.permute.xlu0 (!%p205_p3), %v531_v0  ;;  %502 = vset.pattern.permute.xlu1 (!%p205_p3), %v531_v0 }
   0xc   : > { %v333_v27 = vstv (!%p205_p3), %s328_s5 }
   0xe   : > { %s613_s17 = smov (!%p249_p4, %s521_s17), 1 }
   0xf   : > { %s473_s20 = sshll.u32 %s613_s17, 4  ;;  %s472_s27 = sshll.u32 %s613_s17, 5 }
  0x10   : > { %s262_s23 = scalar_lea.vmem %s604_s1, %s473_s20  ;;  %s267_s26 = scalar_lea.vmem %s605_s2, %s473_s20 }
  0x11   : > { %v282_v1 = vld [vmem:[%s262_s23] sm:$0xff]  ;;  %v283_v2 = vld [vmem:[%s262_s23 + $0x8] sm:$0xff]  ;;  %s256_s30 = scalar_lea.vmem %s603_s0, %s472_s27  ;;  %s276_s8 = scalar_lea.vmem %s607_s4, %s472_s27 }
  0x12   : > { %v286_v3 = vld [vmem:[%s267_s26] sm:$0xff]  ;;  %v284_v4 = vmul.f32 0.0046296297, %v282_v1  ;;  %v287_v5 = vld [vmem:[%s267_s26 + $0x8] sm:$0xff]  ;;  %v285_v8 = vmul.f32 0.0046296297, %v283_v2 }
  0x13   : > { %v288_v6 = vmul.f32 0.0046296297, %v286_v3  ;;  %v289_v7 = vmul.f32 0.0046296297, %v287_v5  ;;  %v278_v20 = vld [vmem:[%s256_s30] sm:$0xff]  ;;  %v279_v21 = vld [vmem:[%s256_s30 + $0x8] sm:$0xff] }
  0x14   : > { %298 = vperm.xlu0 %501, %v284_v4   ;;  %v290_v9 = vmul.f32 %v284_v4, %v284_v4  ;;  %v291_v10 = vmul.f32 %v285_v8, %v285_v8  ;;  %v280_v25 = vld [vmem:[%s256_s30 + $0x10] sm:$0xff]  ;;  %v281_v26 = vld [vmem:[%s256_s30 + $0x18] sm:$0xff] }
  0x16   : > { %v292_v11 = vsub.f32 %v288_v6, %v290_v9  ;;  %v293_v12 = vsub.f32 %v289_v7, %v291_v10 }
  0x18   : > { %v294_v13 = vmax.f32 %v292_v11, 0.0  ;;  %303 = vperm.xlu0 %501, %v285_v8   ;;  %v295_v14 = vmax.f32 %v293_v12, 0.0 }
  0x1a   : > { %v310_v15 = vadd.f32 1e-05, %v294_v13  ;;  %v311_v16 = vadd.f32 1e-05, %v295_v14 }
  0x1c   : > { %503 = vrsqrt.f32 %v310_v15 }
  0x1d   : > { %505 = vrsqrt.f32 %v311_v16 }
  0x26   : > { %v504_v17 = vpop.eup %503 }
  0x27   : > { %316 = vperm.xlu1 %502, %v504_v17   ;;  %v506_v18 = vpop.eup %505 }
  0x2b   : > { %321 = vperm.xlu1 %502, %v506_v18  }
  0x93   : > { %v299_v19 = vpop.permute.xlu0 %298 }
  0x94   : > { %v306_v22 = vsub.f32 %v278_v20, %v299_v19  ;;  %v307_v23 = vsub.f32 %v279_v21, %v299_v19 }
  0x97   : > { %v304_v24 = vpop.permute.xlu0 %303 }
  0x98   : > { %v308_v31 = vsub.f32 %v280_v25, %v304_v24  ;;  %v309_v32 = vsub.f32 %v281_v26, %v304_v24 }
  0xa6   : > { %v317_v28 = vpop.permute.xlu1 %316 }
  0xa7   : > { %v324_v29 = vmul.f32 %v317_v28, %v306_v22  ;;  %v325_v30 = vmul.f32 %v317_v28, %v307_v23 }
  0xa9   : > { %vm329_vm0 = vcmp.ge.f32.partialorder %v324_v29, 0.0  ;;  %vm330_vm1 = vcmp.ge.f32.partialorder %v325_v30, 0.0  ;;  %v334_v33 = vmul.f32 %v333_v27, %v324_v29  ;;  %v335_v34 = vmul.f32 %v333_v27, %v325_v30 }
  0xaa   : > { %v322_v35 = vpop.permute.xlu1 %321 }
  0xab   : > { %v338_v36 = vsel %vm329_vm0, %v324_v29, %v334_v33  ;;  %v339_v37 = vsel %vm330_vm1, %v325_v30, %v335_v34  ;;  %v326_v38 = vmul.f32 %v322_v35, %v308_v31  ;;  %v327_v39 = vmul.f32 %v322_v35, %v309_v32 }
  0xac   : > { %342 = vst [vmem:[%s276_s8] sm:$0xff] %v338_v36  ;;  %343 = vst [vmem:[%s276_s8 + $0x8] sm:$0xff] %v339_v37 }
  0xad   : > { %vm331_vm2 = vcmp.ge.f32.partialorder %v326_v38, 0.0  ;;  %vm332_vm3 = vcmp.ge.f32.partialorder %v327_v39, 0.0  ;;  %v336_v40 = vmul.f32 %v333_v27, %v326_v38  ;;  %v337_v41 = vmul.f32 %v333_v27, %v327_v39 }
  0xaf   : > { %v340_v42 = vsel %vm331_vm2, %v326_v38, %v336_v40  ;;  %v341_v43 = vsel %vm332_vm3, %v327_v39, %v337_v41 }
  0xb0   : > { %344 = vst [vmem:[%s276_s8 + $0x10] sm:$0xff] %v340_v42  ;;  %345 = vst [vmem:[%s276_s8 + $0x18] sm:$0xff] %v341_v43 }
  0xb1 PF: > { %s15_s19 = sadd.s32 1, %s529_s19   ;;  %s608_s17 = smov %s525_s18 }
  0xb2   : > { %p12_p5 = scmp.ge.s32.totalorder %s15_s19, 4   ;;  %s609_s18 = smov %s611_s3 }
  0xb4   :  { %14 = sbr.rel (!%p12_p5) target bundleno = 2 (0x2), region = 72 }

// kernel: unet_daft_forward.27
= control target key start
LH: loop header
LB: loop body
LE: loop exit
PB: predicated region body
PF: predicated region fallthrough
CT: control target
= control target key end

     0   :  { %s1235_s15 = smov 0   ;;  %s1237_s16 = smov 0   ;;  %s1427_s0 = inlined_call_operand.vmem [shape: bf16[32,432], index: 0, kind: input, shape index: {}]   ;;  %s1428_s1 = inlined_call_operand.vmem [shape: bf16[2,432,256], index: 1, kind: input, shape index: {}]   ;;  %s1429_s2 = inlined_call_operand.vmem [shape: f32[2,32,256], index: 2, kind: output, shape index: {0}]   ;;  %s1430_s3 = inlined_call_operand.vmem [shape: f32[2,32,1], index: 3, kind: output, shape index: {1}]   ;;  %s1431_s4 = inlined_call_operand.vmem [shape: f32[2,32,1], index: 4, kind: output, shape index: {2}]  }
   0x1   :  { %s1239_s17 = smov 0  }
   0x2 LB: > { %s27_s18 = sadd.s32 1, %s1203_s16  ;;  %p981_p0 = scmp.ge.s32.totalorder %s1207_s17, 1  ;;  %s1207_s17 = sphi %s1239_s17, %s15_s17   ;;  %s1203_s16 = sphi %s1237_s16, %s1433_s16   ;;  %s1199_s15 = sphi %s1235_s15, %s1432_s15  }
   0x3   : > { %p29_p1 = scmp.ge.s32.totalorder %s27_s18, 2  ;;  %p188_p2 = scmp.lt.s32.totalorder %s1207_s17, 3 }
   0x5   : > { %s1435_s18 = smov (%p29_p1, %s27_s18), 0  ;;  %p189_p3 = pnand %p981_p0, %p188_p2 }
   0x6   : > { %p233_p4 = scmp.lt.s32.totalorder (!%p189_p3), %s1199_s15, 1  ;;  %vm633_vm0 = vcmask (!%p189_p3), 392192   ;;  %v1174_v0 = vld [vmem:[%s1427_s0 + $0xc] ss:$16 sps:$4 sm:$0xff] (!%p189_p3)   ;;  %v1178_v1 = vld [vmem:[%s1427_s0 + $0x4] ss:$16 sps:$4 sm:$0xff] (!%p189_p3)  }
   0x7   : > { %192 = sbr.rel (%p189_p3) target bundleno = 461 (0x1cd), region = 28  ;;  %1051 = vmatprep.mubr.msk.bf16.mxu0 (!%p189_p3), %vm633_vm0, %v1174_v0  ;;  %672 = vmatprep.mubr.bf16.mxu1 (!%p189_p3), %v1178_v1  ;;  %v1172_v51 = vld [vmem:[%s1427_s0 + $0x8] ss:$16 sps:$4 sm:$0xff] (!%p189_p3)   ;;  %v1179_v52 = vld [vmem:[%s1427_s0 + $0x2c] ss:$16 sps:$4 sm:$0xff] (!%p189_p3)   ;;  %vm758_vm1 = vcmask (!%p189_p3), 7168  }
   0x8   : > { %v1181_v57 = vld [vmem:[%s1427_s0 + $0x28] ss:$16 sps:$4 sm:$0xff] (!%p189_p3)   ;;  %v1176_v59 = vld [vmem:[%s1427_s0] ss:$16 sps:$4 sm:$0xff] (!%p189_p3)   ;;  %v1182_v60 = vld [vmem:[%s1427_s0 + $0x24] ss:$16 sps:$4 sm:$0xff] (!%p189_p3)  }
   0x9   : > { %v1184_v61 = vld [vmem:[%s1427_s0 + $0x20] ss:$16 sps:$4 sm:$0xff] (!%p189_p3)   ;;  %v1209_v62 = vmov (!%p189_p3), 0.0  }
   0xe   : > { %s1437_s15 = smov (!%p233_p4, %s1199_s15), 1 }
   0xf   : > { %s1066_s23 = smul.u32 432, %s1437_s15  ;;  %s1056_s13 = sshll.u32 %s1437_s15, 5 }
  0x10   : > { %s1347_s20 = scalar_lea.vmem %s1430_s3, %s1056_s13  ;;  %s1055_s21 = sshll.u32 %s1437_s15, 6 }
  0x11   : > { %s1266_s26 = scalar_lea.vmem %s1428_s1, %s1066_s23  ;;  %759 = vst.msk [vmem:[%s1347_s20] sm:$0xff] %vm758_vm1, %v1209_v62  ;;  %760 = vst.msk [vmem:[%s1347_s20 + $0x8] sm:$0xff] %vm758_vm1, %v1209_v62  ;;  %s1365_s24 = scalar_lea.vmem %s1429_s2, %s1055_s21 }
  0x12   : > { %v1092_v2 = vld [vmem:[%s1266_s26 + $0x4] ss:$8 sps:$4 sm:$0xff]   ;;  %v1094_v3 = vld [vmem:[%s1266_s26] ss:$8 sps:$4 sm:$0xff]   ;;  %v1095_v4 = vld [vmem:[%s1266_s26 + $0x14] ss:$8 sps:$4 sm:$0xff]   ;;  %s1380_s27 = scalar_lea.vmem %s1431_s4, %s1056_s13 }
  0x13   : > { %640 = vmatprep.subr.bf16.mxu1 %v1092_v2  ;;  %v1097_v5 = vld [vmem:[%s1266_s26 + $0x10] ss:$8 sps:$4 sm:$0xff]   ;;  %v1098_v6 = vld [vmem:[%s1266_s26 + $0x24] ss:$8 sps:$4 sm:$0xff]   ;;  %v1100_v7 = vld [vmem:[%s1266_s26 + $0x20] ss:$8 sps:$4 sm:$0xff]  }
  0x14   : > { %641 = vmatpush1.bf16.msra.mxu1 %v1094_v3  ;;  %v1107_v8 = vld [vmem:[%s1266_s26 + $0x104] ss:$8 sps:$4 sm:$0xff]   ;;  %v1109_v9 = vld [vmem:[%s1266_s26 + $0x100] ss:$8 sps:$4 sm:$0xff]   ;;  %v1101_v10 = vld [vmem:[%s1266_s26 + $0x34] ss:$8 sps:$4 sm:$0xff]  }
  0x15   : > { %642 = vmatprep.subr.bf16.mxu1 %v1095_v4  ;;  %693 = vmatprep.subr.bf16.mxu0 %v1107_v8  ;;  %v1113_v11 = vld [vmem:[%s1266_s26 + $0x114] ss:$8 sps:$4 sm:$0xff]   ;;  %v1115_v12 = vld [vmem:[%s1266_s26 + $0x110] ss:$8 sps:$4 sm:$0xff]   ;;  %v1104_v14 = vld [vmem:[%s1266_s26 + $0x44] ss:$8 sps:$4 sm:$0xff]  }
  0x16   : > { %694 = vmatpush1.bf16.msra.mxu0 %v1109_v9  ;;  %v1103_v13 = vld [vmem:[%s1266_s26 + $0x30] ss:$8 sps:$4 sm:$0xff]   ;;  %v1119_v15 = vld [vmem:[%s1266_s26 + $0x124] ss:$8 sps:$4 sm:$0xff]   ;;  %v1121_v16 = vld [vmem:[%s1266_s26 + $0x120] ss:$8 sps:$4 sm:$0xff]  }
  0x17   : > { %695 = vmatprep.subr.bf16.mxu0 %v1113_v11  ;;  %v1106_v17 = vld [vmem:[%s1266_s26 + $0x40] ss:$8 sps:$4 sm:$0xff]   ;;  %v1125_v18 = vld [vmem:[%s1266_s26 + $0x134] ss:$8 sps:$4 sm:$0xff]   ;;  %v1127_v20 = vld [vmem:[%s1266_s26 + $0x130] ss:$8 sps:$4 sm:$0xff]  }
  0x18   : > { %643 = vmatpush1.bf16.msra.mxu1 %v1097_v5  ;;  %v1110_v19 = vld [vmem:[%s1266_s26 + $0x54] ss:$8 sps:$4 sm:$0xff]   ;;  %v1112_v21 = vld [vmem:[%s1266_s26 + $0x50] ss:$8 sps:$4 sm:$0xff]   ;;  %v1131_v22 = vld [vmem:[%s1266_s26 + $0x144] ss:$8 sps:$4 sm:$0xff]  }
  0x19   : > { %644 = vmatprep.subr.bf16.mxu1 %v1098_v6  ;;  %v1116_v23 = vld [vmem:[%s1266_s26 + $0x64] ss:$8 sps:$4 sm:$0xff]   ;;  %v1133_v24 = vld [vmem:[%s1266_s26 + $0x140] ss:$8 sps:$4 sm:$0xff]   ;;  %v1137_v26 = vld [vmem:[%s1266_s26 + $0x154] ss:$8 sps:$4 sm:$0xff]  }
  0x1a   : > { %696 = vmatpush1.bf16.msra.mxu0 %v1115_v12  ;;  %v1118_v25 = vld [vmem:[%s1266_s26 + $0x60] ss:$8 sps:$4 sm:$0xff]   ;;  %v1122_v27 = vld [vmem:[%s1266_s26 + $0x74] ss:$8 sps:$4 sm:$0xff]   ;;  %v1139_v28 = vld [vmem:[%s1266_s26 + $0x150] ss:$8 sps:$4 sm:$0xff]  }
  0x1b   : > { %697 = vmatprep.subr.bf16.mxu0 %v1119_v15  ;;  %v1124_v29 = vld [vmem:[%s1266_s26 + $0x70] ss:$8 sps:$4 sm:$0xff]   ;;  %v1143_v30 = vld [vmem:[%s1266_s26 + $0x164] ss:$8 sps:$4 sm:$0xff]   ;;  %v1145_v32 = vld [vmem:[%s1266_s26 + $0x160] ss:$8 sps:$4 sm:$0xff]  }
  0x1c   : > { %645 = vmatpush1.bf16.msra.mxu1 %v1100_v7  ;;  %v1128_v31 = vld [vmem:[%s1266_s26 + $0x84] ss:$8 sps:$4 sm:$0xff]   ;;  %v1130_v33 = vld [vmem:[%s1266_s26 + $0x80] ss:$8 sps:$4 sm:$0xff]   ;;  %v1149_v34 = vld [vmem:[%s1266_s26 + $0x174] ss:$8 sps:$4 sm:$0xff]  }
  0x1d   : > { %646 = vmatprep.subr.bf16.mxu1 %v1101_v10  ;;  %v1134_v35 = vld [vmem:[%s1266_s26 + $0x94] ss:$8 sps:$4 sm:$0xff]   ;;  %v1151_v36 = vld [vmem:[%s1266_s26 + $0x170] ss:$8 sps:$4 sm:$0xff]   ;;  %v1155_v38 = vld [vmem:[%s1266_s26 + $0x184] ss:$8 sps:$4 sm:$0xff]  }
  0x1e   : > { %698 = vmatpush1.bf16.msra.mxu0 %v1121_v16  ;;  %v1136_v37 = vld [vmem:[%s1266_s26 + $0x90] ss:$8 sps:$4 sm:$0xff]   ;;  %v1140_v39 = vld [vmem:[%s1266_s26 + $0xa4] ss:$8 sps:$4 sm:$0xff]   ;;  %v1157_v40 = vld [vmem:[%s1266_s26 + $0x180] ss:$8 sps:$4 sm:$0xff]  }
  0x1f   : > { %699 = vmatprep.subr.bf16.mxu0 %v1125_v18  ;;  %v1142_v41 = vld [vmem:[%s1266_s26 + $0xa0] ss:$8 sps:$4 sm:$0xff]   ;;  %v1161_v42 = vld [vmem:[%s1266_s26 + $0x194] ss:$8 sps:$4 sm:$0xff]   ;;  %v1163_v44 = vld [vmem:[%s1266_s26 + $0x190] ss:$8 sps:$4 sm:$0xff]  }
  0x20   : > { %647 = vmatpush1.bf16.msra.mxu1 %v1103_v13  ;;  %v1146_v43 = vld [vmem:[%s1266_s26 + $0xb4] ss:$8 sps:$4 sm:$0xff]   ;;  %v1148_v45 = vld [vmem:[%s1266_s26 + $0xb0] ss:$8 sps:$4 sm:$0xff]   ;;  %v1167_v46 = vld [vmem:[%s1266_s26 + $0x1a4] ss:$8 sps:$4 sm:$0xff]  }
  0x21   : > { %648 = vmatprep.subr.bf16.mxu1 %v1104_v14  ;;  %v1152_v47 = vld [vmem:[%s1266_s26 + $0xc4] ss:$8 sps:$4 sm:$0xff]   ;;  %v1169_v48 = vld [vmem:[%s1266_s26 + $0x1a0] ss:$8 sps:$4 sm:$0xff]   ;;  %v1158_v50 = vld [vmem:[%s1266_s26 + $0xd4] ss:$8 sps:$4 sm:$0xff]  }
  0x22   : > { %700 = vmatpush1.bf16.msra.mxu0 %v1127_v20  ;;  %v1154_v49 = vld [vmem:[%s1266_s26 + $0xc0] ss:$8 sps:$4 sm:$0xff]   ;;  %v1160_v53 = vld [vmem:[%s1266_s26 + $0xd0] ss:$8 sps:$4 sm:$0xff]   ;;  %v1164_v54 = vld [vmem:[%s1266_s26 + $0xe4] ss:$8 sps:$4 sm:$0xff]  }
  0x23   : > { %701 = vmatprep.subr.bf16.mxu0 %v1131_v22  ;;  %v1166_v55 = vld [vmem:[%s1266_s26 + $0xe0] ss:$8 sps:$4 sm:$0xff]   ;;  %v1170_v56 = vld [vmem:[%s1266_s26 + $0xf4] ss:$8 sps:$4 sm:$0xff]   ;;  %v1175_v58 = vld [vmem:[%s1266_s26 + $0xf0] ss:$8 sps:$4 sm:$0xff]  }
  0x24   : > { %649 = vmatpush1.bf16.msra.mxu1 %v1106_v17  ;;  %761 = vst.msk [vmem:[%s1347_s20 + $0x10] sm:$0xff] %vm758_vm1, %v1209_v62  ;;  %762 = vst.msk [vmem:[%s1347_s20 + $0x18] sm:$0xff] %vm758_vm1, %v1209_v62 }
  0x25   : > { %650 = vmatprep.subr.bf16.mxu1 %v1110_v19  ;;  %764 = vst.msk [vmem:[%s1380_s27 + $0x8] sm:$0xff] %vm758_vm1, %v1209_v62  ;;  %763 = vst.msk [vmem:[%s1380_s27] sm:$0xff] %vm758_vm1, %v1209_v62 }
  0x26   : > { %702 = vmatpush1.bf16.msra.mxu0 %v1133_v24  ;;  %765 = vst.msk [vmem:[%s1380_s27 + $0x10] sm:$0xff] %vm758_vm1, %v1209_v62  ;;  %766 = vst.msk [vmem:[%s1380_s27 + $0x18] sm:$0xff] %vm758_vm1, %v1209_v62 }
  0x27   : > { %703 = vmatprep.subr.bf16.mxu0 %v1137_v26 }
  0x28   : > { %651 = vmatpush1.bf16.msra.mxu1 %v1112_v21 }
  0x29   : > { %652 = vmatprep.subr.bf16.mxu1 %v1116_v23 }
  0x2a   : > { %704 = vmatpush1.bf16.msra.mxu0 %v1139_v28 }
  0x2b   : > { %705 = vmatprep.subr.bf16.mxu0 %v1143_v30 }
  0x2c   : > { %653 = vmatpush1.bf16.msra.mxu1 %v1118_v25 }
  0x2d   : > { %654 = vmatprep.subr.bf16.mxu1 %v1122_v27 }
  0x2e   : > { %706 = vmatpush1.bf16.msra.mxu0 %v1145_v32 }
  0x2f   : > { %707 = vmatprep.subr.bf16.mxu0 %v1149_v34 }
  0x30   : > { %655 = vmatpush1.bf16.msra.mxu1 %v1124_v29 }
  0x31   : > { %656 = vmatprep.subr.bf16.mxu1 %v1128_v31 }
  0x32   : > { %708 = vmatpush1.bf16.msra.mxu0 %v1151_v36 }
  0x33   : > { %709 = vmatprep.subr.bf16.mxu0 %v1155_v38 }
  0x34   : > { %657 = vmatpush1.bf16.msra.mxu1 %v1130_v33 }
  0x35   : > { %658 = vmatprep.subr.bf16.mxu1 %v1134_v35 }
  0x36   : > { %710 = vmatpush1.bf16.msra.mxu0 %v1157_v40 }
  0x37   : > { %711 = vmatprep.subr.bf16.mxu0 %v1161_v42  ;;  %v793_v42 = vld [vmem:[%s1380_s27 + $0x8] sm:$0xff] }
  0x38   : > { %659 = vmatpush1.bf16.msra.mxu1 %v1136_v37 }
  0x39   : > { %660 = vmatprep.subr.bf16.mxu1 %v1140_v39  ;;  %v767_v39 = vld [vmem:[%s1347_s20] sm:$0xff] }
  0x3a   : > { %712 = vmatpush1.bf16.msra.mxu0 %v1163_v44 }
  0x3b   : > { %713 = vmatprep.subr.bf16.mxu0 %v1167_v46 }
  0x3c   : > { %661 = vmatpush1.bf16.msra.mxu1 %v1142_v41 }
  0x3d   : > { %662 = vmatprep.subr.bf16.mxu1 %v1146_v43  ;;  %v768_v43 = vld [vmem:[%s1347_s20 + $0x8] sm:$0xff] }
  0x3e   : > { %714 = vmatpush1.bf16.msra.mxu0 %v1169_v48  ;;  %v792_v48 = vld [vmem:[%s1380_s27] sm:$0xff] }
  0x40   : > { %663 = vmatpush1.bf16.msra.mxu1 %v1148_v45 }
  0x41   : > { %664 = vmatprep.subr.bf16.mxu1 %v1152_v47  ;;  %726 = vmatmul.mubr.bf16.vlgmr.msra.gmra.mrb[0].mxu0 %v1172_v51 }
  0x42   : > { %1052 = vmatprep.mubr.msk.bf16.mxu0 %vm633_vm0, %v1179_v52 }
  0x44   : > { %665 = vmatpush1.bf16.msra.mxu1 %v1154_v49  ;;  %v769_v49 = vld [vmem:[%s1347_s20 + $0x10] sm:$0xff] }
  0x45   : > { %666 = vmatprep.subr.bf16.mxu1 %v1158_v50 }
  0x48   : > { %667 = vmatpush1.bf16.msra.mxu1 %v1160_v53 }
  0x49   : > { %668 = vmatprep.subr.bf16.mxu1 %v1164_v54  ;;  %736 = vmatmul.mubr.bf16.gmra.mrb[4].mxu0 %v1181_v57  ;;  %v794_v54 = vld [vmem:[%s1380_s27 + $0x10] sm:$0xff] }
  0x4c   : > { %669 = vmatpush1.bf16.msra.mxu1 %v1166_v55  ;;  %v770_v55 = vld [vmem:[%s1347_s20 + $0x18] sm:$0xff] }
  0x4d   : > { %670 = vmatprep.subr.bf16.mxu1 %v1170_v56 }
  0x50   : > { %671 = vmatpush1.bf16.msra.mxu1 %v1175_v58 }
  0x53   : > { %673 = vmatmul.mubr.bf16.vlgmr.msra.gmra.mrb[0].mxu1 %v1176_v59 }
  0x54   : > { %682 = vmatprep.mubr.bf16.mxu1 %v1182_v60  ;;  %v795_v60 = vld [vmem:[%s1380_s27 + $0x18] sm:$0xff] }
  0x5b   : > { %683 = vmatmul.mubr.bf16.gmra.mrb[4].mxu1 %v1184_v61 }
 0x114   : > { %v727_v63 = vpop.f32.mrb[0].mxu0 }
 0x115   : > { %v729_v0 = vpop.f32.mrb[1].mxu0 }
 0x116   : > { %v731_v1 = vpop.f32.mrb[2].mxu0 }
 0x117   : > { %v733_v2 = vpop.f32.mrb[3].mxu0 }
 0x11c   : > { %v737_v3 = vpop.f32.mrb[4].mxu0 }
 0x11d   : > { %v739_v4 = vpop.f32.mrb[5].mxu0 }
 0x11e   : > { %v741_v5 = vpop.f32.mrb[6].mxu0 }
 0x11f   : > { %v743_v6 = vpop.f32.mrb[7].mxu0 }
 0x126   : > { %v674_v7 = vpop.f32.mrb[0].mxu1 }
 0x127   : > { %v728_v8 = vadd.f32 %v727_v63, %v674_v7  ;;  %v676_v9 = vpop.f32.mrb[1].mxu1 }
 0x128   : > { %v730_v10 = vadd.f32 %v729_v0, %v676_v9  ;;  %v678_v11 = vpop.f32.mrb[2].mxu1 }
 0x129   : > { %746 = vst [vmem:[%s1365_s24] sm:$0xff] %v728_v8  ;;  %v732_v12 = vadd.f32 %v731_v1, %v678_v11  ;;  %v680_v13 = vpop.f32.mrb[3].mxu1  ;;  %v796_v14 = vmul.f32 %v728_v8, %v728_v8 }
 0x12a   : > { %747 = vst [vmem:[%s1365_s24 + $0x8] sm:$0xff] %v730_v10  ;;  %v734_v15 = vadd.f32 %v733_v2, %v680_v13  ;;  %v771_v16 = vadd.f32 %v730_v10, %v728_v8  ;;  %v797_v17 = vmul.f32 %v730_v10, %v730_v10 }
 0x12b   : > { %748 = vst [vmem:[%s1365_s24 + $0x10] sm:$0xff] %v732_v12  ;;  %v798_v18 = vmul.f32 %v732_v12, %v732_v12 }
 0x12c   : > { %749 = vst [vmem:[%s1365_s24 + $0x18] sm:$0xff] %v734_v15  ;;  %772 = vadd.xlane.f32.xlu0 %v771_v16  ;;  %v799_v19 = vmul.f32 %v734_v15, %v734_v15  ;;  %v774_v20 = vadd.f32 %v734_v15, %v732_v12  ;;  %v804_v21 = vadd.f32 %v797_v17, %v796_v14 }
 0x12e   : > { %v684_v22 = vpop.f32.mrb[4].mxu1  ;;  %v807_v23 = vadd.f32 %v799_v19, %v798_v18 }
 0x12f   : > { %v738_v24 = vadd.f32 %v737_v3, %v684_v22  ;;  %v686_v25 = vpop.f32.mrb[5].mxu1 }
 0x130   : > { %v740_v26 = vadd.f32 %v739_v4, %v686_v25  ;;  %808 = vadd.xlane.f32.xlu1 %v807_v23  ;;  %775 = vadd.xlane.f32.xlu0 %v774_v20  ;;  %v688_v27 = vpop.f32.mrb[6].mxu1 }
 0x131   : > { %750 = vst [vmem:[%s1365_s24 + $0x20] sm:$0xff] %v738_v24  ;;  %v742_v28 = vadd.f32 %v741_v5, %v688_v27  ;;  %v690_v29 = vpop.f32.mrb[7].mxu1  ;;  %v800_v30 = vmul.f32 %v738_v24, %v738_v24 }
 0x132   : > { %751 = vst [vmem:[%s1365_s24 + $0x28] sm:$0xff] %v740_v26  ;;  %v744_v31 = vadd.f32 %v743_v6, %v690_v29  ;;  %v777_v32 = vadd.f32 %v740_v26, %v738_v24  ;;  %v801_v33 = vmul.f32 %v740_v26, %v740_v26 }
 0x133   : > { %752 = vst [vmem:[%s1365_s24 + $0x30] sm:$0xff] %v742_v28  ;;  %v802_v34 = vmul.f32 %v742_v28, %v742_v28 }
 0x134   : > { %753 = vst [vmem:[%s1365_s24 + $0x38] sm:$0xff] %v744_v31  ;;  %805 = vadd.xlane.f32.xlu0 %v804_v21  ;;  %778 = vadd.xlane.f32.xlu1 %v777_v32  ;;  %v810_v35 = vadd.f32 %v801_v33, %v800_v30  ;;  %v780_v36 = vadd.f32 %v744_v31, %v742_v28 }
 0x135   : > { %v803_v37 = vmul.f32 %v744_v31, %v744_v31 }
 0x137   : > { %v813_v38 = vadd.f32 %v803_v37, %v802_v34 }
 0x138   : > { %811 = vadd.xlane.f32.xlu0 %v810_v35  ;;  %781 = vadd.xlane.f32.xlu1 %v780_v36 }
 0x13c   : > { %814 = vadd.xlane.f32.xlu1 %v813_v38 }
 0x1b9   : > { %v773_v40 = vpop.xlane.xlu0 %772 }
 0x1ba   : > { %v783_v41 = vadd.f32 %v773_v40, %v767_v39 }
 0x1bc   : > { %788 = vst.msk [vmem:[%s1347_s20] sm:$0xff] %vm758_vm1, %v783_v41 }
 0x1bd   : > { %v809_v44 = vpop.xlane.xlu1 %808  ;;  %v776_v45 = vpop.xlane.xlu0 %775 }
 0x1be   : > { %v817_v46 = vadd.f32 %v809_v44, %v793_v42  ;;  %v784_v47 = vadd.f32 %v776_v45, %v768_v43 }
 0x1c0   : > { %821 = vst.msk [vmem:[%s1380_s27 + $0x8] sm:$0xff] %vm758_vm1, %v817_v46  ;;  %789 = vst.msk [vmem:[%s1347_s20 + $0x8] sm:$0xff] %vm758_vm1, %v784_v47 }
 0x1c1   : > { %v806_v50 = vpop.xlane.xlu0 %805  ;;  %v779_v51 = vpop.xlane.xlu1 %778 }
 0x1c2   : > { %v816_v52 = vadd.f32 %v806_v50, %v792_v48  ;;  %v785_v53 = vadd.f32 %v779_v51, %v769_v49 }
 0x1c4   : > { %820 = vst.msk [vmem:[%s1380_s27] sm:$0xff] %vm758_vm1, %v816_v52  ;;  %790 = vst.msk [vmem:[%s1347_s20 + $0x10] sm:$0xff] %vm758_vm1, %v785_v53 }
 0x1c5   : > { %v812_v56 = vpop.xlane.xlu0 %811  ;;  %v782_v57 = vpop.xlane.xlu1 %781 }
 0x1c6   : > { %v818_v58 = vadd.f32 %v812_v56, %v794_v54  ;;  %v786_v59 = vadd.f32 %v782_v57, %v770_v55 }
 0x1c8   : > { %822 = vst.msk [vmem:[%s1380_s27 + $0x10] sm:$0xff] %vm758_vm1, %v818_v58  ;;  %791 = vst.msk [vmem:[%s1347_s20 + $0x18] sm:$0xff] %vm758_vm1, %v786_v59 }
 0x1c9   : > { %v815_v61 = vpop.xlane.xlu1 %814 }
 0x1ca   : > { %v819_v62 = vadd.f32 %v815_v61, %v795_v60 }
 0x1cc   : > { %823 = vst.msk [vmem:[%s1380_s27 + $0x18] sm:$0xff] %vm758_vm1, %v819_v62 }
 0x1cd PF: > { %s15_s17 = sadd.s32 1, %s1207_s17   ;;  %s1432_s15 = smov %s1203_s16 }
 0x1ce   : > { %p12_p5 = scmp.ge.s32.totalorder %s15_s17, 4   ;;  %s1433_s16 = smov %s1435_s18 }
 0x1d0   :  { %14 = sbr.rel (!%p12_p5) target bundleno = 2 (0x2), region = 86 }

// kernel: unet_daft_forward.28
= control target key start
LH: loop header
LB: loop body
LE: loop exit
PB: predicated region body
PF: predicated region fallthrough
CT: control target
= control target key end

     0   :  { %s630_s17 = smov 0   ;;  %s632_s18 = smov 0   ;;  %s687_s0 = inlined_call_operand.vmem [shape: f32[2,32,256], index: 0, kind: input, shape index: {}]   ;;  %s688_s1 = inlined_call_operand.vmem [shape: f32[2,32,1], index: 1, kind: input, shape index: {}]   ;;  %s689_s2 = inlined_call_operand.vmem [shape: f32[2,32,1], index: 2, kind: input, shape index: {}]   ;;  %s690_s3 = inlined_call_operand.<no memory space> [shape: f32[1], index: 3, kind: input, shape index: {}]   ;;  %s691_s4 = inlined_call_operand.vmem [shape: f32[2,32,256], index: 4, kind: output, shape index: {}]  }
   0x1   :  { %9 = sst [smem:[#allocation2]] %s690_s3  ;;  %s634_s19 = smov 0  }
   0x2 LB: > { %s27_s3 = sadd.s32 1, %s595_s18  ;;  %p527_p0 = scmp.ge.s32.totalorder %s599_s19, 1  ;;  %s599_s19 = sphi %s634_s19, %s15_s19   ;;  %s595_s18 = sphi %s632_s18, %s693_s18   ;;  %s591_s17 = sphi %s630_s17, %s692_s17  }
   0x3   : > { %p29_p1 = scmp.ge.s32.totalorder %s27_s3, 2  ;;  %p204_p2 = scmp.lt.s32.totalorder %s599_s19, 3 }
   0x5   : > { %s695_s3 = smov (%p29_p1, %s27_s3), 0  ;;  %p205_p3 = pnand %p527_p0, %p204_p2 }
   0x6   : > { %p249_p4 = scmp.lt.s32.totalorder (!%p205_p3), %s591_s17, 1  ;;  %v601_v0 = vmov (!%p205_p3), 0   ;;  %s378_s28 = sld [smem:[#allocation2]] (!%p205_p3) }
   0x7   : > { %208 = sbr.rel (%p205_p3) target bundleno = 180 (0xb4), region = 36  ;;  %568 = vset.pattern.permute.xlu1 (!%p205_p3), %v601_v0  ;;  %567 = vset.pattern.permute.xlu0 (!%p205_p3), %v601_v0 }
   0xc   : > { %v387_v49 = vstv (!%p205_p3), %s378_s28 }
   0xe   : > { %s697_s17 = smov (!%p249_p4, %s591_s17), 1 }
   0xf   : > { %s539_s20 = sshll.u32 %s697_s17, 5  ;;  %s538_s27 = sshll.u32 %s697_s17, 6 }
  0x10   : > { %s262_s23 = scalar_lea.vmem %s688_s1, %s539_s20  ;;  %s267_s26 = scalar_lea.vmem %s689_s2, %s539_s20 }
  0x11   : > { %v288_v1 = vld [vmem:[%s262_s23 + $0x10] sm:$0xff]  ;;  %v286_v3 = vld [vmem:[%s262_s23] sm:$0xff]  ;;  %v289_v8 = vld [vmem:[%s262_s23 + $0x18] sm:$0xff]  ;;  %s256_s5 = scalar_lea.vmem %s687_s0, %s538_s27  ;;  %s668_s8 = scalar_lea.vmem %s691_s4, %s538_s27 }
  0x12   : > { %v296_v2 = vld [vmem:[%s267_s26 + $0x10] sm:$0xff]  ;;  %v292_v4 = vmul.f32 0.0046296297, %v288_v1  ;;  %v290_v6 = vmul.f32 0.0046296297, %v286_v3  ;;  %v294_v7 = vld [vmem:[%s267_s26] sm:$0xff] }
  0x13   : > { %v300_v5 = vmul.f32 0.0046296297, %v296_v2  ;;  %v297_v9 = vld [vmem:[%s267_s26 + $0x18] sm:$0xff]  ;;  %v298_v11 = vmul.f32 0.0046296297, %v294_v7  ;;  %v287_v14 = vld [vmem:[%s262_s23 + $0x8] sm:$0xff] }
  0x14   : > { %326 = vperm.xlu1 %568, %v292_v4   ;;  %v304_v10 = vmul.f32 %v292_v4, %v292_v4  ;;  %316 = vperm.xlu0 %567, %v290_v6   ;;  %v302_v12 = vmul.f32 %v290_v6, %v290_v6  ;;  %v293_v13 = vmul.f32 0.0046296297, %v289_v8  ;;  %v295_v15 = vld [vmem:[%s267_s26 + $0x8] sm:$0xff]  ;;  %v301_v16 = vmul.f32 0.0046296297, %v297_v9  ;;  %v278_v39 = vld [vmem:[%s256_s5] sm:$0xff] }
  0x15   : > { %v291_v17 = vmul.f32 0.0046296297, %v287_v14  ;;  %v299_v18 = vmul.f32 0.0046296297, %v295_v15  ;;  %v279_v40 = vld [vmem:[%s256_s5 + $0x8] sm:$0xff]  ;;  %v280_v43 = vld [vmem:[%s256_s5 + $0x10] sm:$0xff] }
  0x16   : > { %v308_v19 = vsub.f32 %v300_v5, %v304_v10  ;;  %v306_v20 = vsub.f32 %v298_v11, %v302_v12  ;;  %v305_v21 = vmul.f32 %v293_v13, %v293_v13  ;;  %v281_v44 = vld [vmem:[%s256_s5 + $0x18] sm:$0xff]  ;;  %v282_v45 = vld [vmem:[%s256_s5 + $0x20] sm:$0xff]  ;;  %v283_v46 = vld [vmem:[%s256_s5 + $0x28] sm:$0xff] }
  0x17   : > { %v303_v22 = vmul.f32 %v291_v17, %v291_v17  ;;  %v284_v51 = vld [vmem:[%s256_s5 + $0x30] sm:$0xff]  ;;  %v285_v52 = vld [vmem:[%s256_s5 + $0x38] sm:$0xff] }
  0x18   : > { %v312_v23 = vmax.f32 %v308_v19, 0.0  ;;  %v310_v24 = vmax.f32 %v306_v20, 0.0  ;;  %v309_v25 = vsub.f32 %v301_v16, %v305_v21  ;;  %331 = vperm.xlu1 %568, %v293_v13   ;;  %321 = vperm.xlu0 %567, %v291_v17  }
  0x19   : > { %v307_v26 = vsub.f32 %v299_v18, %v303_v22 }
  0x1a   : > { %v344_v27 = vadd.f32 1e-05, %v312_v23  ;;  %v342_v28 = vadd.f32 1e-05, %v310_v24  ;;  %v313_v29 = vmax.f32 %v309_v25, 0.0 }
  0x1b   : > { %v311_v30 = vmax.f32 %v307_v26, 0.0 }
  0x1c   : > { %569 = vrsqrt.f32 %v342_v28  ;;  %v345_v31 = vadd.f32 1e-05, %v313_v29 }
  0x1d   : > { %v343_v32 = vadd.f32 1e-05, %v311_v30  ;;  %571 = vrsqrt.f32 %v344_v27 }
  0x1f   : > { %573 = vrsqrt.f32 %v343_v32 }
  0x20   : > { %575 = vrsqrt.f32 %v345_v31 }
  0x26   : > { %v570_v33 = vpop.eup %569 }
  0x27   : > { %v572_v34 = vpop.eup %571  ;;  %352 = vperm.xlu0 %567, %v570_v33  }
  0x29   : > { %v574_v35 = vpop.eup %573 }
  0x2a   : > { %357 = vperm.xlu1 %568, %v574_v35   ;;  %v576_v36 = vpop.eup %575 }
  0x2b   : > { %362 = vperm.xlu0 %567, %v572_v34  }
  0x2e   : > { %367 = vperm.xlu1 %568, %v576_v36  }
  0x93   : > { %v317_v37 = vpop.permute.xlu0 %316  ;;  %v327_v38 = vpop.permute.xlu1 %326 }
  0x94   : > { %v334_v47 = vsub.f32 %v278_v39, %v317_v37  ;;  %v335_v48 = vsub.f32 %v279_v40, %v317_v37  ;;  %v338_v57 = vsub.f32 %v282_v45, %v327_v38  ;;  %v339_v58 = vsub.f32 %v283_v46, %v327_v38 }
  0x97   : > { %v322_v41 = vpop.permute.xlu0 %321  ;;  %v332_v42 = vpop.permute.xlu1 %331 }
  0x98   : > { %v336_v53 = vsub.f32 %v280_v43, %v322_v41  ;;  %v337_v54 = vsub.f32 %v281_v44, %v322_v41  ;;  %v340_v62 = vsub.f32 %v284_v51, %v332_v42  ;;  %v341_v63 = vsub.f32 %v285_v52, %v332_v42 }
  0xa6   : > { %v353_v50 = vpop.permute.xlu0 %352 }
  0xa7   : > { %v370_v55 = vmul.f32 %v353_v50, %v334_v47  ;;  %v371_v56 = vmul.f32 %v353_v50, %v335_v48 }
  0xa9   : > { %v358_v59 = vpop.permute.xlu1 %357  ;;  %vm379_vm0 = vcmp.ge.f32.partialorder %v370_v55, 0.0  ;;  %vm380_vm1 = vcmp.ge.f32.partialorder %v371_v56, 0.0  ;;  %v388_v0 = vmul.f32 %v387_v49, %v370_v55  ;;  %v389_v1 = vmul.f32 %v387_v49, %v371_v56 }
  0xaa   : > { %v372_v60 = vmul.f32 %v358_v59, %v336_v53  ;;  %v373_v61 = vmul.f32 %v358_v59, %v337_v54  ;;  %v363_v2 = vpop.permute.xlu0 %362 }
  0xab   : > { %v396_v5 = vsel %vm379_vm0, %v370_v55, %v388_v0  ;;  %v397_v6 = vsel %vm380_vm1, %v371_v56, %v389_v1  ;;  %v374_v8 = vmul.f32 %v363_v2, %v338_v57  ;;  %v375_v9 = vmul.f32 %v363_v2, %v339_v58 }
  0xac   : > { %vm381_vm2 = vcmp.ge.f32.partialorder %v372_v60, 0.0  ;;  %vm382_vm3 = vcmp.ge.f32.partialorder %v373_v61, 0.0  ;;  %v390_v3 = vmul.f32 %v387_v49, %v372_v60  ;;  %v391_v4 = vmul.f32 %v387_v49, %v373_v61  ;;  %404 = vst [vmem:[%s668_s8] sm:$0xff] %v396_v5  ;;  %405 = vst [vmem:[%s668_s8 + $0x8] sm:$0xff] %v397_v6 }
  0xad   : > { %v368_v7 = vpop.permute.xlu1 %367  ;;  %vm383_vm4 = vcmp.ge.f32.partialorder %v374_v8, 0.0  ;;  %vm384_vm5 = vcmp.ge.f32.partialorder %v375_v9, 0.0  ;;  %v392_v14 = vmul.f32 %v387_v49, %v374_v8  ;;  %v393_v15 = vmul.f32 %v387_v49, %v375_v9 }
  0xae   : > { %v398_v10 = vsel %vm381_vm2, %v372_v60, %v390_v3  ;;  %v399_v11 = vsel %vm382_vm3, %v373_v61, %v391_v4  ;;  %v376_v12 = vmul.f32 %v368_v7, %v340_v62  ;;  %v377_v13 = vmul.f32 %v368_v7, %v341_v63 }
  0xaf   : > { %406 = vst [vmem:[%s668_s8 + $0x10] sm:$0xff] %v398_v10  ;;  %407 = vst [vmem:[%s668_s8 + $0x18] sm:$0xff] %v399_v11  ;;  %v400_v18 = vsel %vm383_vm4, %v374_v8, %v392_v14  ;;  %v401_v19 = vsel %vm384_vm5, %v375_v9, %v393_v15 }
  0xb0   : > { %vm385_vm6 = vcmp.ge.f32.partialorder %v376_v12, 0.0  ;;  %vm386_vm7 = vcmp.ge.f32.partialorder %v377_v13, 0.0  ;;  %v394_v16 = vmul.f32 %v387_v49, %v376_v12  ;;  %v395_v17 = vmul.f32 %v387_v49, %v377_v13  ;;  %408 = vst [vmem:[%s668_s8 + $0x20] sm:$0xff] %v400_v18  ;;  %409 = vst [vmem:[%s668_s8 + $0x28] sm:$0xff] %v401_v19 }
  0xb2   : > { %v402_v20 = vsel %vm385_vm6, %v376_v12, %v394_v16  ;;  %v403_v21 = vsel %vm386_vm7, %v377_v13, %v395_v17 }
  0xb3   : > { %410 = vst [vmem:[%s668_s8 + $0x30] sm:$0xff] %v402_v20  ;;  %411 = vst [vmem:[%s668_s8 + $0x38] sm:$0xff] %v403_v21 }
  0xb4 PF: > { %s15_s19 = sadd.s32 1, %s599_s19   ;;  %s692_s17 = smov %s595_s18 }
  0xb5   : > { %p12_p5 = scmp.ge.s32.totalorder %s15_s19, 4   ;;  %s693_s18 = smov %s695_s3 }
  0xb7   :  { %14 = sbr.rel (!%p12_p5) target bundleno = 2 (0x2), region = 72 }

// kernel: unet_daft_forward.29
= control target key start
LH: loop header
LB: loop body
LE: loop exit
PB: predicated region body
PF: predicated region fallthrough
CT: control target
= control target key end

     0   :  { %s621_s15 = smov 0   ;;  %s623_s16 = smov 0   ;;  %s672_s0 = inlined_call_operand.vmem [shape: bf16[8,48], index: 0, kind: input, shape index: {}]   ;;  %s673_s1 = inlined_call_operand.vmem [shape: bf16[2,48,256], index: 1, kind: input, shape index: {}]   ;;  %s674_s2 = inlined_call_operand.vmem [shape: f32[2,8,256], index: 2, kind: output, shape index: {0}]   ;;  %s675_s3 = inlined_call_operand.vmem [shape: f32[2,8,1], index: 3, kind: output, shape index: {1}]   ;;  %s676_s4 = inlined_call_operand.vmem [shape: f32[2,8,1], index: 4, kind: output, shape index: {2}]  }
   0x1   :  { %s625_s17 = smov 0  }
   0x2 LB: > { %s27_s18 = sadd.s32 1, %s588_s16  ;;  %p518_p0 = scmp.ge.s32.totalorder %s592_s17, 1  ;;  %s592_s17 = sphi %s625_s17, %s15_s17   ;;  %s588_s16 = sphi %s623_s16, %s678_s16   ;;  %s584_s15 = sphi %s621_s15, %s677_s15  }
   0x3   : > { %p29_p1 = scmp.ge.s32.totalorder %s27_s18, 2  ;;  %p188_p2 = scmp.lt.s32.totalorder %s592_s17, 3 }
   0x5   : > { %s680_s18 = smov (%p29_p1, %s27_s18), 0  ;;  %p189_p3 = pnand %p518_p0, %p188_p2 }
   0x6   : > { %p231_p4 = scmp.lt.s32.totalorder (!%p189_p3), %s584_s15, 1  ;;  %v594_v0 = vmov (!%p189_p3), 0   ;;  %v259_v7 = vld [vmem:[%s672_s0] sm:$0xf] (!%p189_p3)  ;;  %vm296_vm0 = vcmask (!%p189_p3), 392192   ;;  %vm347_vm1 = vcmask (!%p189_p3), 7168  }
   0x7   : > { %192 = sbr.rel (%p189_p3) target bundleno = 395 (0x18b), region = 28  ;;  %332 = vmatprep.mubr.bf16.mxu0 (!%p189_p3), %v594_v0  ;;  %v595_v8 = vmov (!%p189_p3), 0.0  }
   0xe   : > { %s682_s15 = smov (!%p231_p4, %s584_s15), 1 }
   0xf   : > { %s534_s19 = smul.u32 48, %s682_s15  ;;  %s522_s25 = sshll.u32 %s682_s15, 3 }
  0x10   : > { %s253_s28 = scalar_lea.vmem %s675_s3, %s522_s25  ;;  %s533_s29 = sshll.u32 %s682_s15, 4 }
  0x11   : > { %s238_s22 = scalar_lea.vmem %s673_s1, %s534_s19  ;;  %348 = vst.msk [vmem:[%s253_s28] sm:$0xff] %vm347_vm1, %v595_v8  ;;  %s248_s6 = scalar_lea.vmem %s674_s2, %s533_s29 }
  0x12   : > { %v561_v1 = vld [vmem:[%s238_s22 + $0x4] ss:$8 sps:$4 sm:$0xff]   ;;  %v563_v2 = vld [vmem:[%s238_s22] ss:$8 sps:$4 sm:$0xff]   ;;  %v564_v3 = vld [vmem:[%s238_s22 + $0x14] ss:$8 sps:$4 sm:$0xff]   ;;  %s257_s9 = scalar_lea.vmem %s676_s4, %s522_s25 }
  0x13   : > { %300 = vmatprep.subr.bf16.mxu0 %v561_v1  ;;  %v566_v4 = vld [vmem:[%s238_s22 + $0x10] ss:$8 sps:$4 sm:$0xff]   ;;  %v567_v5 = vld [vmem:[%s238_s22 + $0x24] ss:$8 sps:$4 sm:$0xff]   ;;  %v569_v6 = vld [vmem:[%s238_s22 + $0x20] ss:$8 sps:$4 sm:$0xff]  }
  0x14   : > { %301 = vmatpush1.bf16.msra.mxu0 %v563_v2  ;;  %349 = vst.msk [vmem:[%s257_s9] sm:$0xff] %vm347_vm1, %v595_v8 }
  0x15   : > { %302 = vmatprep.subr.bf16.mxu0 %v564_v3 }
  0x18   : > { %303 = vmatpush1.bf16.msra.mxu0 %v566_v4  ;;  %v350_v17 = vld [vmem:[%s253_s28] sm:$0xff] }
  0x19   : > { %304 = vmatprep.subr.bf16.mxu0 %v567_v5 }
  0x1b   : > { %v357_v20 = vld [vmem:[%s257_s9] sm:$0xff] }
  0x1c   : > { %305 = vmatpush1.bf16.msra.mxu0 %v569_v6 }
  0x1f   : > { %530 = vmatmul.mubr.msk.bf16.vlgmr.msra.gmra.mrb[0].mxu0 %vm296_vm0, %v259_v7 }
  0xf2   : > { %v334_v9 = vpop.f32.mrb[0].mxu0 }
  0xf3   : > { %341 = vst [vmem:[%s248_s6] sm:$0xff] %v334_v9  ;;  %v336_v10 = vpop.f32.mrb[1].mxu0  ;;  %v358_v11 = vmul.f32 %v334_v9, %v334_v9 }
  0xf4   : > { %342 = vst [vmem:[%s248_s6 + $0x8] sm:$0xff] %v336_v10  ;;  %v338_v12 = vpop.f32.mrb[2].mxu0  ;;  %v351_v13 = vadd.f32 %v336_v10, %v334_v9  ;;  %v359_v14 = vmul.f32 %v336_v10, %v336_v10 }
  0xf5   : > { %v339_v15 = vpop.f32.mrb[3].mxu0 }
  0xf6   : > { %352 = vadd.xlane.f32.xlu0 %v351_v13  ;;  %v360_v16 = vadd.f32 %v359_v14, %v358_v11 }
  0xfa   : > { %361 = vadd.xlane.f32.xlu0 %v360_v16 }
 0x183   : > { %v353_v18 = vpop.xlane.xlu0 %352 }
 0x184   : > { %v354_v19 = vadd.f32 %v353_v18, %v350_v17 }
 0x186   : > { %356 = vst.msk [vmem:[%s253_s28] sm:$0xff] %vm347_vm1, %v354_v19 }
 0x187   : > { %v362_v21 = vpop.xlane.xlu0 %361 }
 0x188   : > { %v363_v22 = vadd.f32 %v362_v21, %v357_v20 }
 0x18a   : > { %364 = vst.msk [vmem:[%s257_s9] sm:$0xff] %vm347_vm1, %v363_v22 }
 0x18b PF: > { %s15_s17 = sadd.s32 1, %s592_s17   ;;  %s677_s15 = smov %s588_s16 }
 0x18c   : > { %p12_p5 = scmp.ge.s32.totalorder %s15_s17, 4   ;;  %s678_s16 = smov %s680_s18 }
 0x18e   :  { %14 = sbr.rel (!%p12_p5) target bundleno = 2 (0x2), region = 86 }

// kernel: unet_daft_forward.36
= control target key start
LH: loop header
LB: loop body
LE: loop exit
PB: predicated region body
PF: predicated region fallthrough
CT: control target
= control target key end

     0   :  { %s1034_s15 = smov 0   ;;  %s1036_s16 = smov 0   ;;  %s1144_s0 = inlined_call_operand.vmem [shape: bf16[8,384], index: 0, kind: input, shape index: {}]   ;;  %s1145_s1 = inlined_call_operand.vmem [shape: bf16[2,384,256], index: 1, kind: input, shape index: {}]   ;;  %s1146_s2 = inlined_call_operand.vmem [shape: f32[2,8,256], index: 2, kind: output, shape index: {0}]   ;;  %s1147_s3 = inlined_call_operand.vmem [shape: f32[2,8,1], index: 3, kind: output, shape index: {1}]   ;;  %s1148_s4 = inlined_call_operand.vmem [shape: f32[2,8,1], index: 4, kind: output, shape index: {2}]  }
   0x1   :  { %s1038_s17 = smov 0  }
   0x2 LB: > { %s27_s18 = sadd.s32 1, %s1001_s16  ;;  %p819_p0 = scmp.ge.s32.totalorder %s1005_s17, 1  ;;  %s1005_s17 = sphi %s1038_s17, %s15_s17   ;;  %s1001_s16 = sphi %s1036_s16, %s1150_s16   ;;  %s997_s15 = sphi %s1034_s15, %s1149_s15  }
   0x3   : > { %p29_p1 = scmp.ge.s32.totalorder %s27_s18, 2  ;;  %p188_p2 = scmp.lt.s32.totalorder %s1005_s17, 3 }
   0x5   : > { %s1152_s18 = smov (%p29_p1, %s27_s18), 0  ;;  %p189_p3 = pnand %p819_p0, %p188_p2 }
   0x6   : > { %p231_p4 = scmp.lt.s32.totalorder (!%p189_p3), %s997_s15, 1  ;;  %v1007_v0 = vmov (!%p189_p3), 0   ;;  %v1055_v1 = vld [vmem:[%s1144_s0] sm:$0xff] (!%p189_p3)  ;;  %v980_v42 = vld [vmem:[%s1144_s0 + $0x8] ss:$0 sps:$4 sm:$0xff] (!%p189_p3)   ;;  %vm648_vm0 = vcmask (!%p189_p3), 7168  }
   0x7   : > { %192 = sbr.rel (%p189_p3) target bundleno = 449 (0x1c1), region = 28  ;;  %633 = vmatprep.mubr.bf16.mxu0 (!%p189_p3), %v1007_v0  ;;  %v826_v2 = vcombine.high (!%p189_p3), %v1055_v1, %v1055_v1  ;;  %v825_v52 = vcombine.low (!%p189_p3), %v1055_v1, %v1055_v1  ;;  %v1008_v53 = vmov (!%p189_p3), 0.0  }
   0x9   : > { %592 = vmatprep.mubr.bf16.mxu1 (!%p189_p3), %v826_v2 }
   0xe   : > { %s1154_s15 = smov (!%p231_p4, %s997_s15), 1 }
   0xf   : > { %s881_s21 = smul.u32 384, %s1154_s15  ;;  %s823_s27 = sshll.u32 %s1154_s15, 3 }
  0x10   : > { %s253_s30 = scalar_lea.vmem %s1147_s3, %s823_s27  ;;  %s878_s5 = sshll.u32 %s1154_s15, 4 }
  0x11   : > { %s1065_s24 = scalar_lea.vmem %s1145_s1, %s881_s21  ;;  %649 = vst.msk [vmem:[%s253_s30] sm:$0xff] %vm648_vm0, %v1008_v53  ;;  %s248_s8 = scalar_lea.vmem %s1146_s2, %s878_s5 }
  0x12   : > { %v908_v3 = vld [vmem:[%s1065_s24 + $0x4] ss:$8 sps:$4 sm:$0xff]   ;;  %v910_v4 = vld [vmem:[%s1065_s24] ss:$8 sps:$4 sm:$0xff]   ;;  %v911_v5 = vld [vmem:[%s1065_s24 + $0x14] ss:$8 sps:$4 sm:$0xff]   ;;  %s257_s11 = scalar_lea.vmem %s1148_s4, %s823_s27 }
  0x13   : > { %560 = vmatprep.subr.bf16.mxu1 %v908_v3  ;;  %v913_v6 = vld [vmem:[%s1065_s24 + $0x10] ss:$8 sps:$4 sm:$0xff]   ;;  %v914_v7 = vld [vmem:[%s1065_s24 + $0x24] ss:$8 sps:$4 sm:$0xff]   ;;  %v916_v8 = vld [vmem:[%s1065_s24 + $0x20] ss:$8 sps:$4 sm:$0xff]  }
  0x14   : > { %561 = vmatpush1.bf16.msra.mxu1 %v910_v4  ;;  %v917_v9 = vld [vmem:[%s1065_s24 + $0x34] ss:$8 sps:$4 sm:$0xff]   ;;  %v919_v10 = vld [vmem:[%s1065_s24 + $0x30] ss:$8 sps:$4 sm:$0xff]   ;;  %v932_v11 = vld [vmem:[%s1065_s24 + $0x104] ss:$8 sps:$4 sm:$0xff]  }
  0x15   : > { %562 = vmatprep.subr.bf16.mxu1 %v911_v5  ;;  %v934_v12 = vld [vmem:[%s1065_s24 + $0x100] ss:$8 sps:$4 sm:$0xff]   ;;  %v920_v13 = vld [vmem:[%s1065_s24 + $0x44] ss:$8 sps:$4 sm:$0xff]   ;;  %601 = vmatprep.subr.bf16.mxu0 %v932_v11  ;;  %v938_v14 = vld [vmem:[%s1065_s24 + $0x114] ss:$8 sps:$4 sm:$0xff]  }
  0x16   : > { %602 = vmatpush1.bf16.msra.mxu0 %v934_v12  ;;  %v940_v15 = vld [vmem:[%s1065_s24 + $0x110] ss:$8 sps:$4 sm:$0xff]   ;;  %v922_v16 = vld [vmem:[%s1065_s24 + $0x40] ss:$8 sps:$4 sm:$0xff]   ;;  %v923_v17 = vld [vmem:[%s1065_s24 + $0x54] ss:$8 sps:$4 sm:$0xff]  }
  0x17   : > { %603 = vmatprep.subr.bf16.mxu0 %v938_v14  ;;  %v944_v18 = vld [vmem:[%s1065_s24 + $0x124] ss:$8 sps:$4 sm:$0xff]   ;;  %v946_v19 = vld [vmem:[%s1065_s24 + $0x120] ss:$8 sps:$4 sm:$0xff]   ;;  %v925_v20 = vld [vmem:[%s1065_s24 + $0x50] ss:$8 sps:$4 sm:$0xff]  }
  0x18   : > { %563 = vmatpush1.bf16.msra.mxu1 %v913_v6  ;;  %v950_v21 = vld [vmem:[%s1065_s24 + $0x134] ss:$8 sps:$4 sm:$0xff]   ;;  %v926_v22 = vld [vmem:[%s1065_s24 + $0x64] ss:$8 sps:$4 sm:$0xff]   ;;  %v952_v23 = vld [vmem:[%s1065_s24 + $0x130] ss:$8 sps:$4 sm:$0xff]  }
  0x19   : > { %564 = vmatprep.subr.bf16.mxu1 %v914_v7  ;;  %v928_v24 = vld [vmem:[%s1065_s24 + $0x60] ss:$8 sps:$4 sm:$0xff]   ;;  %v956_v25 = vld [vmem:[%s1065_s24 + $0x144] ss:$8 sps:$4 sm:$0xff]   ;;  %v929_v26 = vld [vmem:[%s1065_s24 + $0x74] ss:$8 sps:$4 sm:$0xff]  }
  0x1a   : > { %604 = vmatpush1.bf16.msra.mxu0 %v940_v15  ;;  %v958_v27 = vld [vmem:[%s1065_s24 + $0x140] ss:$8 sps:$4 sm:$0xff]   ;;  %v931_v28 = vld [vmem:[%s1065_s24 + $0x70] ss:$8 sps:$4 sm:$0xff]   ;;  %v962_v29 = vld [vmem:[%s1065_s24 + $0x154] ss:$8 sps:$4 sm:$0xff]  }
  0x1b   : > { %605 = vmatprep.subr.bf16.mxu0 %v944_v18  ;;  %v935_v30 = vld [vmem:[%s1065_s24 + $0x84] ss:$8 sps:$4 sm:$0xff]   ;;  %v964_v31 = vld [vmem:[%s1065_s24 + $0x150] ss:$8 sps:$4 sm:$0xff]   ;;  %v937_v32 = vld [vmem:[%s1065_s24 + $0x80] ss:$8 sps:$4 sm:$0xff]  }
  0x1c   : > { %565 = vmatpush1.bf16.msra.mxu1 %v916_v8  ;;  %v968_v33 = vld [vmem:[%s1065_s24 + $0x164] ss:$8 sps:$4 sm:$0xff]   ;;  %v941_v34 = vld [vmem:[%s1065_s24 + $0x94] ss:$8 sps:$4 sm:$0xff]   ;;  %v970_v35 = vld [vmem:[%s1065_s24 + $0x160] ss:$8 sps:$4 sm:$0xff]  }
  0x1d   : > { %566 = vmatprep.subr.bf16.mxu1 %v917_v9  ;;  %v943_v36 = vld [vmem:[%s1065_s24 + $0x90] ss:$8 sps:$4 sm:$0xff]   ;;  %v974_v37 = vld [vmem:[%s1065_s24 + $0x174] ss:$8 sps:$4 sm:$0xff]   ;;  %v947_v38 = vld [vmem:[%s1065_s24 + $0xa4] ss:$8 sps:$4 sm:$0xff]  }
  0x1e   : > { %606 = vmatpush1.bf16.msra.mxu0 %v946_v19  ;;  %v976_v39 = vld [vmem:[%s1065_s24 + $0x170] ss:$8 sps:$4 sm:$0xff]   ;;  %v949_v40 = vld [vmem:[%s1065_s24 + $0xa0] ss:$8 sps:$4 sm:$0xff]   ;;  %v953_v41 = vld [vmem:[%s1065_s24 + $0xb4] ss:$8 sps:$4 sm:$0xff]  }
  0x1f   : > { %607 = vmatprep.subr.bf16.mxu0 %v950_v21  ;;  %v955_v43 = vld [vmem:[%s1065_s24 + $0xb0] ss:$8 sps:$4 sm:$0xff]   ;;  %v959_v44 = vld [vmem:[%s1065_s24 + $0xc4] ss:$8 sps:$4 sm:$0xff]   ;;  %v961_v45 = vld [vmem:[%s1065_s24 + $0xc0] ss:$8 sps:$4 sm:$0xff]  }
  0x20   : > { %567 = vmatpush1.bf16.msra.mxu1 %v919_v10  ;;  %v965_v46 = vld [vmem:[%s1065_s24 + $0xd4] ss:$8 sps:$4 sm:$0xff]   ;;  %v967_v47 = vld [vmem:[%s1065_s24 + $0xd0] ss:$8 sps:$4 sm:$0xff]   ;;  %v971_v48 = vld [vmem:[%s1065_s24 + $0xe4] ss:$8 sps:$4 sm:$0xff]  }
  0x21   : > { %568 = vmatprep.subr.bf16.mxu1 %v920_v13  ;;  %v973_v49 = vld [vmem:[%s1065_s24 + $0xe0] ss:$8 sps:$4 sm:$0xff]   ;;  %v977_v50 = vld [vmem:[%s1065_s24 + $0xf4] ss:$8 sps:$4 sm:$0xff]   ;;  %v979_v51 = vld [vmem:[%s1065_s24 + $0xf0] ss:$8 sps:$4 sm:$0xff]  }
  0x22   : > { %608 = vmatpush1.bf16.msra.mxu0 %v952_v23  ;;  %650 = vst.msk [vmem:[%s257_s11] sm:$0xff] %vm648_vm0, %v1008_v53  ;;  %v651_v4 = vld [vmem:[%s253_s30] sm:$0xff] }
  0x23   : > { %609 = vmatprep.subr.bf16.mxu0 %v956_v25 }
  0x24   : > { %569 = vmatpush1.bf16.msra.mxu1 %v922_v16 }
  0x25   : > { %570 = vmatprep.subr.bf16.mxu1 %v923_v17 }
  0x26   : > { %610 = vmatpush1.bf16.msra.mxu0 %v958_v27 }
  0x27   : > { %611 = vmatprep.subr.bf16.mxu0 %v962_v29 }
  0x28   : > { %571 = vmatpush1.bf16.msra.mxu1 %v925_v20 }
  0x29   : > { %572 = vmatprep.subr.bf16.mxu1 %v926_v22  ;;  %v658_v7 = vld [vmem:[%s257_s11] sm:$0xff] }
  0x2a   : > { %612 = vmatpush1.bf16.msra.mxu0 %v964_v31 }
  0x2b   : > { %613 = vmatprep.subr.bf16.mxu0 %v968_v33 }
  0x2c   : > { %573 = vmatpush1.bf16.msra.mxu1 %v928_v24 }
  0x2d   : > { %574 = vmatprep.subr.bf16.mxu1 %v929_v26 }
  0x2e   : > { %614 = vmatpush1.bf16.msra.mxu0 %v970_v35 }
  0x2f   : > { %615 = vmatprep.subr.bf16.mxu0 %v974_v37 }
  0x30   : > { %575 = vmatpush1.bf16.msra.mxu1 %v931_v28 }
  0x31   : > { %576 = vmatprep.subr.bf16.mxu1 %v935_v30 }
  0x32   : > { %616 = vmatpush1.bf16.msra.mxu0 %v976_v39 }
  0x34   : > { %577 = vmatpush1.bf16.msra.mxu1 %v937_v32 }
  0x35   : > { %578 = vmatprep.subr.bf16.mxu1 %v941_v34  ;;  %634 = vmatmul.mubr.bf16.vlgmr.msra.gmra.mrb[0].mxu0 %v980_v42 }
  0x38   : > { %579 = vmatpush1.bf16.msra.mxu1 %v943_v36 }
  0x39   : > { %580 = vmatprep.subr.bf16.mxu1 %v947_v38 }
  0x3c   : > { %581 = vmatpush1.bf16.msra.mxu1 %v949_v40 }
  0x3d   : > { %582 = vmatprep.subr.bf16.mxu1 %v953_v41 }
  0x40   : > { %583 = vmatpush1.bf16.msra.mxu1 %v955_v43 }
  0x41   : > { %584 = vmatprep.subr.bf16.mxu1 %v959_v44 }
  0x44   : > { %585 = vmatpush1.bf16.msra.mxu1 %v961_v45 }
  0x45   : > { %586 = vmatprep.subr.bf16.mxu1 %v965_v46 }
  0x48   : > { %587 = vmatpush1.bf16.msra.mxu1 %v967_v47 }
  0x49   : > { %588 = vmatprep.subr.bf16.mxu1 %v971_v48 }
  0x4c   : > { %589 = vmatpush1.bf16.msra.mxu1 %v973_v49 }
  0x4d   : > { %590 = vmatprep.subr.bf16.mxu1 %v977_v50 }
  0x50   : > { %591 = vmatpush1.bf16.msra.mxu1 %v979_v51 }
  0x53   : > { %593 = vmatmul.mubr.bf16.vlgmr.msra.gmra.mrb[0].mxu1 %v825_v52 }
 0x108   : > { %v635_v54 = vpop.f32.mrb[0].mxu0 }
 0x109   : > { %v637_v55 = vpop.f32.mrb[1].mxu0 }
 0x10a   : > { %v639_v56 = vpop.f32.mrb[2].mxu0 }
 0x10b   : > { %v640_v57 = vpop.f32.mrb[3].mxu0 }
 0x126   : > { %v594_v58 = vpop.f32.mrb[0].mxu1 }
 0x127   : > { %v636_v59 = vadd.f32 %v635_v54, %v594_v58  ;;  %v596_v60 = vpop.f32.mrb[1].mxu1 }
 0x128   : > { %v638_v61 = vadd.f32 %v637_v55, %v596_v60  ;;  %v598_v62 = vpop.f32.mrb[2].mxu1 }
 0x129   : > { %642 = vst [vmem:[%s248_s8] sm:$0xff] %v636_v59  ;;  %v599_v63 = vpop.f32.mrb[3].mxu1  ;;  %v659_v0 = vmul.f32 %v636_v59, %v636_v59 }
 0x12a   : > { %643 = vst [vmem:[%s248_s8 + $0x8] sm:$0xff] %v638_v61  ;;  %v652_v1 = vadd.f32 %v638_v61, %v636_v59  ;;  %v660_v2 = vmul.f32 %v638_v61, %v638_v61 }
 0x12c   : > { %653 = vadd.xlane.f32.xlu0 %v652_v1  ;;  %v661_v3 = vadd.f32 %v660_v2, %v659_v0 }
 0x130   : > { %662 = vadd.xlane.f32.xlu0 %v661_v3 }
 0x1b9   : > { %v654_v5 = vpop.xlane.xlu0 %653 }
 0x1ba   : > { %v655_v6 = vadd.f32 %v654_v5, %v651_v4 }
 0x1bc   : > { %657 = vst.msk [vmem:[%s253_s30] sm:$0xff] %vm648_vm0, %v655_v6 }
 0x1bd   : > { %v663_v8 = vpop.xlane.xlu0 %662 }
 0x1be   : > { %v664_v9 = vadd.f32 %v663_v8, %v658_v7 }
 0x1c0   : > { %665 = vst.msk [vmem:[%s257_s11] sm:$0xff] %vm648_vm0, %v664_v9 }
 0x1c1 PF: > { %s15_s17 = sadd.s32 1, %s1005_s17   ;;  %s1149_s15 = smov %s1001_s16 }
 0x1c2   : > { %p12_p5 = scmp.ge.s32.totalorder %s15_s17, 4   ;;  %s1150_s16 = smov %s1152_s18 }
 0x1c4   :  { %14 = sbr.rel (!%p12_p5) target bundleno = 2 (0x2), region = 86 }

// kernel: unet_daft_forward.33
= control target key start
LH: loop header
LB: loop body
LE: loop exit
PB: predicated region body
PF: predicated region fallthrough
CT: control target
= control target key end

     0   :  { %s672_s15 = smov 0   ;;  %s674_s16 = smov 0   ;;  %s723_s0 = inlined_call_operand.vmem [shape: bf16[8,96], index: 0, kind: input, shape index: {}]   ;;  %s724_s1 = inlined_call_operand.vmem [shape: bf16[2,96,256], index: 1, kind: input, shape index: {}]   ;;  %s725_s2 = inlined_call_operand.vmem [shape: f32[2,8,256], index: 2, kind: output, shape index: {0}]   ;;  %s726_s3 = inlined_call_operand.vmem [shape: f32[2,8,1], index: 3, kind: output, shape index: {1}]   ;;  %s727_s4 = inlined_call_operand.vmem [shape: f32[2,8,1], index: 4, kind: output, shape index: {2}]  }
   0x1   :  { %s676_s17 = smov 0  }
   0x2 LB: > { %s27_s18 = sadd.s32 1, %s639_s16  ;;  %p554_p0 = scmp.ge.s32.totalorder %s643_s17, 1  ;;  %s643_s17 = sphi %s676_s17, %s15_s17   ;;  %s639_s16 = sphi %s674_s16, %s729_s16   ;;  %s635_s15 = sphi %s672_s15, %s728_s15  }
   0x3   : > { %p29_p1 = scmp.ge.s32.totalorder %s27_s18, 2  ;;  %p188_p2 = scmp.lt.s32.totalorder %s643_s17, 3 }
   0x5   : > { %s731_s18 = smov (%p29_p1, %s27_s18), 0  ;;  %p189_p3 = pnand %p554_p0, %p188_p2 }
   0x6   : > { %p231_p4 = scmp.lt.s32.totalorder (!%p189_p3), %s635_s15, 1  ;;  %v645_v0 = vmov (!%p189_p3), 0   ;;  %v259_v13 = vld [vmem:[%s723_s0] sm:$0xf] (!%p189_p3)  ;;  %vm332_vm0 = vcmask (!%p189_p3), 785408   ;;  %vm383_vm1 = vcmask (!%p189_p3), 7168  }
   0x7   : > { %192 = sbr.rel (%p189_p3) target bundleno = 407 (0x197), region = 28  ;;  %368 = vmatprep.mubr.bf16.mxu0 (!%p189_p3), %v645_v0  ;;  %v646_v14 = vmov (!%p189_p3), 0.0  }
   0xe   : > { %s733_s15 = smov (!%p231_p4, %s635_s15), 1 }
   0xf   : > { %s576_s19 = smul.u32 96, %s733_s15  ;;  %s558_s25 = sshll.u32 %s733_s15, 3 }
  0x10   : > { %s253_s28 = scalar_lea.vmem %s726_s3, %s558_s25  ;;  %s575_s29 = sshll.u32 %s733_s15, 4 }
  0x11   : > { %s238_s22 = scalar_lea.vmem %s724_s1, %s576_s19  ;;  %384 = vst.msk [vmem:[%s253_s28] sm:$0xff] %vm383_vm1, %v646_v14  ;;  %s248_s6 = scalar_lea.vmem %s725_s2, %s575_s29 }
  0x12   : > { %v603_v1 = vld [vmem:[%s238_s22 + $0x4] ss:$8 sps:$4 sm:$0xff]   ;;  %v605_v2 = vld [vmem:[%s238_s22] ss:$8 sps:$4 sm:$0xff]   ;;  %v606_v3 = vld [vmem:[%s238_s22 + $0x14] ss:$8 sps:$4 sm:$0xff]   ;;  %s257_s9 = scalar_lea.vmem %s727_s4, %s558_s25 }
  0x13   : > { %336 = vmatprep.subr.bf16.mxu0 %v603_v1  ;;  %v608_v4 = vld [vmem:[%s238_s22 + $0x10] ss:$8 sps:$4 sm:$0xff]   ;;  %v609_v5 = vld [vmem:[%s238_s22 + $0x24] ss:$8 sps:$4 sm:$0xff]   ;;  %v611_v6 = vld [vmem:[%s238_s22 + $0x20] ss:$8 sps:$4 sm:$0xff]  }
  0x14   : > { %337 = vmatpush1.bf16.msra.mxu0 %v605_v2  ;;  %v612_v7 = vld [vmem:[%s238_s22 + $0x34] ss:$8 sps:$4 sm:$0xff]   ;;  %v614_v8 = vld [vmem:[%s238_s22 + $0x30] ss:$8 sps:$4 sm:$0xff]   ;;  %v615_v9 = vld [vmem:[%s238_s22 + $0x44] ss:$8 sps:$4 sm:$0xff]  }
  0x15   : > { %338 = vmatprep.subr.bf16.mxu0 %v606_v3  ;;  %v617_v10 = vld [vmem:[%s238_s22 + $0x40] ss:$8 sps:$4 sm:$0xff]   ;;  %v618_v11 = vld [vmem:[%s238_s22 + $0x54] ss:$8 sps:$4 sm:$0xff]   ;;  %v620_v12 = vld [vmem:[%s238_s22 + $0x50] ss:$8 sps:$4 sm:$0xff]  }
  0x16   : > { %385 = vst.msk [vmem:[%s257_s9] sm:$0xff] %vm383_vm1, %v646_v14 }
  0x18   : > { %339 = vmatpush1.bf16.msra.mxu0 %v608_v4  ;;  %v386_v23 = vld [vmem:[%s253_s28] sm:$0xff] }
  0x19   : > { %340 = vmatprep.subr.bf16.mxu0 %v609_v5 }
  0x1c   : > { %341 = vmatpush1.bf16.msra.mxu0 %v611_v6 }
  0x1d   : > { %342 = vmatprep.subr.bf16.mxu0 %v612_v7  ;;  %v393_v26 = vld [vmem:[%s257_s9] sm:$0xff] }
  0x20   : > { %343 = vmatpush1.bf16.msra.mxu0 %v614_v8 }
  0x21   : > { %344 = vmatprep.subr.bf16.mxu0 %v615_v9 }
  0x24   : > { %345 = vmatpush1.bf16.msra.mxu0 %v617_v10 }
  0x25   : > { %346 = vmatprep.subr.bf16.mxu0 %v618_v11 }
  0x28   : > { %347 = vmatpush1.bf16.msra.mxu0 %v620_v12 }
  0x2b   : > { %572 = vmatmul.mubr.msk.bf16.vlgmr.msra.gmra.mrb[0].mxu0 %vm332_vm0, %v259_v13 }
  0xfe   : > { %v370_v15 = vpop.f32.mrb[0].mxu0 }
  0xff   : > { %377 = vst [vmem:[%s248_s6] sm:$0xff] %v370_v15  ;;  %v372_v16 = vpop.f32.mrb[1].mxu0  ;;  %v394_v17 = vmul.f32 %v370_v15, %v370_v15 }
 0x100   : > { %378 = vst [vmem:[%s248_s6 + $0x8] sm:$0xff] %v372_v16  ;;  %v374_v18 = vpop.f32.mrb[2].mxu0  ;;  %v387_v19 = vadd.f32 %v372_v16, %v370_v15  ;;  %v395_v20 = vmul.f32 %v372_v16, %v372_v16 }
 0x101   : > { %v375_v21 = vpop.f32.mrb[3].mxu0 }
 0x102   : > { %388 = vadd.xlane.f32.xlu0 %v387_v19  ;;  %v396_v22 = vadd.f32 %v395_v20, %v394_v17 }
 0x106   : > { %397 = vadd.xlane.f32.xlu0 %v396_v22 }
 0x18f   : > { %v389_v24 = vpop.xlane.xlu0 %388 }
 0x190   : > { %v390_v25 = vadd.f32 %v389_v24, %v386_v23 }
 0x192   : > { %392 = vst.msk [vmem:[%s253_s28] sm:$0xff] %vm383_vm1, %v390_v25 }
 0x193   : > { %v398_v27 = vpop.xlane.xlu0 %397 }
 0x194   : > { %v399_v28 = vadd.f32 %v398_v27, %v393_v26 }
 0x196   : > { %400 = vst.msk [vmem:[%s257_s9] sm:$0xff] %vm383_vm1, %v399_v28 }
 0x197 PF: > { %s15_s17 = sadd.s32 1, %s643_s17   ;;  %s728_s15 = smov %s639_s16 }
 0x198   : > { %p12_p5 = scmp.ge.s32.totalorder %s15_s17, 4   ;;  %s729_s16 = smov %s731_s18 }
 0x19a   :  { %14 = sbr.rel (!%p12_p5) target bundleno = 2 (0x2), region = 86 }

// kernel: unet_daft_forward.35
= control target key start
LH: loop header
LB: loop body
LE: loop exit
PB: predicated region body
PF: predicated region fallthrough
CT: control target
= control target key end

     0   :  { %s782_s15 = smov 0   ;;  %s784_s16 = smov 0   ;;  %s859_s0 = inlined_call_operand.vmem [shape: bf16[8,192], index: 0, kind: input, shape index: {}]   ;;  %s860_s1 = inlined_call_operand.vmem [shape: bf16[2,192,256], index: 1, kind: input, shape index: {}]   ;;  %s861_s2 = inlined_call_operand.vmem [shape: f32[2,8,256], index: 2, kind: output, shape index: {0}]   ;;  %s862_s3 = inlined_call_operand.vmem [shape: f32[2,8,1], index: 3, kind: output, shape index: {1}]   ;;  %s863_s4 = inlined_call_operand.vmem [shape: f32[2,8,1], index: 4, kind: output, shape index: {2}]  }
   0x1   :  { %s786_s17 = smov 0  }
   0x2 LB: > { %s27_s18 = sadd.s32 1, %s750_s16  ;;  %p632_p0 = scmp.ge.s32.totalorder %s754_s17, 1  ;;  %s754_s17 = sphi %s786_s17, %s15_s17   ;;  %s750_s16 = sphi %s784_s16, %s865_s16   ;;  %s746_s15 = sphi %s782_s15, %s864_s15  }
   0x3   : > { %p29_p1 = scmp.ge.s32.totalorder %s27_s18, 2  ;;  %p188_p2 = scmp.lt.s32.totalorder %s754_s17, 3 }
   0x5   : > { %s867_s18 = smov (%p29_p1, %s27_s18), 0  ;;  %p189_p3 = pnand %p632_p0, %p188_p2 }
   0x6   : > { %p231_p4 = scmp.lt.s32.totalorder (!%p189_p3), %s746_s15, 1  ;;  %v259_v0 = vld [vmem:[%s859_s0] sm:$0xff] (!%p189_p3)  ;;  %vm410_vm0 = vcmask (!%p189_p3), 523264   ;;  %vm461_vm1 = vcmask (!%p189_p3), 7168   ;;  %v756_v27 = vmov (!%p189_p3), 0.0  }
   0x7   : > { %192 = sbr.rel (%p189_p3) target bundleno = 431 (0x1af), region = 28  ;;  %v639_v1 = vcombine.high (!%p189_p3), %v259_v0, %v259_v0  ;;  %v638_v26 = vcombine.low (!%p189_p3), %v259_v0, %v259_v0 }
   0x9   : > { %664 = vmatprep.mubr.msk.bf16.mxu0 (!%p189_p3), %vm410_vm0, %v639_v1 }
   0xe   : > { %s869_s15 = smov (!%p231_p4, %s746_s15), 1 }
   0xf   : > { %s668_s21 = smul.u32 192, %s869_s15  ;;  %s636_s25 = sshll.u32 %s869_s15, 3 }
  0x10   : > { %s253_s28 = scalar_lea.vmem %s862_s3, %s636_s25  ;;  %s667_s29 = sshll.u32 %s869_s15, 4 }
  0x11   : > { %s809_s24 = scalar_lea.vmem %s860_s1, %s668_s21  ;;  %462 = vst.msk [vmem:[%s253_s28] sm:$0xff] %vm461_vm1, %v756_v27  ;;  %s248_s6 = scalar_lea.vmem %s861_s2, %s667_s29 }
  0x12   : > { %v694_v2 = vld [vmem:[%s809_s24 + $0x4] ss:$8 sps:$4 sm:$0xff]   ;;  %v696_v3 = vld [vmem:[%s809_s24] ss:$8 sps:$4 sm:$0xff]   ;;  %v697_v4 = vld [vmem:[%s809_s24 + $0x14] ss:$8 sps:$4 sm:$0xff]   ;;  %s257_s9 = scalar_lea.vmem %s863_s4, %s636_s25 }
  0x13   : > { %414 = vmatprep.subr.bf16.mxu0 %v694_v2  ;;  %v699_v5 = vld [vmem:[%s809_s24 + $0x10] ss:$8 sps:$4 sm:$0xff]   ;;  %v700_v6 = vld [vmem:[%s809_s24 + $0x24] ss:$8 sps:$4 sm:$0xff]   ;;  %v702_v7 = vld [vmem:[%s809_s24 + $0x20] ss:$8 sps:$4 sm:$0xff]  }
  0x14   : > { %415 = vmatpush1.bf16.msra.mxu0 %v696_v3  ;;  %v703_v8 = vld [vmem:[%s809_s24 + $0x34] ss:$8 sps:$4 sm:$0xff]   ;;  %v705_v9 = vld [vmem:[%s809_s24 + $0x30] ss:$8 sps:$4 sm:$0xff]   ;;  %v706_v10 = vld [vmem:[%s809_s24 + $0x44] ss:$8 sps:$4 sm:$0xff]  }
  0x15   : > { %416 = vmatprep.subr.bf16.mxu0 %v697_v4  ;;  %v708_v11 = vld [vmem:[%s809_s24 + $0x40] ss:$8 sps:$4 sm:$0xff]   ;;  %v709_v12 = vld [vmem:[%s809_s24 + $0x54] ss:$8 sps:$4 sm:$0xff]   ;;  %v711_v13 = vld [vmem:[%s809_s24 + $0x50] ss:$8 sps:$4 sm:$0xff]  }
  0x16   : > { %v712_v14 = vld [vmem:[%s809_s24 + $0x64] ss:$8 sps:$4 sm:$0xff]   ;;  %v714_v15 = vld [vmem:[%s809_s24 + $0x60] ss:$8 sps:$4 sm:$0xff]   ;;  %v715_v16 = vld [vmem:[%s809_s24 + $0x74] ss:$8 sps:$4 sm:$0xff]  }
  0x17   : > { %v717_v17 = vld [vmem:[%s809_s24 + $0x70] ss:$8 sps:$4 sm:$0xff]   ;;  %v718_v18 = vld [vmem:[%s809_s24 + $0x84] ss:$8 sps:$4 sm:$0xff]   ;;  %v720_v19 = vld [vmem:[%s809_s24 + $0x80] ss:$8 sps:$4 sm:$0xff]  }
  0x18   : > { %417 = vmatpush1.bf16.msra.mxu0 %v699_v5  ;;  %v721_v20 = vld [vmem:[%s809_s24 + $0x94] ss:$8 sps:$4 sm:$0xff]   ;;  %v723_v21 = vld [vmem:[%s809_s24 + $0x90] ss:$8 sps:$4 sm:$0xff]   ;;  %v724_v22 = vld [vmem:[%s809_s24 + $0xa4] ss:$8 sps:$4 sm:$0xff]  }
  0x19   : > { %418 = vmatprep.subr.bf16.mxu0 %v700_v6  ;;  %v726_v23 = vld [vmem:[%s809_s24 + $0xa0] ss:$8 sps:$4 sm:$0xff]   ;;  %v727_v24 = vld [vmem:[%s809_s24 + $0xb4] ss:$8 sps:$4 sm:$0xff]   ;;  %v729_v25 = vld [vmem:[%s809_s24 + $0xb0] ss:$8 sps:$4 sm:$0xff]  }
  0x1a   : > { %463 = vst.msk [vmem:[%s257_s9] sm:$0xff] %vm461_vm1, %v756_v27  ;;  %v464_v36 = vld [vmem:[%s253_s28] sm:$0xff] }
  0x1c   : > { %419 = vmatpush1.bf16.msra.mxu0 %v702_v7 }
  0x1d   : > { %420 = vmatprep.subr.bf16.mxu0 %v703_v8 }
  0x20   : > { %421 = vmatpush1.bf16.msra.mxu0 %v705_v9 }
  0x21   : > { %422 = vmatprep.subr.bf16.mxu0 %v706_v10  ;;  %v471_v39 = vld [vmem:[%s257_s9] sm:$0xff] }
  0x24   : > { %423 = vmatpush1.bf16.msra.mxu0 %v708_v11 }
  0x25   : > { %424 = vmatprep.subr.bf16.mxu0 %v709_v12 }
  0x28   : > { %425 = vmatpush1.bf16.msra.mxu0 %v711_v13 }
  0x29   : > { %426 = vmatprep.subr.bf16.mxu0 %v712_v14 }
  0x2c   : > { %427 = vmatpush1.bf16.msra.mxu0 %v714_v15 }
  0x2d   : > { %428 = vmatprep.subr.bf16.mxu0 %v715_v16 }
  0x30   : > { %429 = vmatpush1.bf16.msra.mxu0 %v717_v17 }
  0x31   : > { %430 = vmatprep.subr.bf16.mxu0 %v718_v18 }
  0x34   : > { %431 = vmatpush1.bf16.msra.mxu0 %v720_v19 }
  0x35   : > { %432 = vmatprep.subr.bf16.mxu0 %v721_v20 }
  0x38   : > { %433 = vmatpush1.bf16.msra.mxu0 %v723_v21 }
  0x39   : > { %434 = vmatprep.subr.bf16.mxu0 %v724_v22 }
  0x3c   : > { %435 = vmatpush1.bf16.msra.mxu0 %v726_v23 }
  0x3d   : > { %436 = vmatprep.subr.bf16.mxu0 %v727_v24 }
  0x40   : > { %437 = vmatpush1.bf16.msra.mxu0 %v729_v25 }
  0x43   : > { %447 = vmatmul.mubr.bf16.vlgmr.msra.gmra.mrb[0].mxu0 %v638_v26 }
 0x116   : > { %v448_v28 = vpop.f32.mrb[0].mxu0 }
 0x117   : > { %455 = vst [vmem:[%s248_s6] sm:$0xff] %v448_v28  ;;  %v450_v29 = vpop.f32.mrb[1].mxu0  ;;  %v472_v30 = vmul.f32 %v448_v28, %v448_v28 }
 0x118   : > { %456 = vst [vmem:[%s248_s6 + $0x8] sm:$0xff] %v450_v29  ;;  %v452_v31 = vpop.f32.mrb[2].mxu0  ;;  %v465_v32 = vadd.f32 %v450_v29, %v448_v28  ;;  %v473_v33 = vmul.f32 %v450_v29, %v450_v29 }
 0x119   : > { %v453_v34 = vpop.f32.mrb[3].mxu0 }
 0x11a   : > { %466 = vadd.xlane.f32.xlu0 %v465_v32  ;;  %v474_v35 = vadd.f32 %v473_v33, %v472_v30 }
 0x11e   : > { %475 = vadd.xlane.f32.xlu0 %v474_v35 }
 0x1a7   : > { %v467_v37 = vpop.xlane.xlu0 %466 }
 0x1a8   : > { %v468_v38 = vadd.f32 %v467_v37, %v464_v36 }
 0x1aa   : > { %470 = vst.msk [vmem:[%s253_s28] sm:$0xff] %vm461_vm1, %v468_v38 }
 0x1ab   : > { %v476_v40 = vpop.xlane.xlu0 %475 }
 0x1ac   : > { %v477_v41 = vadd.f32 %v476_v40, %v471_v39 }
 0x1ae   : > { %478 = vst.msk [vmem:[%s257_s9] sm:$0xff] %vm461_vm1, %v477_v41 }
 0x1af PF: > { %s15_s17 = sadd.s32 1, %s754_s17   ;;  %s864_s15 = smov %s750_s16 }
 0x1b0   : > { %p12_p5 = scmp.ge.s32.totalorder %s15_s17, 4   ;;  %s865_s16 = smov %s867_s18 }
 0x1b2   :  { %14 = sbr.rel (!%p12_p5) target bundleno = 2 (0x2), region = 86 }

// kernel: unet_daft_forward.38
= control target key start
LH: loop header
LB: loop body
LE: loop exit
PB: predicated region body
PF: predicated region fallthrough
CT: control target
= control target key end

     0   :  { %s720_s12 = smov 0   ;;  %s722_s13 = smov 0   ;;  %s826_s0 = inlined_call_operand.vmem [shape: bf16[8,16], index: 0, kind: input, shape index: {}]   ;;  %s827_s1 = inlined_call_operand.vmem [shape: bf16[2,16,2048], index: 1, kind: input, shape index: {}]   ;;  %s828_s2 = inlined_call_operand.vmem [shape: f32[8,1], index: 2, kind: input, shape index: {}]   ;;  %s829_s3 = inlined_call_operand.vmem [shape: f32[2,8,2048], index: 3, kind: output, shape index: {}]  }
   0x1   :  { %s724_s14 = smov 0   ;;  %s726_s15 = smov 0  }
   0x2   :  { %s728_s16 = smov 0   ;;  %s730_s17 = smov 0  }
   0x3   :  { %s732_s18 = smov 0  }
   0x4 LB: > { %s22_s19 = sadd.s32 1, %s689_s16  ;;  %s25_s20 = sadd.s32 1, %s693_s17  ;;  %s697_s18 = sphi %s732_s18, %s13_s18   ;;  %s693_s17 = sphi %s730_s17, %s835_s17   ;;  %s689_s16 = sphi %s728_s16, %s834_s16   ;;  %s685_s15 = sphi %s726_s15, %s833_s15   ;;  %s681_s14 = sphi %s724_s14, %s832_s14   ;;  %s677_s13 = sphi %s722_s13, %s831_s13   ;;  %s673_s12 = sphi %s720_s12, %s830_s12  }
   0x5   : > { %p23_p0 = scmp.ge.s32.totalorder %s22_s19, 2  ;;  %p62_p1 = scmp.ne.s32.totalorder %s677_s13, %s673_s12 }
   0x6   : > { %p63_p2 = scmp.eq.s32.totalorder %s697_s18, 0  ;;  %s55_s24 = sadd.s32 1, %s677_s13 }
   0x7   : > { %s837_s19 = smov (%p23_p0, %s22_s19), 0  ;;  %s839_s20 = smov (!%p23_p0, %s25_s20), %s693_s17 }
   0x8   : > { %p64_p3 = por %p63_p2, %p62_p1  ;;  %p27_p4 = scmp.ge.s32.totalorder %s839_s20, 2 }
   0x9   : > { %s51_s21 = ssub.s32 %s689_s16, %s837_s19  ;;  %p561_p6 = scmp.ge.s32.totalorder %s697_s18, 4 }
   0xa   : > { %s841_s20 = smov (%p27_p4, %s839_s20), 0 }
   0xb   : > { %s50_s22 = ssub.s32 %s693_s17, %s841_s20  ;;  %143 = sbr.rel (%p561_p6) target bundleno = 29 (0x1d), region = 24 }
   0xc   : > { %s52_s23 = sor.u32 %s51_s21, %s50_s22 }
   0xd   : > { %p53_p5 = scmp.eq.s32.totalorder %s52_s23, 0 }
   0xf   : > { %s771_s25 = scalar_select %p53_p5, %s677_s13, %s55_s24  }
  0x12   : > { %146 = sbr.rel (!%p64_p3) target bundleno = 29 (0x1d), region = 28  ;;  %s148_s26 = sand.u32 (%p64_p3), 1, %s677_s13  }
  0x13   : > { %s563_s27 = sshll.u32 (%p64_p3), %s689_s16, 3  ;;  %s562_s28 = sshll.u32 (%p64_p3), %s148_s26, 6 }
  0x14   : > { %s564_s29 = sshll.u32 (%p64_p3), %s693_s17, 5  ;;  %s150_s8 = scalar_lea.vmem (%p64_p3), [#allocation2], %s562_s28 }
  0x15   : > { %s153_s30 = sadd.s32 (%p64_p3), %s564_s29, %s563_s27 }
  0x16   : > { %s565_s4 = sshll.u32 (%p64_p3), %s153_s30, 2 }
  0x17   : > { %s155_s7 = scalar_lea.vmem (%p64_p3), %s827_s1, %s565_s4 }
  0x18   : > { %v168_v0 = vld [vmem:[%s155_s7] sm:$0xff] (%p64_p3)  ;;  %v170_v1 = vld [vmem:[%s155_s7 + $0x8] sm:$0xff] (%p64_p3)  ;;  %v172_v2 = vld [vmem:[%s155_s7 + $0x10] sm:$0xff] (%p64_p3) }
  0x19   : > { %169 = vst [vmem:[%s150_s8] sm:$0xff] %v168_v0  ;;  %171 = vst [vmem:[%s150_s8 + $0x8] sm:$0xff] %v170_v1  ;;  %v174_v3 = vld [vmem:[%s155_s7 + $0x18] sm:$0xff]  ;;  %v176_v4 = vld [vmem:[%s155_s7 + $0x40] sm:$0xff] }
  0x1a   : > { %173 = vst [vmem:[%s150_s8 + $0x10] sm:$0xff] %v172_v2  ;;  %v178_v5 = vld [vmem:[%s155_s7 + $0x48] sm:$0xff]  ;;  %175 = vst [vmem:[%s150_s8 + $0x18] sm:$0xff] %v174_v3  ;;  %v180_v6 = vld [vmem:[%s155_s7 + $0x50] sm:$0xff] }
  0x1b   : > { %177 = vst [vmem:[%s150_s8 + $0x20] sm:$0xff] %v176_v4  ;;  %179 = vst [vmem:[%s150_s8 + $0x28] sm:$0xff] %v178_v5  ;;  %v182_v7 = vld [vmem:[%s155_s7 + $0x58] sm:$0xff] }
  0x1c   : > { %181 = vst [vmem:[%s150_s8 + $0x30] sm:$0xff] %v180_v6  ;;  %183 = vst [vmem:[%s150_s8 + $0x38] sm:$0xff] %v182_v7 }
  0x1d PF: > { %p566_p7 = scmp.ge.s32.totalorder %s697_s18, 1  ;;  %p188_p8 = scmp.lt.s32.totalorder %s697_s18, 5 }
  0x1f   : > { %p189_p9 = pnand %p566_p7, %p188_p8 }
  0x20   : > { %s195_s9 = sand.u32 (!%p189_p9), 1, %s673_s12   ;;  %v243_v8 = vld [vmem:[%s828_s2] sm:$0xff] (!%p189_p9)  ;;  %v699_v9 = vmov (!%p189_p9), 0   ;;  %vm289_vm0 = vcmask (!%p189_p9), 130048   ;;  %s568_s24 = sshll.u32 (!%p189_p9), %s681_s14, 3 }
  0x21   : > { %192 = sbr.rel (%p189_p9) target bundleno = 267 (0x10b), region = 51  ;;  %s567_s21 = sshll.u32 (!%p189_p9), %s195_s9, 6  ;;  %325 = vmatprep.mubr.bf16.mxu0 (!%p189_p9), %v699_v9  ;;  %366 = vmatprep.mubr.bf16.mxu1 (!%p189_p9), %v699_v9  ;;  %v234_v24 = vld [vmem:[%s826_s0] sm:$0xf] (!%p189_p9) }
  0x22   : > { %642 = vset.pattern.permute.xlu0 (!%p189_p9), %v699_v9  ;;  %s197_s22 = scalar_lea.vmem (!%p189_p9), [#allocation2], %s567_s21  ;;  %p224_p10 = scmp.lt.s32.totalorder (!%p189_p9), %s685_s15, 1 }
  0x23   : > { %v235_v10 = vld [vmem:[%s197_s22] sm:$0xff] (!%p189_p9)  ;;  %v236_v12 = vld [vmem:[%s197_s22 + $0x8] sm:$0xff] (!%p189_p9)  ;;  %246 = vperm.xlu0 (!%p189_p9), %642, %v243_v8   ;;  %v237_v16 = vld [vmem:[%s197_s22 + $0x10] sm:$0xff] (!%p189_p9)  ;;  %p226_p11 = scmp.lt.s32.totalorder (!%p189_p9), %s568_s24, 15 }
  0x24   : > { %v239_v11 = vld [vmem:[%s197_s22 + $0x20] sm:$0xff] (!%p189_p9)  ;;  %v240_v14 = vld [vmem:[%s197_s22 + $0x28] sm:$0xff] (!%p189_p9)  ;;  %v241_v17 = vld [vmem:[%s197_s22 + $0x30] sm:$0xff] (!%p189_p9) }
  0x25   : > { %v572_v13 = vcombine.high (!%p189_p9), %v235_v10, %v239_v11  ;;  %v571_v15 = vcombine.low (!%p189_p9), %v235_v10, %v239_v11  ;;  %v574_v18 = vcombine.high (!%p189_p9), %v236_v12, %v240_v14  ;;  %v573_v19 = vcombine.low (!%p189_p9), %v236_v12, %v240_v14  ;;  %v238_v21 = vld [vmem:[%s197_s22 + $0x18] sm:$0xff] (!%p189_p9) }
  0x26   : > { %v576_v20 = vcombine.high (!%p189_p9), %v237_v16, %v241_v17  ;;  %v242_v22 = vld [vmem:[%s197_s22 + $0x38] sm:$0xff] (!%p189_p9)  ;;  %v575_v25 = vcombine.low (!%p189_p9), %v237_v16, %v241_v17 }
  0x27   : > { %293 = vmatprep.subr.bf16.mxu0 (!%p189_p9), %v572_v13  ;;  %v578_v23 = vcombine.high (!%p189_p9), %v238_v21, %v242_v22  ;;  %334 = vmatprep.subr.bf16.mxu1 (!%p189_p9), %v574_v18  ;;  %v577_v26 = vcombine.low (!%p189_p9), %v238_v21, %v242_v22 }
  0x28   : > { %294 = vmatpush1.bf16.msra.mxu0 %v571_v15  ;;  %335 = vmatpush1.bf16.msra.mxu1 %v573_v19  ;;  %s843_s15 = smov (!%p224_p10, %s685_s15), 1  ;;  %s845_s24 = smov (!%p226_p11, %s568_s24), 15 }
  0x29   : > { %375 = vmatprep.subr.bf16.mxu0 %v576_v20  ;;  %416 = vmatprep.subr.bf16.mxu1 %v578_v23  ;;  %s569_s26 = sshll.u32 %s843_s15, 4 }
  0x2a   : > { %s229_s27 = sadd.s32 %s569_s26, %s845_s24 }
  0x2b   : > { %579 = vmatmul.mubr.msk.bf16.vlgmr.msra.gmra.mrb[0].mxu0 %vm289_vm0, %v234_v24  ;;  %580 = vmatmul.mubr.msk.bf16.vlgmr.msra.gmra.mrb[0].mxu1 %vm289_vm0, %v234_v24  ;;  %s570_s28 = sshll.u32 %s229_s27, 3 }
  0x2c   : > { %376 = vmatpush1.bf16.msra.mxu0 %v575_v25  ;;  %417 = vmatpush1.bf16.msra.mxu1 %v577_v26  ;;  %s795_s4 = scalar_lea.vmem %s829_s3, %s570_s28 }
  0x2d   : > { %407 = vmatprep.mubr.bf16.mxu0 %v699_v9  ;;  %448 = vmatprep.mubr.bf16.mxu1 %v699_v9 }
  0x33   : > { %581 = vmatmul.mubr.msk.bf16.vlgmr.msra.gmra.mrb[4].mxu0 %vm289_vm0, %v234_v24  ;;  %582 = vmatmul.mubr.msk.bf16.vlgmr.msra.gmra.mrb[4].mxu1 %vm289_vm0, %v234_v24 }
  0xa2   : > { %v247_v27 = vpop.permute.xlu0 %246 }
  0xfe   : > { %v327_v28 = vpop.f32.mrb[0].mxu0  ;;  %v368_v29 = vpop.f32.mrb[0].mxu1 }
  0xff   : > { %v328_v30 = vadd.f32 %v327_v28, %v247_v27  ;;  %v329_v31 = vpop.f32.mrb[1].mxu0  ;;  %v369_v32 = vadd.f32 %v368_v29, %v247_v27  ;;  %v370_v34 = vpop.f32.mrb[1].mxu1 }
 0x100   : > { %v330_v33 = vadd.f32 %v329_v31, %v247_v27  ;;  %v331_v35 = vpop.f32.mrb[2].mxu0  ;;  %v371_v36 = vadd.f32 %v370_v34, %v247_v27  ;;  %v372_v37 = vpop.f32.mrb[2].mxu1 }
 0x101   : > { %457 = vst [vmem:[%s795_s4] sm:$0xff] %v328_v30  ;;  %v332_v38 = vpop.f32.mrb[3].mxu0  ;;  %459 = vst [vmem:[%s795_s4 + $0x10] sm:$0xff] %v369_v32  ;;  %v373_v39 = vpop.f32.mrb[3].mxu1 }
 0x102   : > { %458 = vst [vmem:[%s795_s4 + $0x8] sm:$0xff] %v330_v33  ;;  %460 = vst [vmem:[%s795_s4 + $0x18] sm:$0xff] %v371_v36 }
 0x106   : > { %v409_v40 = vpop.f32.mrb[4].mxu0  ;;  %v450_v42 = vpop.f32.mrb[4].mxu1 }
 0x107   : > { %v410_v41 = vadd.f32 %v409_v40, %v247_v27  ;;  %v411_v43 = vpop.f32.mrb[5].mxu0  ;;  %v451_v44 = vadd.f32 %v450_v42, %v247_v27  ;;  %v452_v46 = vpop.f32.mrb[5].mxu1 }
 0x108   : > { %v412_v45 = vadd.f32 %v411_v43, %v247_v27  ;;  %v413_v47 = vpop.f32.mrb[6].mxu0  ;;  %v453_v48 = vadd.f32 %v452_v46, %v247_v27  ;;  %v454_v49 = vpop.f32.mrb[6].mxu1 }
 0x109   : > { %461 = vst [vmem:[%s795_s4 + $0x20] sm:$0xff] %v410_v41  ;;  %v414_v50 = vpop.f32.mrb[7].mxu0  ;;  %463 = vst [vmem:[%s795_s4 + $0x30] sm:$0xff] %v451_v44  ;;  %v455_v51 = vpop.f32.mrb[7].mxu1 }
 0x10a   : > { %462 = vst [vmem:[%s795_s4 + $0x28] sm:$0xff] %v412_v45  ;;  %464 = vst [vmem:[%s795_s4 + $0x38] sm:$0xff] %v453_v48 }
 0x10b PF: > { %s13_s18 = sadd.s32 1, %s697_s18   ;;  %s830_s12 = smov %s677_s13 }
 0x10c   : > { %p10_p12 = scmp.ge.s32.totalorder %s13_s18, 6   ;;  %s831_s13 = smov %s771_s25 }
 0x10d   : > { %s832_s14 = smov %s689_s16  ;;  %s833_s15 = smov %s693_s17 }
 0x10e   : > { %s834_s16 = smov %s837_s19  ;;  %s835_s17 = smov %s841_s20 }
 0x10f   :  { %12 = sbr.rel (!%p10_p12) target bundleno = 4 (0x4), region = 90 }

// kernel: unet_daft_forward.42
= control target key start
LH: loop header
LB: loop body
LE: loop exit
PB: predicated region body
PF: predicated region fallthrough
CT: control target
= control target key end

     0   :  { %s792_s12 = smov 0   ;;  %s794_s13 = smov 0   ;;  %s938_s0 = inlined_call_operand.vmem [shape: bf16[8,32], index: 0, kind: input, shape index: {}]   ;;  %s939_s1 = inlined_call_operand.vmem [shape: bf16[2,32,2048], index: 1, kind: input, shape index: {}]   ;;  %s940_s2 = inlined_call_operand.vmem [shape: f32[8,1], index: 2, kind: input, shape index: {}]   ;;  %s941_s3 = inlined_call_operand.vmem [shape: f32[2,8,2048], index: 3, kind: output, shape index: {}]  }
   0x1   :  { %s796_s14 = smov 0   ;;  %s798_s15 = smov 0  }
   0x2   :  { %s800_s16 = smov 0   ;;  %s802_s17 = smov 0  }
   0x3   :  { %s804_s18 = smov 0  }
   0x4 LB: > { %s22_s19 = sadd.s32 1, %s761_s16  ;;  %s25_s20 = sadd.s32 1, %s765_s17  ;;  %s769_s18 = sphi %s804_s18, %s13_s18   ;;  %s765_s17 = sphi %s802_s17, %s947_s17   ;;  %s761_s16 = sphi %s800_s16, %s946_s16   ;;  %s757_s15 = sphi %s798_s15, %s945_s15   ;;  %s753_s14 = sphi %s796_s14, %s944_s14   ;;  %s749_s13 = sphi %s794_s13, %s943_s13   ;;  %s745_s12 = sphi %s792_s12, %s942_s12  }
   0x5   : > { %p23_p0 = scmp.ge.s32.totalorder %s22_s19, 2  ;;  %p62_p1 = scmp.ne.s32.totalorder %s749_s13, %s745_s12 }
   0x6   : > { %p63_p2 = scmp.eq.s32.totalorder %s769_s18, 0  ;;  %s55_s24 = sadd.s32 1, %s749_s13 }
   0x7   : > { %s949_s19 = smov (%p23_p0, %s22_s19), 0  ;;  %s951_s20 = smov (!%p23_p0, %s25_s20), %s765_s17 }
   0x8   : > { %p64_p3 = por %p63_p2, %p62_p1  ;;  %p27_p4 = scmp.ge.s32.totalorder %s951_s20, 2 }
   0x9   : > { %s51_s21 = ssub.s32 %s761_s16, %s949_s19  ;;  %p625_p6 = scmp.ge.s32.totalorder %s769_s18, 4 }
   0xa   : > { %s953_s20 = smov (%p27_p4, %s951_s20), 0 }
   0xb   : > { %s50_s22 = ssub.s32 %s765_s17, %s953_s20  ;;  %143 = sbr.rel (%p625_p6) target bundleno = 33 (0x21), region = 24 }
   0xc   : > { %s52_s23 = sor.u32 %s51_s21, %s50_s22 }
   0xd   : > { %p53_p5 = scmp.eq.s32.totalorder %s52_s23, 0 }
   0xf   : > { %s843_s25 = scalar_select %p53_p5, %s749_s13, %s55_s24  }
  0x12   : > { %146 = sbr.rel (!%p64_p3) target bundleno = 33 (0x21), region = 28  ;;  %s148_s26 = sand.u32 (%p64_p3), 1, %s749_s13  }
  0x13   : > { %s627_s27 = sshll.u32 (%p64_p3), %s761_s16, 3  ;;  %s626_s28 = sshll.u32 (%p64_p3), %s148_s26, 7 }
  0x14   : > { %s628_s29 = sshll.u32 (%p64_p3), %s765_s17, 6  ;;  %s150_s8 = scalar_lea.vmem (%p64_p3), [#allocation2], %s626_s28 }
  0x15   : > { %s153_s30 = sadd.s32 (%p64_p3), %s628_s29, %s627_s27 }
  0x16   : > { %s629_s4 = sshll.u32 (%p64_p3), %s153_s30, 2 }
  0x17   : > { %s852_s7 = scalar_lea.vmem (%p64_p3), %s939_s1, %s629_s4 }
  0x18   : > { %v168_v0 = vld [vmem:[%s852_s7] sm:$0xff] (%p64_p3)  ;;  %v170_v1 = vld [vmem:[%s852_s7 + $0x8] sm:$0xff] (%p64_p3)  ;;  %v172_v2 = vld [vmem:[%s852_s7 + $0x10] sm:$0xff] (%p64_p3) }
  0x19   : > { %169 = vst [vmem:[%s150_s8] sm:$0xff] %v168_v0  ;;  %171 = vst [vmem:[%s150_s8 + $0x8] sm:$0xff] %v170_v1  ;;  %v174_v3 = vld [vmem:[%s852_s7 + $0x18] sm:$0xff]  ;;  %v176_v4 = vld [vmem:[%s852_s7 + $0x40] sm:$0xff] }
  0x1a   : > { %173 = vst [vmem:[%s150_s8 + $0x10] sm:$0xff] %v172_v2  ;;  %v178_v5 = vld [vmem:[%s852_s7 + $0x48] sm:$0xff]  ;;  %175 = vst [vmem:[%s150_s8 + $0x18] sm:$0xff] %v174_v3  ;;  %v180_v6 = vld [vmem:[%s852_s7 + $0x50] sm:$0xff] }
  0x1b   : > { %177 = vst [vmem:[%s150_s8 + $0x20] sm:$0xff] %v176_v4  ;;  %179 = vst [vmem:[%s150_s8 + $0x28] sm:$0xff] %v178_v5  ;;  %v182_v7 = vld [vmem:[%s852_s7 + $0x58] sm:$0xff]  ;;  %v184_v8 = vld [vmem:[%s852_s7 + $0x80] sm:$0xff] }
  0x1c   : > { %181 = vst [vmem:[%s150_s8 + $0x30] sm:$0xff] %v180_v6  ;;  %183 = vst [vmem:[%s150_s8 + $0x38] sm:$0xff] %v182_v7  ;;  %v186_v9 = vld [vmem:[%s852_s7 + $0x88] sm:$0xff]  ;;  %v188_v10 = vld [vmem:[%s852_s7 + $0x90] sm:$0xff] }
  0x1d   : > { %185 = vst [vmem:[%s150_s8 + $0x40] sm:$0xff] %v184_v8  ;;  %v190_v11 = vld [vmem:[%s852_s7 + $0x98] sm:$0xff]  ;;  %187 = vst [vmem:[%s150_s8 + $0x48] sm:$0xff] %v186_v9  ;;  %v192_v12 = vld [vmem:[%s852_s7 + $0xc0] sm:$0xff] }
  0x1e   : > { %189 = vst [vmem:[%s150_s8 + $0x50] sm:$0xff] %v188_v10  ;;  %191 = vst [vmem:[%s150_s8 + $0x58] sm:$0xff] %v190_v11  ;;  %v194_v13 = vld [vmem:[%s852_s7 + $0xc8] sm:$0xff]  ;;  %v196_v14 = vld [vmem:[%s852_s7 + $0xd0] sm:$0xff] }
  0x1f   : > { %193 = vst [vmem:[%s150_s8 + $0x60] sm:$0xff] %v192_v12  ;;  %195 = vst [vmem:[%s150_s8 + $0x68] sm:$0xff] %v194_v13  ;;  %v198_v15 = vld [vmem:[%s852_s7 + $0xd8] sm:$0xff] }
  0x20   : > { %197 = vst [vmem:[%s150_s8 + $0x70] sm:$0xff] %v196_v14  ;;  %199 = vst [vmem:[%s150_s8 + $0x78] sm:$0xff] %v198_v15 }
  0x21 PF: > { %p630_p7 = scmp.ge.s32.totalorder %s769_s18, 1  ;;  %p204_p8 = scmp.lt.s32.totalorder %s769_s18, 5 }
  0x23   : > { %p205_p9 = pnand %p630_p7, %p204_p8 }
  0x24   : > { %s211_s9 = sand.u32 (!%p205_p9), 1, %s745_s12   ;;  %v267_v16 = vld [vmem:[%s940_s2] sm:$0xff] (!%p205_p9)  ;;  %v771_v17 = vmov (!%p205_p9), 0   ;;  %vm353_vm0 = vcmask (!%p205_p9), 261120   ;;  %s632_s24 = sshll.u32 (!%p205_p9), %s753_s14, 3 }
  0x25   : > { %208 = sbr.rel (%p205_p9) target bundleno = 275 (0x113), region = 51  ;;  %s631_s21 = sshll.u32 (!%p205_p9), %s211_s9, 7  ;;  %389 = vmatprep.mubr.bf16.mxu0 (!%p205_p9), %v771_v17  ;;  %430 = vmatprep.mubr.bf16.mxu1 (!%p205_p9), %v771_v17  ;;  %v250_v44 = vld [vmem:[%s938_s0] sm:$0xf] (!%p205_p9) }
  0x26   : > { %714 = vset.pattern.permute.xlu0 (!%p205_p9), %v771_v17  ;;  %s876_s22 = scalar_lea.vmem (!%p205_p9), [#allocation2], %s631_s21  ;;  %p240_p10 = scmp.lt.s32.totalorder (!%p205_p9), %s757_s15, 1 }
  0x27   : > { %v251_v18 = vld [vmem:[%s876_s22] sm:$0xff] (!%p205_p9)  ;;  %v252_v20 = vld [vmem:[%s876_s22 + $0x8] sm:$0xff] (!%p205_p9)  ;;  %270 = vperm.xlu0 (!%p205_p9), %714, %v267_v16   ;;  %v253_v31 = vld [vmem:[%s876_s22 + $0x10] sm:$0xff] (!%p205_p9)  ;;  %p242_p11 = scmp.lt.s32.totalorder (!%p205_p9), %s632_s24, 15 }
  0x28   : > { %v255_v19 = vld [vmem:[%s876_s22 + $0x20] sm:$0xff] (!%p205_p9)  ;;  %v256_v22 = vld [vmem:[%s876_s22 + $0x28] sm:$0xff] (!%p205_p9)  ;;  %v257_v33 = vld [vmem:[%s876_s22 + $0x30] sm:$0xff] (!%p205_p9) }
  0x29   : > { %v636_v21 = vcombine.high (!%p205_p9), %v251_v18, %v255_v19  ;;  %v635_v23 = vcombine.low (!%p205_p9), %v251_v18, %v255_v19  ;;  %v259_v24 = vld [vmem:[%s876_s22 + $0x40] sm:$0xff] (!%p205_p9)  ;;  %v638_v26 = vcombine.high (!%p205_p9), %v252_v20, %v256_v22  ;;  %v637_v27 = vcombine.low (!%p205_p9), %v252_v20, %v256_v22  ;;  %v260_v29 = vld [vmem:[%s876_s22 + $0x48] sm:$0xff] (!%p205_p9)  ;;  %v254_v34 = vld [vmem:[%s876_s22 + $0x18] sm:$0xff] (!%p205_p9) }
  0x2a   : > { %v263_v25 = vld [vmem:[%s876_s22 + $0x60] sm:$0xff] (!%p205_p9)  ;;  %v264_v30 = vld [vmem:[%s876_s22 + $0x68] sm:$0xff] (!%p205_p9)  ;;  %v258_v35 = vld [vmem:[%s876_s22 + $0x38] sm:$0xff] (!%p205_p9)  ;;  %v640_v38 = vcombine.high (!%p205_p9), %v253_v31, %v257_v33  ;;  %v639_v45 = vcombine.low (!%p205_p9), %v253_v31, %v257_v33 }
  0x2b   : > { %v644_v28 = vcombine.high (!%p205_p9), %v259_v24, %v263_v25  ;;  %357 = vmatprep.subr.bf16.mxu0 (!%p205_p9), %v636_v21  ;;  %v646_v32 = vcombine.high (!%p205_p9), %v260_v29, %v264_v30  ;;  %398 = vmatprep.subr.bf16.mxu1 (!%p205_p9), %v638_v26  ;;  %v643_v36 = vcombine.low (!%p205_p9), %v259_v24, %v263_v25  ;;  %v261_v40 = vld [vmem:[%s876_s22 + $0x50] sm:$0xff] (!%p205_p9)  ;;  %v262_v42 = vld [vmem:[%s876_s22 + $0x58] sm:$0xff] (!%p205_p9) }
  0x2c   : > { %358 = vmatpush1.bf16.msra.mxu0 %v635_v23  ;;  %399 = vmatpush1.bf16.msra.mxu1 %v637_v27  ;;  %v645_v37 = vcombine.low %v260_v29, %v264_v30  ;;  %v642_v39 = vcombine.high %v254_v34, %v258_v35  ;;  %v265_v41 = vld [vmem:[%s876_s22 + $0x70] sm:$0xff]  ;;  %v266_v43 = vld [vmem:[%s876_s22 + $0x78] sm:$0xff]  ;;  %v641_v46 = vcombine.low %v254_v34, %v258_v35  ;;  %s955_s15 = smov (!%p240_p10, %s757_s15), 1  ;;  %s957_s24 = smov (!%p242_p11, %s632_s24), 15 }
  0x2d   : > { %359 = vmatprep.subr.bf16.mxu0 %v644_v28  ;;  %400 = vmatprep.subr.bf16.mxu1 %v646_v32  ;;  %v648_v47 = vcombine.high %v261_v40, %v265_v41  ;;  %v650_v48 = vcombine.high %v262_v42, %v266_v43  ;;  %v647_v49 = vcombine.low %v261_v40, %v265_v41  ;;  %s633_s26 = sshll.u32 %s955_s15, 4 }
  0x2e   : > { %v649_v50 = vcombine.low %v262_v42, %v266_v43  ;;  %s245_s27 = sadd.s32 %s633_s26, %s957_s24 }
  0x2f   : > { %s634_s28 = sshll.u32 %s245_s27, 3 }
  0x30   : > { %360 = vmatpush1.bf16.msra.mxu0 %v643_v36  ;;  %401 = vmatpush1.bf16.msra.mxu1 %v645_v37  ;;  %s907_s4 = scalar_lea.vmem %s941_s3, %s634_s28 }
  0x31   : > { %439 = vmatprep.subr.bf16.mxu0 %v640_v38  ;;  %480 = vmatprep.subr.bf16.mxu1 %v642_v39 }
  0x33   : > { %651 = vmatmul.mubr.msk.bf16.vlgmr.msra.gmra.mrb[0].mxu0 %vm353_vm0, %v250_v44  ;;  %652 = vmatmul.mubr.msk.bf16.vlgmr.msra.gmra.mrb[0].mxu1 %vm353_vm0, %v250_v44 }
  0x34   : > { %440 = vmatpush1.bf16.msra.mxu0 %v639_v45  ;;  %481 = vmatpush1.bf16.msra.mxu1 %v641_v46 }
  0x35   : > { %441 = vmatprep.subr.bf16.mxu0 %v648_v47  ;;  %482 = vmatprep.subr.bf16.mxu1 %v650_v48 }
  0x36   : > { %471 = vmatprep.mubr.bf16.mxu0 %v771_v17  ;;  %512 = vmatprep.mubr.bf16.mxu1 %v771_v17 }
  0x38   : > { %442 = vmatpush1.bf16.msra.mxu0 %v647_v49  ;;  %483 = vmatpush1.bf16.msra.mxu1 %v649_v50 }
  0x3b   : > { %653 = vmatmul.mubr.msk.bf16.vlgmr.msra.gmra.mrb[4].mxu0 %vm353_vm0, %v250_v44  ;;  %654 = vmatmul.mubr.msk.bf16.vlgmr.msra.gmra.mrb[4].mxu1 %vm353_vm0, %v250_v44 }
  0xa6   : > { %v271_v51 = vpop.permute.xlu0 %270 }
 0x106   : > { %v391_v52 = vpop.f32.mrb[0].mxu0  ;;  %v432_v53 = vpop.f32.mrb[0].mxu1 }
 0x107   : > { %v392_v54 = vadd.f32 %v391_v52, %v271_v51  ;;  %v393_v55 = vpop.f32.mrb[1].mxu0  ;;  %v433_v56 = vadd.f32 %v432_v53, %v271_v51  ;;  %v434_v58 = vpop.f32.mrb[1].mxu1 }
 0x108   : > { %v394_v57 = vadd.f32 %v393_v55, %v271_v51  ;;  %v395_v59 = vpop.f32.mrb[2].mxu0  ;;  %v435_v60 = vadd.f32 %v434_v58, %v271_v51  ;;  %v436_v61 = vpop.f32.mrb[2].mxu1 }
 0x109   : > { %521 = vst [vmem:[%s907_s4] sm:$0xff] %v392_v54  ;;  %v396_v62 = vpop.f32.mrb[3].mxu0  ;;  %523 = vst [vmem:[%s907_s4 + $0x10] sm:$0xff] %v433_v56  ;;  %v437_v63 = vpop.f32.mrb[3].mxu1 }
 0x10a   : > { %522 = vst [vmem:[%s907_s4 + $0x8] sm:$0xff] %v394_v57  ;;  %524 = vst [vmem:[%s907_s4 + $0x18] sm:$0xff] %v435_v60 }
 0x10e   : > { %v473_v0 = vpop.f32.mrb[4].mxu0  ;;  %v514_v2 = vpop.f32.mrb[4].mxu1 }
 0x10f   : > { %v474_v1 = vadd.f32 %v473_v0, %v271_v51  ;;  %v475_v3 = vpop.f32.mrb[5].mxu0  ;;  %v515_v4 = vadd.f32 %v514_v2, %v271_v51  ;;  %v516_v6 = vpop.f32.mrb[5].mxu1 }
 0x110   : > { %v476_v5 = vadd.f32 %v475_v3, %v271_v51  ;;  %v477_v7 = vpop.f32.mrb[6].mxu0  ;;  %v517_v8 = vadd.f32 %v516_v6, %v271_v51  ;;  %v518_v9 = vpop.f32.mrb[6].mxu1 }
 0x111   : > { %525 = vst [vmem:[%s907_s4 + $0x20] sm:$0xff] %v474_v1  ;;  %v478_v10 = vpop.f32.mrb[7].mxu0  ;;  %527 = vst [vmem:[%s907_s4 + $0x30] sm:$0xff] %v515_v4  ;;  %v519_v11 = vpop.f32.mrb[7].mxu1 }
 0x112   : > { %526 = vst [vmem:[%s907_s4 + $0x28] sm:$0xff] %v476_v5  ;;  %528 = vst [vmem:[%s907_s4 + $0x38] sm:$0xff] %v517_v8 }
 0x113 PF: > { %s13_s18 = sadd.s32 1, %s769_s18   ;;  %s942_s12 = smov %s749_s13 }
 0x114   : > { %p10_p12 = scmp.ge.s32.totalorder %s13_s18, 6   ;;  %s943_s13 = smov %s843_s25 }
 0x115   : > { %s944_s14 = smov %s761_s16  ;;  %s945_s15 = smov %s765_s17 }
 0x116   : > { %s946_s16 = smov %s949_s19  ;;  %s947_s17 = smov %s953_s20 }
 0x117   :  { %12 = sbr.rel (!%p10_p12) target bundleno = 4 (0x4), region = 90 }

// kernel: unet_daft_forward.44
= control target key start
LH: loop header
LB: loop body
LE: loop exit
PB: predicated region body
PF: predicated region fallthrough
CT: control target
= control target key end

     0   :  { %s936_s12 = smov 0   ;;  %s938_s13 = smov 0   ;;  %s1153_s0 = inlined_call_operand.vmem [shape: bf16[8,64], index: 0, kind: input, shape index: {}]   ;;  %s1154_s1 = inlined_call_operand.vmem [shape: bf16[2,64,2048], index: 1, kind: input, shape index: {}]   ;;  %s1155_s2 = inlined_call_operand.vmem [shape: f32[8,1], index: 2, kind: input, shape index: {}]   ;;  %s1156_s3 = inlined_call_operand.vmem [shape: f32[2,8,2048], index: 3, kind: output, shape index: {}]  }
   0x1   :  { %s940_s14 = smov 0   ;;  %s942_s15 = smov 0  }
   0x2   :  { %s944_s16 = smov 0   ;;  %s946_s17 = smov 0  }
   0x3   :  { %s948_s18 = smov 0  }
   0x4 LB: > { %s22_s19 = sadd.s32 1, %s905_s16  ;;  %s25_s20 = sadd.s32 1, %s909_s17  ;;  %s913_s18 = sphi %s948_s18, %s13_s18   ;;  %s909_s17 = sphi %s946_s17, %s1162_s17   ;;  %s905_s16 = sphi %s944_s16, %s1161_s16   ;;  %s901_s15 = sphi %s942_s15, %s1160_s15   ;;  %s897_s14 = sphi %s940_s14, %s1159_s14   ;;  %s893_s13 = sphi %s938_s13, %s1158_s13   ;;  %s889_s12 = sphi %s936_s12, %s1157_s12  }
   0x5   : > { %p23_p0 = scmp.ge.s32.totalorder %s22_s19, 2  ;;  %p62_p1 = scmp.ne.s32.totalorder %s893_s13, %s889_s12 }
   0x6   : > { %p63_p2 = scmp.eq.s32.totalorder %s913_s18, 0  ;;  %s55_s24 = sadd.s32 1, %s893_s13 }
   0x7   : > { %s1164_s19 = smov (%p23_p0, %s22_s19), 0  ;;  %s1166_s20 = smov (!%p23_p0, %s25_s20), %s909_s17 }
   0x8   : > { %p64_p3 = por %p63_p2, %p62_p1  ;;  %p27_p4 = scmp.ge.s32.totalorder %s1166_s20, 2 }
   0x9   : > { %s51_s21 = ssub.s32 %s905_s16, %s1164_s19  ;;  %p753_p6 = scmp.ge.s32.totalorder %s913_s18, 4 }
   0xa   : > { %s1168_s20 = smov (%p27_p4, %s1166_s20), 0 }
   0xb   : > { %s50_s22 = ssub.s32 %s909_s17, %s1168_s20  ;;  %143 = sbr.rel (%p753_p6) target bundleno = 41 (0x29), region = 24 }
   0xc   : > { %s52_s23 = sor.u32 %s51_s21, %s50_s22 }
   0xd   : > { %p53_p5 = scmp.eq.s32.totalorder %s52_s23, 0 }
   0xf   : > { %s987_s25 = scalar_select %p53_p5, %s893_s13, %s55_s24  }
  0x12   : > { %146 = sbr.rel (!%p64_p3) target bundleno = 41 (0x29), region = 28  ;;  %s148_s26 = sand.u32 (%p64_p3), 1, %s893_s13  }
  0x13   : > { %s755_s27 = sshll.u32 (%p64_p3), %s905_s16, 3  ;;  %s754_s28 = sshll.u32 (%p64_p3), %s148_s26, 8 }
  0x14   : > { %s756_s29 = sshll.u32 (%p64_p3), %s909_s17, 7  ;;  %s1001_s8 = scalar_lea.vmem (%p64_p3), [#allocation2], %s754_s28 }
  0x15   : > { %s153_s30 = sadd.s32 (%p64_p3), %s756_s29, %s755_s27 }
  0x16   : > { %s757_s4 = sshll.u32 (%p64_p3), %s153_s30, 2 }
  0x17   : > { %s996_s7 = scalar_lea.vmem (%p64_p3), %s1154_s1, %s757_s4 }
  0x18   : > { %v168_v0 = vld [vmem:[%s996_s7] sm:$0xff] (%p64_p3)  ;;  %v170_v1 = vld [vmem:[%s996_s7 + $0x8] sm:$0xff] (%p64_p3)  ;;  %v172_v2 = vld [vmem:[%s996_s7 + $0x10] sm:$0xff] (%p64_p3) }
  0x19   : > { %169 = vst [vmem:[%s1001_s8] sm:$0xff] %v168_v0  ;;  %171 = vst [vmem:[%s1001_s8 + $0x8] sm:$0xff] %v170_v1  ;;  %v174_v3 = vld [vmem:[%s996_s7 + $0x18] sm:$0xff]  ;;  %v176_v4 = vld [vmem:[%s996_s7 + $0x40] sm:$0xff] }
  0x1a   : > { %173 = vst [vmem:[%s1001_s8 + $0x10] sm:$0xff] %v172_v2  ;;  %v178_v5 = vld [vmem:[%s996_s7 + $0x48] sm:$0xff]  ;;  %175 = vst [vmem:[%s1001_s8 + $0x18] sm:$0xff] %v174_v3  ;;  %v180_v6 = vld [vmem:[%s996_s7 + $0x50] sm:$0xff] }
  0x1b   : > { %177 = vst [vmem:[%s1001_s8 + $0x20] sm:$0xff] %v176_v4  ;;  %179 = vst [vmem:[%s1001_s8 + $0x28] sm:$0xff] %v178_v5  ;;  %v182_v7 = vld [vmem:[%s996_s7 + $0x58] sm:$0xff]  ;;  %v184_v8 = vld [vmem:[%s996_s7 + $0x80] sm:$0xff] }
  0x1c   : > { %181 = vst [vmem:[%s1001_s8 + $0x30] sm:$0xff] %v180_v6  ;;  %183 = vst [vmem:[%s1001_s8 + $0x38] sm:$0xff] %v182_v7  ;;  %v186_v9 = vld [vmem:[%s996_s7 + $0x88] sm:$0xff]  ;;  %v188_v10 = vld [vmem:[%s996_s7 + $0x90] sm:$0xff] }
  0x1d   : > { %185 = vst [vmem:[%s1001_s8 + $0x40] sm:$0xff] %v184_v8  ;;  %v190_v11 = vld [vmem:[%s996_s7 + $0x98] sm:$0xff]  ;;  %187 = vst [vmem:[%s1001_s8 + $0x48] sm:$0xff] %v186_v9  ;;  %v192_v12 = vld [vmem:[%s996_s7 + $0xc0] sm:$0xff] }
  0x1e   : > { %189 = vst [vmem:[%s1001_s8 + $0x50] sm:$0xff] %v188_v10  ;;  %191 = vst [vmem:[%s1001_s8 + $0x58] sm:$0xff] %v190_v11  ;;  %v194_v13 = vld [vmem:[%s996_s7 + $0xc8] sm:$0xff]  ;;  %v196_v14 = vld [vmem:[%s996_s7 + $0xd0] sm:$0xff] }
  0x1f   : > { %193 = vst [vmem:[%s1001_s8 + $0x60] sm:$0xff] %v192_v12  ;;  %195 = vst [vmem:[%s1001_s8 + $0x68] sm:$0xff] %v194_v13  ;;  %v198_v15 = vld [vmem:[%s996_s7 + $0xd8] sm:$0xff]  ;;  %v200_v16 = vld [vmem:[%s996_s7 + $0x100] sm:$0xff] }
  0x20   : > { %197 = vst [vmem:[%s1001_s8 + $0x70] sm:$0xff] %v196_v14  ;;  %v202_v17 = vld [vmem:[%s996_s7 + $0x108] sm:$0xff]  ;;  %199 = vst [vmem:[%s1001_s8 + $0x78] sm:$0xff] %v198_v15  ;;  %v204_v18 = vld [vmem:[%s996_s7 + $0x110] sm:$0xff] }
  0x21   : > { %201 = vst [vmem:[%s1001_s8 + $0x80] sm:$0xff] %v200_v16  ;;  %203 = vst [vmem:[%s1001_s8 + $0x88] sm:$0xff] %v202_v17  ;;  %v206_v19 = vld [vmem:[%s996_s7 + $0x118] sm:$0xff]  ;;  %v208_v20 = vld [vmem:[%s996_s7 + $0x140] sm:$0xff] }
  0x22   : > { %205 = vst [vmem:[%s1001_s8 + $0x90] sm:$0xff] %v204_v18  ;;  %207 = vst [vmem:[%s1001_s8 + $0x98] sm:$0xff] %v206_v19  ;;  %v210_v21 = vld [vmem:[%s996_s7 + $0x148] sm:$0xff]  ;;  %v212_v22 = vld [vmem:[%s996_s7 + $0x150] sm:$0xff] }
  0x23   : > { %209 = vst [vmem:[%s1001_s8 + $0xa0] sm:$0xff] %v208_v20  ;;  %v214_v23 = vld [vmem:[%s996_s7 + $0x158] sm:$0xff]  ;;  %211 = vst [vmem:[%s1001_s8 + $0xa8] sm:$0xff] %v210_v21  ;;  %v216_v24 = vld [vmem:[%s996_s7 + $0x180] sm:$0xff] }
  0x24   : > { %213 = vst [vmem:[%s1001_s8 + $0xb0] sm:$0xff] %v212_v22  ;;  %215 = vst [vmem:[%s1001_s8 + $0xb8] sm:$0xff] %v214_v23  ;;  %v218_v25 = vld [vmem:[%s996_s7 + $0x188] sm:$0xff]  ;;  %v220_v26 = vld [vmem:[%s996_s7 + $0x190] sm:$0xff] }
  0x25   : > { %217 = vst [vmem:[%s1001_s8 + $0xc0] sm:$0xff] %v216_v24  ;;  %219 = vst [vmem:[%s1001_s8 + $0xc8] sm:$0xff] %v218_v25  ;;  %v222_v27 = vld [vmem:[%s996_s7 + $0x198] sm:$0xff]  ;;  %v224_v28 = vld [vmem:[%s996_s7 + $0x1c0] sm:$0xff] }
  0x26   : > { %221 = vst [vmem:[%s1001_s8 + $0xd0] sm:$0xff] %v220_v26  ;;  %v226_v29 = vld [vmem:[%s996_s7 + $0x1c8] sm:$0xff]  ;;  %223 = vst [vmem:[%s1001_s8 + $0xd8] sm:$0xff] %v222_v27  ;;  %v228_v30 = vld [vmem:[%s996_s7 + $0x1d0] sm:$0xff] }
  0x27   : > { %225 = vst [vmem:[%s1001_s8 + $0xe0] sm:$0xff] %v224_v28  ;;  %227 = vst [vmem:[%s1001_s8 + $0xe8] sm:$0xff] %v226_v29  ;;  %v230_v31 = vld [vmem:[%s996_s7 + $0x1d8] sm:$0xff] }
  0x28   : > { %229 = vst [vmem:[%s1001_s8 + $0xf0] sm:$0xff] %v228_v30  ;;  %231 = vst [vmem:[%s1001_s8 + $0xf8] sm:$0xff] %v230_v31 }
  0x29 PF: > { %p758_p7 = scmp.ge.s32.totalorder %s913_s18, 1  ;;  %p236_p8 = scmp.lt.s32.totalorder %s913_s18, 5 }
  0x2b   : > { %p237_p9 = pnand %p758_p7, %p236_p8 }
  0x2c   : > { %s243_s9 = sand.u32 (!%p237_p9), 1, %s889_s12   ;;  %v315_v32 = vld [vmem:[%s1155_s2] sm:$0xff] (!%p237_p9)  ;;  %v915_v33 = vmov (!%p237_p9), 0   ;;  %vm481_vm0 = vcmask (!%p237_p9), 523264   ;;  %s760_s24 = sshll.u32 (!%p237_p9), %s897_s14, 3 }
  0x2d   : > { %240 = sbr.rel (%p237_p9) target bundleno = 299 (0x12b), region = 51  ;;  %s759_s21 = sshll.u32 (!%p237_p9), %s243_s9, 8  ;;  %517 = vmatprep.mubr.bf16.mxu0 (!%p237_p9), %v915_v33  ;;  %558 = vmatprep.mubr.bf16.mxu1 (!%p237_p9), %v915_v33  ;;  %v282_v12 = vld [vmem:[%s1153_s0] sm:$0xf] (!%p237_p9) }
  0x2e   : > { %858 = vset.pattern.permute.xlu0 (!%p237_p9), %v915_v33  ;;  %s1073_s22 = scalar_lea.vmem (!%p237_p9), [#allocation2], %s759_s21  ;;  %p272_p10 = scmp.lt.s32.totalorder (!%p237_p9), %s901_s15, 1 }
  0x2f   : > { %v283_v34 = vld [vmem:[%s1073_s22] sm:$0xff] (!%p237_p9)  ;;  %v284_v36 = vld [vmem:[%s1073_s22 + $0x8] sm:$0xff] (!%p237_p9)  ;;  %318 = vperm.xlu0 (!%p237_p9), %858, %v315_v32   ;;  %v285_v0 = vld [vmem:[%s1073_s22 + $0x10] sm:$0xff] (!%p237_p9)  ;;  %p274_p11 = scmp.lt.s32.totalorder (!%p237_p9), %s760_s24, 15 }
  0x30   : > { %v287_v35 = vld [vmem:[%s1073_s22 + $0x20] sm:$0xff] (!%p237_p9)  ;;  %v288_v38 = vld [vmem:[%s1073_s22 + $0x28] sm:$0xff] (!%p237_p9)  ;;  %v289_v1 = vld [vmem:[%s1073_s22 + $0x30] sm:$0xff] (!%p237_p9) }
  0x31   : > { %v764_v37 = vcombine.high (!%p237_p9), %v283_v34, %v287_v35  ;;  %v763_v39 = vcombine.low (!%p237_p9), %v283_v34, %v287_v35  ;;  %v291_v40 = vld [vmem:[%s1073_s22 + $0x40] sm:$0xff] (!%p237_p9)  ;;  %v766_v42 = vcombine.high (!%p237_p9), %v284_v36, %v288_v38  ;;  %v765_v43 = vcombine.low (!%p237_p9), %v284_v36, %v288_v38  ;;  %v292_v45 = vld [vmem:[%s1073_s22 + $0x48] sm:$0xff] (!%p237_p9)  ;;  %v286_v2 = vld [vmem:[%s1073_s22 + $0x18] sm:$0xff] (!%p237_p9) }
  0x32   : > { %v295_v41 = vld [vmem:[%s1073_s22 + $0x60] sm:$0xff] (!%p237_p9)  ;;  %v296_v46 = vld [vmem:[%s1073_s22 + $0x68] sm:$0xff] (!%p237_p9)  ;;  %v290_v3 = vld [vmem:[%s1073_s22 + $0x38] sm:$0xff] (!%p237_p9)  ;;  %v768_v6 = vcombine.high (!%p237_p9), %v285_v0, %v289_v1  ;;  %v767_v13 = vcombine.low (!%p237_p9), %v285_v0, %v289_v1 }
  0x33   : > { %v772_v44 = vcombine.high (!%p237_p9), %v291_v40, %v295_v41  ;;  %v299_v47 = vld [vmem:[%s1073_s22 + $0x80] sm:$0xff] (!%p237_p9)  ;;  %485 = vmatprep.subr.bf16.mxu0 (!%p237_p9), %v764_v37  ;;  %v774_v48 = vcombine.high (!%p237_p9), %v292_v45, %v296_v46  ;;  %v300_v50 = vld [vmem:[%s1073_s22 + $0x88] sm:$0xff] (!%p237_p9)  ;;  %526 = vmatprep.subr.bf16.mxu1 (!%p237_p9), %v766_v42  ;;  %v771_v52 = vcombine.low (!%p237_p9), %v291_v40, %v295_v41  ;;  %v293_v8 = vld [vmem:[%s1073_s22 + $0x50] sm:$0xff] (!%p237_p9) }
  0x34   : > { %v303_v49 = vld [vmem:[%s1073_s22 + $0xa0] sm:$0xff]  ;;  %v304_v51 = vld [vmem:[%s1073_s22 + $0xa8] sm:$0xff]  ;;  %486 = vmatpush1.bf16.msra.mxu0 %v763_v39  ;;  %527 = vmatpush1.bf16.msra.mxu1 %v765_v43  ;;  %v773_v53 = vcombine.low %v292_v45, %v296_v46  ;;  %v770_v7 = vcombine.high %v286_v2, %v290_v3  ;;  %v297_v9 = vld [vmem:[%s1073_s22 + $0x70] sm:$0xff]  ;;  %v769_v14 = vcombine.low %v286_v2, %v290_v3  ;;  %s1170_s15 = smov (!%p272_p10, %s901_s15), 1  ;;  %s1172_s24 = smov (!%p274_p11, %s760_s24), 15 }
  0x35   : > { %487 = vmatprep.subr.bf16.mxu0 %v772_v44  ;;  %v780_v54 = vcombine.high %v299_v47, %v303_v49  ;;  %528 = vmatprep.subr.bf16.mxu1 %v774_v48  ;;  %v782_v55 = vcombine.high %v300_v50, %v304_v51  ;;  %v307_v56 = vld [vmem:[%s1073_s22 + $0xc0] sm:$0xff]  ;;  %v308_v58 = vld [vmem:[%s1073_s22 + $0xc8] sm:$0xff]  ;;  %v779_v60 = vcombine.low %v299_v47, %v303_v49  ;;  %v294_v10 = vld [vmem:[%s1073_s22 + $0x58] sm:$0xff]  ;;  %s761_s26 = sshll.u32 %s1170_s15, 4 }
  0x36   : > { %v311_v57 = vld [vmem:[%s1073_s22 + $0xe0] sm:$0xff]  ;;  %v312_v59 = vld [vmem:[%s1073_s22 + $0xe8] sm:$0xff]  ;;  %v781_v61 = vcombine.low %v300_v50, %v304_v51  ;;  %v298_v11 = vld [vmem:[%s1073_s22 + $0x78] sm:$0xff]  ;;  %v776_v15 = vcombine.high %v293_v8, %v297_v9  ;;  %v775_v21 = vcombine.low %v293_v8, %v297_v9  ;;  %s277_s27 = sadd.s32 %s761_s26, %s1172_s24 }
  0x37   : > { %v788_v62 = vcombine.high %v307_v56, %v311_v57  ;;  %v790_v63 = vcombine.high %v308_v58, %v312_v59  ;;  %v787_v4 = vcombine.low %v307_v56, %v311_v57  ;;  %v789_v5 = vcombine.low %v308_v58, %v312_v59  ;;  %v301_v17 = vld [vmem:[%s1073_s22 + $0x90] sm:$0xff]  ;;  %v302_v19 = vld [vmem:[%s1073_s22 + $0x98] sm:$0xff]  ;;  %s762_s28 = sshll.u32 %s277_s27, 3 }
  0x38   : > { %488 = vmatpush1.bf16.msra.mxu0 %v771_v52  ;;  %529 = vmatpush1.bf16.msra.mxu1 %v773_v53  ;;  %v778_v16 = vcombine.high %v294_v10, %v298_v11  ;;  %v305_v18 = vld [vmem:[%s1073_s22 + $0xb0] sm:$0xff]  ;;  %v306_v20 = vld [vmem:[%s1073_s22 + $0xb8] sm:$0xff]  ;;  %v777_v22 = vcombine.low %v294_v10, %v298_v11  ;;  %s1122_s4 = scalar_lea.vmem %s1156_s3, %s762_s28 }
  0x39   : > { %489 = vmatprep.subr.bf16.mxu0 %v780_v54  ;;  %530 = vmatprep.subr.bf16.mxu1 %v782_v55  ;;  %v784_v23 = vcombine.high %v301_v17, %v305_v18  ;;  %v786_v24 = vcombine.high %v302_v19, %v306_v20  ;;  %v309_v25 = vld [vmem:[%s1073_s22 + $0xd0] sm:$0xff]  ;;  %v310_v27 = vld [vmem:[%s1073_s22 + $0xd8] sm:$0xff]  ;;  %v783_v29 = vcombine.low %v301_v17, %v305_v18 }
  0x3a   : > { %v313_v26 = vld [vmem:[%s1073_s22 + $0xf0] sm:$0xff]  ;;  %v314_v28 = vld [vmem:[%s1073_s22 + $0xf8] sm:$0xff]  ;;  %v785_v30 = vcombine.low %v302_v19, %v306_v20 }
  0x3b   : > { %v792_v31 = vcombine.high %v309_v25, %v313_v26  ;;  %v794_v32 = vcombine.high %v310_v27, %v314_v28  ;;  %v791_v34 = vcombine.low %v309_v25, %v313_v26  ;;  %v793_v35 = vcombine.low %v310_v27, %v314_v28 }
  0x3c   : > { %490 = vmatpush1.bf16.msra.mxu0 %v779_v60  ;;  %531 = vmatpush1.bf16.msra.mxu1 %v781_v61 }
  0x3d   : > { %491 = vmatprep.subr.bf16.mxu0 %v788_v62  ;;  %532 = vmatprep.subr.bf16.mxu1 %v790_v63 }
  0x40   : > { %492 = vmatpush1.bf16.msra.mxu0 %v787_v4  ;;  %533 = vmatpush1.bf16.msra.mxu1 %v789_v5 }
  0x41   : > { %567 = vmatprep.subr.bf16.mxu0 %v768_v6  ;;  %608 = vmatprep.subr.bf16.mxu1 %v770_v7 }
  0x43   : > { %795 = vmatmul.mubr.msk.bf16.vlgmr.msra.gmra.mrb[0].mxu0 %vm481_vm0, %v282_v12  ;;  %796 = vmatmul.mubr.msk.bf16.vlgmr.msra.gmra.mrb[0].mxu1 %vm481_vm0, %v282_v12 }
  0x44   : > { %568 = vmatpush1.bf16.msra.mxu0 %v767_v13  ;;  %609 = vmatpush1.bf16.msra.mxu1 %v769_v14 }
  0x45   : > { %569 = vmatprep.subr.bf16.mxu0 %v776_v15  ;;  %610 = vmatprep.subr.bf16.mxu1 %v778_v16 }
  0x46   : > { %599 = vmatprep.mubr.bf16.mxu0 %v915_v33  ;;  %640 = vmatprep.mubr.bf16.mxu1 %v915_v33 }
  0x48   : > { %570 = vmatpush1.bf16.msra.mxu0 %v775_v21  ;;  %611 = vmatpush1.bf16.msra.mxu1 %v777_v22 }
  0x49   : > { %571 = vmatprep.subr.bf16.mxu0 %v784_v23  ;;  %612 = vmatprep.subr.bf16.mxu1 %v786_v24 }
  0x4c   : > { %572 = vmatpush1.bf16.msra.mxu0 %v783_v29  ;;  %613 = vmatpush1.bf16.msra.mxu1 %v785_v30 }
  0x4d   : > { %573 = vmatprep.subr.bf16.mxu0 %v792_v31  ;;  %614 = vmatprep.subr.bf16.mxu1 %v794_v32 }
  0x50   : > { %574 = vmatpush1.bf16.msra.mxu0 %v791_v34  ;;  %615 = vmatpush1.bf16.msra.mxu1 %v793_v35 }
  0x53   : > { %797 = vmatmul.mubr.msk.bf16.vlgmr.msra.gmra.mrb[4].mxu0 %vm481_vm0, %v282_v12  ;;  %798 = vmatmul.mubr.msk.bf16.vlgmr.msra.gmra.mrb[4].mxu1 %vm481_vm0, %v282_v12 }
  0xae   : > { %v319_v33 = vpop.permute.xlu0 %318 }
 0x116   : > { %v519_v36 = vpop.f32.mrb[0].mxu0  ;;  %v560_v37 = vpop.f32.mrb[0].mxu1 }
 0x117   : > { %v520_v38 = vadd.f32 %v519_v36, %v319_v33  ;;  %v521_v39 = vpop.f32.mrb[1].mxu0  ;;  %v561_v40 = vadd.f32 %v560_v37, %v319_v33  ;;  %v562_v42 = vpop.f32.mrb[1].mxu1 }
 0x118   : > { %v522_v41 = vadd.f32 %v521_v39, %v319_v33  ;;  %v523_v43 = vpop.f32.mrb[2].mxu0  ;;  %v563_v44 = vadd.f32 %v562_v42, %v319_v33  ;;  %v564_v45 = vpop.f32.mrb[2].mxu1 }
 0x119   : > { %649 = vst [vmem:[%s1122_s4] sm:$0xff] %v520_v38  ;;  %v524_v46 = vpop.f32.mrb[3].mxu0  ;;  %651 = vst [vmem:[%s1122_s4 + $0x10] sm:$0xff] %v561_v40  ;;  %v565_v47 = vpop.f32.mrb[3].mxu1 }
 0x11a   : > { %650 = vst [vmem:[%s1122_s4 + $0x8] sm:$0xff] %v522_v41  ;;  %652 = vst [vmem:[%s1122_s4 + $0x18] sm:$0xff] %v563_v44 }
 0x126   : > { %v601_v48 = vpop.f32.mrb[4].mxu0  ;;  %v642_v50 = vpop.f32.mrb[4].mxu1 }
 0x127   : > { %v602_v49 = vadd.f32 %v601_v48, %v319_v33  ;;  %v603_v51 = vpop.f32.mrb[5].mxu0  ;;  %v643_v52 = vadd.f32 %v642_v50, %v319_v33  ;;  %v644_v54 = vpop.f32.mrb[5].mxu1 }
 0x128   : > { %v604_v53 = vadd.f32 %v603_v51, %v319_v33  ;;  %v605_v55 = vpop.f32.mrb[6].mxu0  ;;  %v645_v56 = vadd.f32 %v644_v54, %v319_v33  ;;  %v646_v57 = vpop.f32.mrb[6].mxu1 }
 0x129   : > { %653 = vst [vmem:[%s1122_s4 + $0x20] sm:$0xff] %v602_v49  ;;  %v606_v58 = vpop.f32.mrb[7].mxu0  ;;  %655 = vst [vmem:[%s1122_s4 + $0x30] sm:$0xff] %v643_v52  ;;  %v647_v59 = vpop.f32.mrb[7].mxu1 }
 0x12a   : > { %654 = vst [vmem:[%s1122_s4 + $0x28] sm:$0xff] %v604_v53  ;;  %656 = vst [vmem:[%s1122_s4 + $0x38] sm:$0xff] %v645_v56 }
 0x12b PF: > { %s13_s18 = sadd.s32 1, %s913_s18   ;;  %s1157_s12 = smov %s893_s13 }
 0x12c   : > { %p10_p12 = scmp.ge.s32.totalorder %s13_s18, 6   ;;  %s1158_s13 = smov %s987_s25 }
 0x12d   : > { %s1159_s14 = smov %s905_s16  ;;  %s1160_s15 = smov %s909_s17 }
 0x12e   : > { %s1161_s16 = smov %s1164_s19  ;;  %s1162_s17 = smov %s1168_s20 }
 0x12f   :  { %12 = sbr.rel (!%p10_p12) target bundleno = 4 (0x4), region = 90 }

// kernel: unet_daft_forward.45
= control target key start
LH: loop header
LB: loop body
LE: loop exit
PB: predicated region body
PF: predicated region fallthrough
CT: control target
= control target key end

     0   :  { %s1216_s12 = smov 0   ;;  %s1218_s13 = smov 0   ;;  %s1531_s0 = inlined_call_operand.vmem [shape: bf16[8,128], index: 0, kind: input, shape index: {}]   ;;  %s1532_s1 = inlined_call_operand.vmem [shape: bf16[2,128,2048], index: 1, kind: input, shape index: {}]   ;;  %s1533_s2 = inlined_call_operand.vmem [shape: f32[8,1], index: 2, kind: input, shape index: {}]   ;;  %s1534_s3 = inlined_call_operand.vmem [shape: f32[2,8,2048], index: 3, kind: output, shape index: {}]  }
   0x1   :  { %s1220_s14 = smov 0   ;;  %s1222_s15 = smov 0  }
   0x2   :  { %s1224_s16 = smov 0   ;;  %s1226_s17 = smov 0  }
   0x3   :  { %s1228_s18 = smov 0  }
   0x4 LB: > { %s22_s19 = sadd.s32 1, %s1185_s16  ;;  %s25_s20 = sadd.s32 1, %s1189_s17  ;;  %s1193_s18 = sphi %s1228_s18, %s13_s18   ;;  %s1189_s17 = sphi %s1226_s17, %s1540_s17   ;;  %s1185_s16 = sphi %s1224_s16, %s1539_s16   ;;  %s1181_s15 = sphi %s1222_s15, %s1538_s15   ;;  %s1177_s14 = sphi %s1220_s14, %s1537_s14   ;;  %s1173_s13 = sphi %s1218_s13, %s1536_s13   ;;  %s1169_s12 = sphi %s1216_s12, %s1535_s12  }
   0x5   : > { %p23_p0 = scmp.ge.s32.totalorder %s22_s19, 2  ;;  %p62_p1 = scmp.ne.s32.totalorder %s1173_s13, %s1169_s12 }
   0x6   : > { %p63_p2 = scmp.eq.s32.totalorder %s1193_s18, 0  ;;  %s55_s24 = sadd.s32 1, %s1173_s13 }
   0x7   : > { %s1542_s19 = smov (%p23_p0, %s22_s19), 0  ;;  %s1544_s20 = smov (!%p23_p0, %s25_s20), %s1189_s17 }
   0x8   : > { %p64_p3 = por %p63_p2, %p62_p1  ;;  %p27_p4 = scmp.ge.s32.totalorder %s1544_s20, 2 }
   0x9   : > { %s51_s21 = ssub.s32 %s1185_s16, %s1542_s19  ;;  %p1005_p6 = scmp.ge.s32.totalorder %s1193_s18, 4 }
   0xa   : > { %s1546_s20 = smov (%p27_p4, %s1544_s20), 0 }
   0xb   : > { %s50_s22 = ssub.s32 %s1189_s17, %s1546_s20  ;;  %143 = sbr.rel (%p1005_p6) target bundleno = 57 (0x39), region = 24 }
   0xc   : > { %s52_s23 = sor.u32 %s51_s21, %s50_s22 }
   0xd   : > { %p53_p5 = scmp.eq.s32.totalorder %s52_s23, 0 }
   0xf   : > { %s1267_s25 = scalar_select %p53_p5, %s1173_s13, %s55_s24  }
  0x12   : > { %146 = sbr.rel (!%p64_p3) target bundleno = 57 (0x39), region = 28  ;;  %s148_s26 = sand.u32 (%p64_p3), 1, %s1173_s13  }
  0x13   : > { %s1007_s27 = sshll.u32 (%p64_p3), %s1185_s16, 3  ;;  %s1006_s28 = sshll.u32 (%p64_p3), %s148_s26, 9 }
  0x14   : > { %s1008_s29 = sshll.u32 (%p64_p3), %s1189_s17, 8  ;;  %s1281_s8 = scalar_lea.vmem (%p64_p3), [#allocation2], %s1006_s28 }
  0x15   : > { %s153_s30 = sadd.s32 (%p64_p3), %s1008_s29, %s1007_s27 }
  0x16   : > { %s1009_s4 = sshll.u32 (%p64_p3), %s153_s30, 2 }
  0x17   : > { %s1276_s7 = scalar_lea.vmem (%p64_p3), %s1532_s1, %s1009_s4 }
  0x18   : > { %v168_v0 = vld [vmem:[%s1276_s7] sm:$0xff] (%p64_p3)  ;;  %v170_v1 = vld [vmem:[%s1276_s7 + $0x8] sm:$0xff] (%p64_p3)  ;;  %v172_v2 = vld [vmem:[%s1276_s7 + $0x10] sm:$0xff] (%p64_p3) }
  0x19   : > { %169 = vst [vmem:[%s1281_s8] sm:$0xff] %v168_v0  ;;  %171 = vst [vmem:[%s1281_s8 + $0x8] sm:$0xff] %v170_v1  ;;  %v174_v3 = vld [vmem:[%s1276_s7 + $0x18] sm:$0xff]  ;;  %v176_v4 = vld [vmem:[%s1276_s7 + $0x40] sm:$0xff] }
  0x1a   : > { %173 = vst [vmem:[%s1281_s8 + $0x10] sm:$0xff] %v172_v2  ;;  %v178_v5 = vld [vmem:[%s1276_s7 + $0x48] sm:$0xff]  ;;  %175 = vst [vmem:[%s1281_s8 + $0x18] sm:$0xff] %v174_v3  ;;  %v180_v6 = vld [vmem:[%s1276_s7 + $0x50] sm:$0xff] }
  0x1b   : > { %177 = vst [vmem:[%s1281_s8 + $0x20] sm:$0xff] %v176_v4  ;;  %179 = vst [vmem:[%s1281_s8 + $0x28] sm:$0xff] %v178_v5  ;;  %v182_v7 = vld [vmem:[%s1276_s7 + $0x58] sm:$0xff]  ;;  %v184_v8 = vld [vmem:[%s1276_s7 + $0x80] sm:$0xff] }
  0x1c   : > { %181 = vst [vmem:[%s1281_s8 + $0x30] sm:$0xff] %v180_v6  ;;  %183 = vst [vmem:[%s1281_s8 + $0x38] sm:$0xff] %v182_v7  ;;  %v186_v9 = vld [vmem:[%s1276_s7 + $0x88] sm:$0xff]  ;;  %v188_v10 = vld [vmem:[%s1276_s7 + $0x90] sm:$0xff] }
  0x1d   : > { %185 = vst [vmem:[%s1281_s8 + $0x40] sm:$0xff] %v184_v8  ;;  %v190_v11 = vld [vmem:[%s1276_s7 + $0x98] sm:$0xff]  ;;  %187 = vst [vmem:[%s1281_s8 + $0x48] sm:$0xff] %v186_v9  ;;  %v192_v12 = vld [vmem:[%s1276_s7 + $0xc0] sm:$0xff] }
  0x1e   : > { %189 = vst [vmem:[%s1281_s8 + $0x50] sm:$0xff] %v188_v10  ;;  %191 = vst [vmem:[%s1281_s8 + $0x58] sm:$0xff] %v190_v11  ;;  %v194_v13 = vld [vmem:[%s1276_s7 + $0xc8] sm:$0xff]  ;;  %v196_v14 = vld [vmem:[%s1276_s7 + $0xd0] sm:$0xff] }
  0x1f   : > { %193 = vst [vmem:[%s1281_s8 + $0x60] sm:$0xff] %v192_v12  ;;  %195 = vst [vmem:[%s1281_s8 + $0x68] sm:$0xff] %v194_v13  ;;  %v198_v15 = vld [vmem:[%s1276_s7 + $0xd8] sm:$0xff]  ;;  %v200_v16 = vld [vmem:[%s1276_s7 + $0x100] sm:$0xff] }
  0x20   : > { %197 = vst [vmem:[%s1281_s8 + $0x70] sm:$0xff] %v196_v14  ;;  %v202_v17 = vld [vmem:[%s1276_s7 + $0x108] sm:$0xff]  ;;  %199 = vst [vmem:[%s1281_s8 + $0x78] sm:$0xff] %v198_v15  ;;  %v204_v18 = vld [vmem:[%s1276_s7 + $0x110] sm:$0xff] }
  0x21   : > { %201 = vst [vmem:[%s1281_s8 + $0x80] sm:$0xff] %v200_v16  ;;  %203 = vst [vmem:[%s1281_s8 + $0x88] sm:$0xff] %v202_v17  ;;  %v206_v19 = vld [vmem:[%s1276_s7 + $0x118] sm:$0xff]  ;;  %v208_v20 = vld [vmem:[%s1276_s7 + $0x140] sm:$0xff] }
  0x22   : > { %205 = vst [vmem:[%s1281_s8 + $0x90] sm:$0xff] %v204_v18  ;;  %207 = vst [vmem:[%s1281_s8 + $0x98] sm:$0xff] %v206_v19  ;;  %v210_v21 = vld [vmem:[%s1276_s7 + $0x148] sm:$0xff]  ;;  %v212_v22 = vld [vmem:[%s1276_s7 + $0x150] sm:$0xff] }
  0x23   : > { %209 = vst [vmem:[%s1281_s8 + $0xa0] sm:$0xff] %v208_v20  ;;  %v214_v23 = vld [vmem:[%s1276_s7 + $0x158] sm:$0xff]  ;;  %211 = vst [vmem:[%s1281_s8 + $0xa8] sm:$0xff] %v210_v21  ;;  %v216_v24 = vld [vmem:[%s1276_s7 + $0x180] sm:$0xff] }
  0x24   : > { %213 = vst [vmem:[%s1281_s8 + $0xb0] sm:$0xff] %v212_v22  ;;  %215 = vst [vmem:[%s1281_s8 + $0xb8] sm:$0xff] %v214_v23  ;;  %v218_v25 = vld [vmem:[%s1276_s7 + $0x188] sm:$0xff]  ;;  %v220_v26 = vld [vmem:[%s1276_s7 + $0x190] sm:$0xff] }
  0x25   : > { %217 = vst [vmem:[%s1281_s8 + $0xc0] sm:$0xff] %v216_v24  ;;  %219 = vst [vmem:[%s1281_s8 + $0xc8] sm:$0xff] %v218_v25  ;;  %v222_v27 = vld [vmem:[%s1276_s7 + $0x198] sm:$0xff]  ;;  %v224_v28 = vld [vmem:[%s1276_s7 + $0x1c0] sm:$0xff] }
  0x26   : > { %221 = vst [vmem:[%s1281_s8 + $0xd0] sm:$0xff] %v220_v26  ;;  %v226_v29 = vld [vmem:[%s1276_s7 + $0x1c8] sm:$0xff]  ;;  %223 = vst [vmem:[%s1281_s8 + $0xd8] sm:$0xff] %v222_v27  ;;  %v228_v30 = vld [vmem:[%s1276_s7 + $0x1d0] sm:$0xff] }
  0x27   : > { %225 = vst [vmem:[%s1281_s8 + $0xe0] sm:$0xff] %v224_v28  ;;  %227 = vst [vmem:[%s1281_s8 + $0xe8] sm:$0xff] %v226_v29  ;;  %v230_v31 = vld [vmem:[%s1276_s7 + $0x1d8] sm:$0xff]  ;;  %v232_v32 = vld [vmem:[%s1276_s7 + $0x200] sm:$0xff] }
  0x28   : > { %229 = vst [vmem:[%s1281_s8 + $0xf0] sm:$0xff] %v228_v30  ;;  %231 = vst [vmem:[%s1281_s8 + $0xf8] sm:$0xff] %v230_v31  ;;  %v234_v33 = vld [vmem:[%s1276_s7 + $0x208] sm:$0xff]  ;;  %v236_v34 = vld [vmem:[%s1276_s7 + $0x210] sm:$0xff] }
  0x29   : > { %233 = vst [vmem:[%s1281_s8 + $0x100] sm:$0xff] %v232_v32  ;;  %v238_v35 = vld [vmem:[%s1276_s7 + $0x218] sm:$0xff]  ;;  %235 = vst [vmem:[%s1281_s8 + $0x108] sm:$0xff] %v234_v33  ;;  %v240_v36 = vld [vmem:[%s1276_s7 + $0x240] sm:$0xff] }
  0x2a   : > { %237 = vst [vmem:[%s1281_s8 + $0x110] sm:$0xff] %v236_v34  ;;  %239 = vst [vmem:[%s1281_s8 + $0x118] sm:$0xff] %v238_v35  ;;  %v242_v37 = vld [vmem:[%s1276_s7 + $0x248] sm:$0xff]  ;;  %v244_v38 = vld [vmem:[%s1276_s7 + $0x250] sm:$0xff] }
  0x2b   : > { %241 = vst [vmem:[%s1281_s8 + $0x120] sm:$0xff] %v240_v36  ;;  %243 = vst [vmem:[%s1281_s8 + $0x128] sm:$0xff] %v242_v37  ;;  %v246_v39 = vld [vmem:[%s1276_s7 + $0x258] sm:$0xff]  ;;  %v248_v40 = vld [vmem:[%s1276_s7 + $0x280] sm:$0xff] }
  0x2c   : > { %245 = vst [vmem:[%s1281_s8 + $0x130] sm:$0xff] %v244_v38  ;;  %v250_v41 = vld [vmem:[%s1276_s7 + $0x288] sm:$0xff]  ;;  %247 = vst [vmem:[%s1281_s8 + $0x138] sm:$0xff] %v246_v39  ;;  %v252_v42 = vld [vmem:[%s1276_s7 + $0x290] sm:$0xff] }
  0x2d   : > { %249 = vst [vmem:[%s1281_s8 + $0x140] sm:$0xff] %v248_v40  ;;  %251 = vst [vmem:[%s1281_s8 + $0x148] sm:$0xff] %v250_v41  ;;  %v254_v43 = vld [vmem:[%s1276_s7 + $0x298] sm:$0xff]  ;;  %v256_v44 = vld [vmem:[%s1276_s7 + $0x2c0] sm:$0xff] }
  0x2e   : > { %253 = vst [vmem:[%s1281_s8 + $0x150] sm:$0xff] %v252_v42  ;;  %255 = vst [vmem:[%s1281_s8 + $0x158] sm:$0xff] %v254_v43  ;;  %v258_v45 = vld [vmem:[%s1276_s7 + $0x2c8] sm:$0xff]  ;;  %v260_v46 = vld [vmem:[%s1276_s7 + $0x2d0] sm:$0xff] }
  0x2f   : > { %257 = vst [vmem:[%s1281_s8 + $0x160] sm:$0xff] %v256_v44  ;;  %v262_v47 = vld [vmem:[%s1276_s7 + $0x2d8] sm:$0xff]  ;;  %259 = vst [vmem:[%s1281_s8 + $0x168] sm:$0xff] %v258_v45  ;;  %v264_v48 = vld [vmem:[%s1276_s7 + $0x300] sm:$0xff] }
  0x30   : > { %261 = vst [vmem:[%s1281_s8 + $0x170] sm:$0xff] %v260_v46  ;;  %263 = vst [vmem:[%s1281_s8 + $0x178] sm:$0xff] %v262_v47  ;;  %v266_v49 = vld [vmem:[%s1276_s7 + $0x308] sm:$0xff]  ;;  %v268_v50 = vld [vmem:[%s1276_s7 + $0x310] sm:$0xff] }
  0x31   : > { %265 = vst [vmem:[%s1281_s8 + $0x180] sm:$0xff] %v264_v48  ;;  %267 = vst [vmem:[%s1281_s8 + $0x188] sm:$0xff] %v266_v49  ;;  %v270_v51 = vld [vmem:[%s1276_s7 + $0x318] sm:$0xff]  ;;  %v272_v52 = vld [vmem:[%s1276_s7 + $0x340] sm:$0xff] }
  0x32   : > { %269 = vst [vmem:[%s1281_s8 + $0x190] sm:$0xff] %v268_v50  ;;  %v274_v53 = vld [vmem:[%s1276_s7 + $0x348] sm:$0xff]  ;;  %271 = vst [vmem:[%s1281_s8 + $0x198] sm:$0xff] %v270_v51  ;;  %v276_v54 = vld [vmem:[%s1276_s7 + $0x350] sm:$0xff] }
  0x33   : > { %273 = vst [vmem:[%s1281_s8 + $0x1a0] sm:$0xff] %v272_v52  ;;  %275 = vst [vmem:[%s1281_s8 + $0x1a8] sm:$0xff] %v274_v53  ;;  %v278_v55 = vld [vmem:[%s1276_s7 + $0x358] sm:$0xff]  ;;  %v280_v56 = vld [vmem:[%s1276_s7 + $0x380] sm:$0xff] }
  0x34   : > { %277 = vst [vmem:[%s1281_s8 + $0x1b0] sm:$0xff] %v276_v54  ;;  %279 = vst [vmem:[%s1281_s8 + $0x1b8] sm:$0xff] %v278_v55  ;;  %v282_v57 = vld [vmem:[%s1276_s7 + $0x388] sm:$0xff]  ;;  %v284_v58 = vld [vmem:[%s1276_s7 + $0x390] sm:$0xff] }
  0x35   : > { %281 = vst [vmem:[%s1281_s8 + $0x1c0] sm:$0xff] %v280_v56  ;;  %v286_v59 = vld [vmem:[%s1276_s7 + $0x398] sm:$0xff]  ;;  %283 = vst [vmem:[%s1281_s8 + $0x1c8] sm:$0xff] %v282_v57  ;;  %v288_v60 = vld [vmem:[%s1276_s7 + $0x3c0] sm:$0xff] }
  0x36   : > { %285 = vst [vmem:[%s1281_s8 + $0x1d0] sm:$0xff] %v284_v58  ;;  %287 = vst [vmem:[%s1281_s8 + $0x1d8] sm:$0xff] %v286_v59  ;;  %v290_v61 = vld [vmem:[%s1276_s7 + $0x3c8] sm:$0xff]  ;;  %v292_v62 = vld [vmem:[%s1276_s7 + $0x3d0] sm:$0xff] }
  0x37   : > { %289 = vst [vmem:[%s1281_s8 + $0x1e0] sm:$0xff] %v288_v60  ;;  %291 = vst [vmem:[%s1281_s8 + $0x1e8] sm:$0xff] %v290_v61  ;;  %v294_v63 = vld [vmem:[%s1276_s7 + $0x3d8] sm:$0xff] }
  0x38   : > { %293 = vst [vmem:[%s1281_s8 + $0x1f0] sm:$0xff] %v292_v62  ;;  %295 = vst [vmem:[%s1281_s8 + $0x1f8] sm:$0xff] %v294_v63 }
  0x39 PF: > { %p1010_p7 = scmp.ge.s32.totalorder %s1193_s18, 1  ;;  %p300_p8 = scmp.lt.s32.totalorder %s1193_s18, 5 }
  0x3b   : > { %p301_p9 = pnand %p1010_p7, %p300_p8 }
  0x3c   : > { %s307_s9 = sand.u32 (!%p301_p9), 1, %s1169_s12   ;;  %v411_v0 = vld [vmem:[%s1533_s2] sm:$0xff] (!%p301_p9)  ;;  %v1195_v1 = vmov (!%p301_p9), 0   ;;  %s1012_s24 = sshll.u32 (!%p301_p9), %s1177_s14, 3 }
  0x3d   : > { %304 = sbr.rel (%p301_p9) target bundleno = 347 (0x15b), region = 51  ;;  %s1011_s21 = sshll.u32 (!%p301_p9), %s307_s9, 9  ;;  %769 = vmatprep.mubr.bf16.mxu0 (!%p301_p9), %v1195_v1  ;;  %810 = vmatprep.mubr.bf16.mxu1 (!%p301_p9), %v1195_v1 }
  0x3e   : > { %1138 = vset.pattern.permute.xlu0 (!%p301_p9), %v1195_v1  ;;  %s1417_s22 = scalar_lea.vmem (!%p301_p9), [#allocation2], %s1011_s21  ;;  %p336_p10 = scmp.lt.s32.totalorder (!%p301_p9), %s1181_s15, 1 }
  0x3f   : > { %v347_v2 = vld [vmem:[%s1417_s22] sm:$0xff] (!%p301_p9)  ;;  %v348_v4 = vld [vmem:[%s1417_s22 + $0x8] sm:$0xff] (!%p301_p9)  ;;  %414 = vperm.xlu0 (!%p301_p9), %1138, %v411_v0   ;;  %v349_v0 = vld [vmem:[%s1417_s22 + $0x10] sm:$0xff] (!%p301_p9)  ;;  %p338_p11 = scmp.lt.s32.totalorder (!%p301_p9), %s1012_s24, 15 }
  0x40   : > { %v351_v3 = vld [vmem:[%s1417_s22 + $0x20] sm:$0xff] (!%p301_p9)  ;;  %v352_v6 = vld [vmem:[%s1417_s22 + $0x28] sm:$0xff] (!%p301_p9) }
  0x41   : > { %v1016_v5 = vcombine.high (!%p301_p9), %v347_v2, %v351_v3  ;;  %v1015_v7 = vcombine.low (!%p301_p9), %v347_v2, %v351_v3  ;;  %v355_v8 = vld [vmem:[%s1417_s22 + $0x40] sm:$0xff] (!%p301_p9)  ;;  %v1018_v10 = vcombine.high (!%p301_p9), %v348_v4, %v352_v6  ;;  %v1017_v11 = vcombine.low (!%p301_p9), %v348_v4, %v352_v6  ;;  %v356_v13 = vld [vmem:[%s1417_s22 + $0x48] sm:$0xff] (!%p301_p9)  ;;  %v353_v2 = vld [vmem:[%s1417_s22 + $0x30] sm:$0xff] (!%p301_p9) }
  0x42   : > { %v359_v9 = vld [vmem:[%s1417_s22 + $0x60] sm:$0xff] (!%p301_p9)  ;;  %v360_v14 = vld [vmem:[%s1417_s22 + $0x68] sm:$0xff] (!%p301_p9)  ;;  %v350_v3 = vld [vmem:[%s1417_s22 + $0x18] sm:$0xff] (!%p301_p9) }
  0x43   : > { %v1024_v12 = vcombine.high (!%p301_p9), %v355_v8, %v359_v9  ;;  %v363_v15 = vld [vmem:[%s1417_s22 + $0x80] sm:$0xff] (!%p301_p9)  ;;  %737 = vmatprep.subr.bf16.mxu0 (!%p301_p9), %v1016_v5  ;;  %v1026_v16 = vcombine.high (!%p301_p9), %v356_v13, %v360_v14  ;;  %v364_v18 = vld [vmem:[%s1417_s22 + $0x88] sm:$0xff] (!%p301_p9)  ;;  %778 = vmatprep.subr.bf16.mxu1 (!%p301_p9), %v1018_v10  ;;  %v1023_v20 = vcombine.low (!%p301_p9), %v355_v8, %v359_v9  ;;  %v354_v4 = vld [vmem:[%s1417_s22 + $0x38] sm:$0xff] (!%p301_p9) }
  0x44   : > { %v367_v17 = vld [vmem:[%s1417_s22 + $0xa0] sm:$0xff]  ;;  %v368_v19 = vld [vmem:[%s1417_s22 + $0xa8] sm:$0xff]  ;;  %738 = vmatpush1.bf16.msra.mxu0 %v1015_v7  ;;  %779 = vmatpush1.bf16.msra.mxu1 %v1017_v11  ;;  %v1025_v21 = vcombine.low %v356_v13, %v360_v14  ;;  %v1020_v7 = vcombine.high %v349_v0, %v353_v2  ;;  %v1022_v8 = vcombine.high %v350_v3, %v354_v4  ;;  %v357_v9 = vld [vmem:[%s1417_s22 + $0x50] sm:$0xff]  ;;  %s1548_s15 = smov (!%p336_p10, %s1181_s15), 1  ;;  %s1550_s24 = smov (!%p338_p11, %s1012_s24), 15 }
  0x45   : > { %739 = vmatprep.subr.bf16.mxu0 %v1024_v12  ;;  %v1032_v22 = vcombine.high %v363_v15, %v367_v17  ;;  %780 = vmatprep.subr.bf16.mxu1 %v1026_v16  ;;  %v1034_v23 = vcombine.high %v364_v18, %v368_v19  ;;  %v371_v24 = vld [vmem:[%s1417_s22 + $0xc0] sm:$0xff]  ;;  %v372_v26 = vld [vmem:[%s1417_s22 + $0xc8] sm:$0xff]  ;;  %v1031_v28 = vcombine.low %v363_v15, %v367_v17  ;;  %v361_v10 = vld [vmem:[%s1417_s22 + $0x70] sm:$0xff]  ;;  %s1013_s26 = sshll.u32 %s1548_s15, 4 }
  0x46   : > { %v375_v25 = vld [vmem:[%s1417_s22 + $0xe0] sm:$0xff]  ;;  %v376_v27 = vld [vmem:[%s1417_s22 + $0xe8] sm:$0xff]  ;;  %v1033_v29 = vcombine.low %v364_v18, %v368_v19  ;;  %v358_v11 = vld [vmem:[%s1417_s22 + $0x58] sm:$0xff]  ;;  %v1019_v14 = vcombine.low %v349_v0, %v353_v2  ;;  %v1021_v15 = vcombine.low %v350_v3, %v354_v4  ;;  %v1028_v16 = vcombine.high %v357_v9, %v361_v10  ;;  %s341_s27 = sadd.s32 %s1013_s26, %s1550_s24 }
  0x47   : > { %v1040_v30 = vcombine.high %v371_v24, %v375_v25  ;;  %v1042_v31 = vcombine.high %v372_v26, %v376_v27  ;;  %v379_v32 = vld [vmem:[%s1417_s22 + $0x100] sm:$0xff]  ;;  %v380_v34 = vld [vmem:[%s1417_s22 + $0x108] sm:$0xff]  ;;  %v1039_v36 = vcombine.low %v371_v24, %v375_v25  ;;  %v1041_v37 = vcombine.low %v372_v26, %v376_v27  ;;  %v362_v12 = vld [vmem:[%s1417_s22 + $0x78] sm:$0xff]  ;;  %s1014_s28 = sshll.u32 %s341_s27, 3 }
  0x48   : > { %740 = vmatpush1.bf16.msra.mxu0 %v1023_v20  ;;  %781 = vmatpush1.bf16.msra.mxu1 %v1025_v21  ;;  %v383_v33 = vld [vmem:[%s1417_s22 + $0x120] sm:$0xff]  ;;  %v384_v35 = vld [vmem:[%s1417_s22 + $0x128] sm:$0xff]  ;;  %v1030_v17 = vcombine.high %v358_v11, %v362_v12  ;;  %v365_v18 = vld [vmem:[%s1417_s22 + $0x90] sm:$0xff]  ;;  %s1500_s4 = scalar_lea.vmem %s1534_s3, %s1014_s28 }
  0x49   : > { %741 = vmatprep.subr.bf16.mxu0 %v1032_v22  ;;  %782 = vmatprep.subr.bf16.mxu1 %v1034_v23  ;;  %v1048_v38 = vcombine.high %v379_v32, %v383_v33  ;;  %v1050_v39 = vcombine.high %v380_v34, %v384_v35  ;;  %v387_v40 = vld [vmem:[%s1417_s22 + $0x140] sm:$0xff]  ;;  %v388_v42 = vld [vmem:[%s1417_s22 + $0x148] sm:$0xff]  ;;  %v1047_v44 = vcombine.low %v379_v32, %v383_v33  ;;  %v369_v19 = vld [vmem:[%s1417_s22 + $0xb0] sm:$0xff] }
  0x4a   : > { %v391_v41 = vld [vmem:[%s1417_s22 + $0x160] sm:$0xff]  ;;  %v392_v43 = vld [vmem:[%s1417_s22 + $0x168] sm:$0xff]  ;;  %v1049_v45 = vcombine.low %v380_v34, %v384_v35  ;;  %v366_v20 = vld [vmem:[%s1417_s22 + $0x98] sm:$0xff]  ;;  %v1027_v22 = vcombine.low %v357_v9, %v361_v10  ;;  %v1029_v23 = vcombine.low %v358_v11, %v362_v12  ;;  %v1036_v24 = vcombine.high %v365_v18, %v369_v19 }
  0x4b   : > { %v1056_v46 = vcombine.high %v387_v40, %v391_v41  ;;  %v1058_v47 = vcombine.high %v388_v42, %v392_v43  ;;  %v395_v48 = vld [vmem:[%s1417_s22 + $0x180] sm:$0xff]  ;;  %v396_v50 = vld [vmem:[%s1417_s22 + $0x188] sm:$0xff]  ;;  %v1055_v52 = vcombine.low %v387_v40, %v391_v41  ;;  %v1057_v53 = vcombine.low %v388_v42, %v392_v43  ;;  %v370_v21 = vld [vmem:[%s1417_s22 + $0xb8] sm:$0xff] }
  0x4c   : > { %742 = vmatpush1.bf16.msra.mxu0 %v1031_v28  ;;  %783 = vmatpush1.bf16.msra.mxu1 %v1033_v29  ;;  %v399_v49 = vld [vmem:[%s1417_s22 + $0x1a0] sm:$0xff]  ;;  %v400_v51 = vld [vmem:[%s1417_s22 + $0x1a8] sm:$0xff]  ;;  %v1038_v25 = vcombine.high %v366_v20, %v370_v21  ;;  %v373_v26 = vld [vmem:[%s1417_s22 + $0xd0] sm:$0xff] }
  0x4d   : > { %743 = vmatprep.subr.bf16.mxu0 %v1040_v30  ;;  %784 = vmatprep.subr.bf16.mxu1 %v1042_v31  ;;  %v1064_v54 = vcombine.high %v395_v48, %v399_v49  ;;  %v1066_v55 = vcombine.high %v396_v50, %v400_v51  ;;  %v403_v56 = vld [vmem:[%s1417_s22 + $0x1c0] sm:$0xff]  ;;  %v404_v58 = vld [vmem:[%s1417_s22 + $0x1c8] sm:$0xff]  ;;  %v1063_v60 = vcombine.low %v395_v48, %v399_v49  ;;  %v377_v27 = vld [vmem:[%s1417_s22 + $0xf0] sm:$0xff] }
  0x4e   : > { %v407_v57 = vld [vmem:[%s1417_s22 + $0x1e0] sm:$0xff]  ;;  %v408_v59 = vld [vmem:[%s1417_s22 + $0x1e8] sm:$0xff]  ;;  %v1065_v61 = vcombine.low %v396_v50, %v400_v51  ;;  %v374_v28 = vld [vmem:[%s1417_s22 + $0xd8] sm:$0xff]  ;;  %v1035_v30 = vcombine.low %v365_v18, %v369_v19  ;;  %v1037_v31 = vcombine.low %v366_v20, %v370_v21  ;;  %v1044_v32 = vcombine.high %v373_v26, %v377_v27 }
  0x4f   : > { %v1072_v62 = vcombine.high %v403_v56, %v407_v57  ;;  %v1074_v63 = vcombine.high %v404_v58, %v408_v59  ;;  %v1071_v5 = vcombine.low %v403_v56, %v407_v57  ;;  %v1073_v6 = vcombine.low %v404_v58, %v408_v59  ;;  %v1462_v13 = vld [vmem:[%s1531_s0] sm:$0xf]  ;;  %v378_v29 = vld [vmem:[%s1417_s22 + $0xf8] sm:$0xff]  ;;  %v381_v34 = vld [vmem:[%s1417_s22 + $0x110] sm:$0xff] }
  0x50   : > { %744 = vmatpush1.bf16.msra.mxu0 %v1039_v36  ;;  %785 = vmatpush1.bf16.msra.mxu1 %v1041_v37  ;;  %v1046_v33 = vcombine.high %v374_v28, %v378_v29  ;;  %v385_v35 = vld [vmem:[%s1417_s22 + $0x130] sm:$0xff]  ;;  %v382_v36 = vld [vmem:[%s1417_s22 + $0x118] sm:$0xff] }
  0x51   : > { %745 = vmatprep.subr.bf16.mxu0 %v1048_v38  ;;  %786 = vmatprep.subr.bf16.mxu1 %v1050_v39  ;;  %v386_v37 = vld [vmem:[%s1417_s22 + $0x138] sm:$0xff]  ;;  %v1043_v38 = vcombine.low %v373_v26, %v377_v27  ;;  %v1052_v39 = vcombine.high %v381_v34, %v385_v35  ;;  %v389_v41 = vld [vmem:[%s1417_s22 + $0x150] sm:$0xff] }
  0x52   : > { %v1054_v40 = vcombine.high %v382_v36, %v386_v37  ;;  %v393_v42 = vld [vmem:[%s1417_s22 + $0x170] sm:$0xff]  ;;  %v390_v43 = vld [vmem:[%s1417_s22 + $0x158] sm:$0xff] }
  0x53   : > { %v397_v49 = vld [vmem:[%s1417_s22 + $0x190] sm:$0xff]  ;;  %v398_v51 = vld [vmem:[%s1417_s22 + $0x198] sm:$0xff] }
  0x54   : > { %746 = vmatpush1.bf16.msra.mxu0 %v1047_v44  ;;  %787 = vmatpush1.bf16.msra.mxu1 %v1049_v45  ;;  %v394_v44 = vld [vmem:[%s1417_s22 + $0x178] sm:$0xff]  ;;  %v1051_v45 = vcombine.low %v381_v34, %v385_v35  ;;  %v401_v50 = vld [vmem:[%s1417_s22 + $0x1b0] sm:$0xff] }
  0x55   : > { %747 = vmatprep.subr.bf16.mxu0 %v1056_v46  ;;  %788 = vmatprep.subr.bf16.mxu1 %v1058_v47  ;;  %v1053_v46 = vcombine.low %v382_v36, %v386_v37  ;;  %v1060_v47 = vcombine.high %v389_v41, %v393_v42  ;;  %v1062_v48 = vcombine.high %v390_v43, %v394_v44  ;;  %v405_v57 = vld [vmem:[%s1417_s22 + $0x1d0] sm:$0xff]  ;;  %v406_v59 = vld [vmem:[%s1417_s22 + $0x1d8] sm:$0xff] }
  0x56   : > { %v409_v58 = vld [vmem:[%s1417_s22 + $0x1f0] sm:$0xff] }
  0x57   : > { %v1075_v2 = vcombine.low %v405_v57, %v409_v58 }
  0x58   : > { %748 = vmatpush1.bf16.msra.mxu0 %v1055_v52  ;;  %789 = vmatpush1.bf16.msra.mxu1 %v1057_v53  ;;  %v402_v52 = vld [vmem:[%s1417_s22 + $0x1b8] sm:$0xff]  ;;  %v1059_v53 = vcombine.low %v389_v41, %v393_v42 }
  0x59   : > { %749 = vmatprep.subr.bf16.mxu0 %v1064_v54  ;;  %790 = vmatprep.subr.bf16.mxu1 %v1066_v55  ;;  %v1061_v54 = vcombine.low %v390_v43, %v394_v44  ;;  %v1068_v55 = vcombine.high %v397_v49, %v401_v50  ;;  %v1070_v56 = vcombine.high %v398_v51, %v402_v52 }
  0x5c   : > { %750 = vmatpush1.bf16.msra.mxu0 %v1063_v60  ;;  %791 = vmatpush1.bf16.msra.mxu1 %v1065_v61  ;;  %v410_v60 = vld [vmem:[%s1417_s22 + $0x1f8] sm:$0xff]  ;;  %v1067_v61 = vcombine.low %v397_v49, %v401_v50 }
  0x5d   : > { %751 = vmatprep.subr.bf16.mxu0 %v1072_v62  ;;  %792 = vmatprep.subr.bf16.mxu1 %v1074_v63  ;;  %v1069_v62 = vcombine.low %v398_v51, %v402_v52  ;;  %v1076_v63 = vcombine.high %v405_v57, %v409_v58  ;;  %v1078_v0 = vcombine.high %v406_v59, %v410_v60 }
  0x5e   : > { %v1077_v3 = vcombine.low %v406_v59, %v410_v60 }
  0x60   : > { %752 = vmatpush1.bf16.msra.mxu0 %v1071_v5  ;;  %793 = vmatpush1.bf16.msra.mxu1 %v1073_v6 }
  0x61   : > { %819 = vmatprep.subr.bf16.mxu0 %v1020_v7  ;;  %860 = vmatprep.subr.bf16.mxu1 %v1022_v8 }
  0x63   : > { %770 = vmatmul.mubr.bf16.vlgmr.msra.gmra.mrb[0].mxu0 %v1462_v13  ;;  %811 = vmatmul.mubr.bf16.vlgmr.msra.gmra.mrb[0].mxu1 %v1462_v13 }
  0x64   : > { %820 = vmatpush1.bf16.msra.mxu0 %v1019_v14  ;;  %861 = vmatpush1.bf16.msra.mxu1 %v1021_v15 }
  0x65   : > { %821 = vmatprep.subr.bf16.mxu0 %v1028_v16  ;;  %862 = vmatprep.subr.bf16.mxu1 %v1030_v17 }
  0x66   : > { %851 = vmatprep.mubr.bf16.mxu0 %v1195_v1  ;;  %892 = vmatprep.mubr.bf16.mxu1 %v1195_v1  ;;  %v1045_v1 = vcombine.low %v374_v28, %v378_v29 }
  0x68   : > { %822 = vmatpush1.bf16.msra.mxu0 %v1027_v22  ;;  %863 = vmatpush1.bf16.msra.mxu1 %v1029_v23 }
  0x69   : > { %823 = vmatprep.subr.bf16.mxu0 %v1036_v24  ;;  %864 = vmatprep.subr.bf16.mxu1 %v1038_v25 }
  0x6c   : > { %824 = vmatpush1.bf16.msra.mxu0 %v1035_v30  ;;  %865 = vmatpush1.bf16.msra.mxu1 %v1037_v31 }
  0x6d   : > { %825 = vmatprep.subr.bf16.mxu0 %v1044_v32  ;;  %866 = vmatprep.subr.bf16.mxu1 %v1046_v33 }
  0x70   : > { %826 = vmatpush1.bf16.msra.mxu0 %v1043_v38  ;;  %867 = vmatpush1.bf16.msra.mxu1 %v1045_v1 }
  0x71   : > { %827 = vmatprep.subr.bf16.mxu0 %v1052_v39  ;;  %868 = vmatprep.subr.bf16.mxu1 %v1054_v40 }
  0x74   : > { %828 = vmatpush1.bf16.msra.mxu0 %v1051_v45  ;;  %869 = vmatpush1.bf16.msra.mxu1 %v1053_v46 }
  0x75   : > { %829 = vmatprep.subr.bf16.mxu0 %v1060_v47  ;;  %870 = vmatprep.subr.bf16.mxu1 %v1062_v48 }
  0x78   : > { %830 = vmatpush1.bf16.msra.mxu0 %v1059_v53  ;;  %871 = vmatpush1.bf16.msra.mxu1 %v1061_v54 }
  0x79   : > { %831 = vmatprep.subr.bf16.mxu0 %v1068_v55  ;;  %872 = vmatprep.subr.bf16.mxu1 %v1070_v56 }
  0x7c   : > { %832 = vmatpush1.bf16.msra.mxu0 %v1067_v61  ;;  %873 = vmatpush1.bf16.msra.mxu1 %v1069_v62 }
  0x7d   : > { %833 = vmatprep.subr.bf16.mxu0 %v1076_v63  ;;  %874 = vmatprep.subr.bf16.mxu1 %v1078_v0 }
  0x80   : > { %834 = vmatpush1.bf16.msra.mxu0 %v1075_v2  ;;  %875 = vmatpush1.bf16.msra.mxu1 %v1077_v3 }
  0x83   : > { %852 = vmatmul.mubr.bf16.vlgmr.msra.gmra.mrb[4].mxu0 %v1462_v13  ;;  %893 = vmatmul.mubr.bf16.vlgmr.msra.gmra.mrb[4].mxu1 %v1462_v13 }
  0xbe   : > { %v415_v4 = vpop.permute.xlu0 %414 }
 0x136   : > { %v771_v5 = vpop.f32.mrb[0].mxu0  ;;  %v812_v6 = vpop.f32.mrb[0].mxu1 }
 0x137   : > { %v772_v7 = vadd.f32 %v771_v5, %v415_v4  ;;  %v773_v8 = vpop.f32.mrb[1].mxu0  ;;  %v813_v9 = vadd.f32 %v812_v6, %v415_v4  ;;  %v814_v11 = vpop.f32.mrb[1].mxu1 }
 0x138   : > { %v774_v10 = vadd.f32 %v773_v8, %v415_v4  ;;  %v775_v12 = vpop.f32.mrb[2].mxu0  ;;  %v815_v13 = vadd.f32 %v814_v11, %v415_v4  ;;  %v816_v14 = vpop.f32.mrb[2].mxu1 }
 0x139   : > { %901 = vst [vmem:[%s1500_s4] sm:$0xff] %v772_v7  ;;  %v776_v15 = vpop.f32.mrb[3].mxu0  ;;  %903 = vst [vmem:[%s1500_s4 + $0x10] sm:$0xff] %v813_v9  ;;  %v817_v16 = vpop.f32.mrb[3].mxu1 }
 0x13a   : > { %902 = vst [vmem:[%s1500_s4 + $0x8] sm:$0xff] %v774_v10  ;;  %904 = vst [vmem:[%s1500_s4 + $0x18] sm:$0xff] %v815_v13 }
 0x156   : > { %v853_v17 = vpop.f32.mrb[4].mxu0  ;;  %v894_v19 = vpop.f32.mrb[4].mxu1 }
 0x157   : > { %v854_v18 = vadd.f32 %v853_v17, %v415_v4  ;;  %v855_v20 = vpop.f32.mrb[5].mxu0  ;;  %v895_v21 = vadd.f32 %v894_v19, %v415_v4  ;;  %v896_v23 = vpop.f32.mrb[5].mxu1 }
 0x158   : > { %v856_v22 = vadd.f32 %v855_v20, %v415_v4  ;;  %v857_v24 = vpop.f32.mrb[6].mxu0  ;;  %v897_v25 = vadd.f32 %v896_v23, %v415_v4  ;;  %v898_v26 = vpop.f32.mrb[6].mxu1 }
 0x159   : > { %905 = vst [vmem:[%s1500_s4 + $0x20] sm:$0xff] %v854_v18  ;;  %v858_v27 = vpop.f32.mrb[7].mxu0  ;;  %907 = vst [vmem:[%s1500_s4 + $0x30] sm:$0xff] %v895_v21  ;;  %v899_v28 = vpop.f32.mrb[7].mxu1 }
 0x15a   : > { %906 = vst [vmem:[%s1500_s4 + $0x28] sm:$0xff] %v856_v22  ;;  %908 = vst [vmem:[%s1500_s4 + $0x38] sm:$0xff] %v897_v25 }
 0x15b PF: > { %s13_s18 = sadd.s32 1, %s1193_s18   ;;  %s1535_s12 = smov %s1173_s13 }
 0x15c   : > { %p10_p12 = scmp.ge.s32.totalorder %s13_s18, 6   ;;  %s1536_s13 = smov %s1267_s25 }
 0x15d   : > { %s1537_s14 = smov %s1185_s16  ;;  %s1538_s15 = smov %s1189_s17 }
 0x15e   : > { %s1539_s16 = smov %s1542_s19  ;;  %s1540_s17 = smov %s1546_s20 }
 0x15f   :  { %12 = sbr.rel (!%p10_p12) target bundleno = 4 (0x4), region = 90 }

</bundles_post_ra>
